<compile_context>
chip_gen: v6e
topology: v6e:2x2x1
jax: 0.10.0
libtpu: 0.0.40
codegen_flags: <defaults>
</compile_context>

<pallas_src>
import functools

import jax
import jax.numpy as jnp
from jax.experimental import pallas as pl
from jax.experimental.pallas import tpu as pltpu


# ----------------------------- Fused GRU + dense kernel ------------------------------
def _fused_gru_kernel(*refs, seq, batch, batch_padded, hidden, num_layers):
    x_ref = refs[0]
    layer_refs = refs[1:1 + 4 * num_layers]
    dense_w_ref = refs[1 + 4 * num_layers]
    dense_b_ref = refs[2 + 4 * num_layers]
    out_ref = refs[3 + 4 * num_layers]

    H = hidden
    Bp = batch_padded

    cur = x_ref[...]                                  # (S*Bp, D_in), time-major flattened
    h = None
    for li in range(num_layers):
        w_ih_ref, w_hh_ref, b_gi_ref, b_hn_ref = layer_refs[4 * li:4 * li + 4]

        # Hoisted, fused input projection for ALL timesteps: one (S*Bp, D) x (D, 3H) matmul.
        # Combined biases (b_ih+b_hh for r/z, b_ih for n) are pre-folded into b_gi.
        gi = (jnp.dot(cur, w_ih_ref[...], preferred_element_type=jnp.float32)
              + b_gi_ref[...])                        # (S*Bp, 3H)

        w_hh = w_hh_ref[...]                          # (H, 3H), fused recurrent weights
        b_hn = b_hn_ref[...]                          # (1, H)

        h = jnp.zeros((Bp, H), jnp.float32)
        hs = []
        is_last_layer = (li + 1 == num_layers)

        for t in range(seq):                          # fully unrolled serial recurrence
            gi_t = gi[t * Bp:(t + 1) * Bp]            # sublane-tile-aligned static slice
            if t == 0:
                # h is exactly zero at t=0: skip the dead matmul.
                gh = jnp.zeros((Bp, 3 * H), jnp.float32)
            else:
                # Single fused (Bp, H) x (H, 3H) matmul per step (one MXU pass).
                gh = jnp.dot(h, w_hh, preferred_element_type=jnp.float32)

            # sigmoid(x) = 0.5*tanh(0.5*x) + 0.5 : one EUP op for both r and z gates.
            rz = 0.5 * jnp.tanh(0.5 * (gi_t[:, :2 * H] + gh[:, :2 * H])) + 0.5
            r = rz[:, :H]
            z = rz[:, H:]
            n = jnp.tanh(gi_t[:, 2 * H:] + r * (gh[:, 2 * H:] + b_hn))
            h = (1.0 - z) * n + z * h
            if not is_last_layer:
                hs.append(h)

        if not is_last_layer:
            # In-register intermediate sequence for the next layer (aligned 8-row chunks).
            cur = jnp.concatenate(hs, axis=0)         # (S*Bp, H)

    # Dense head on the last timestep of the last layer (== x[:, -1, :] batch_first),
    # keeping only the real (un-padded) batch rows.
    out = (jnp.dot(h, dense_w_ref[...], preferred_element_type=jnp.float32)
           + dense_b_ref[...])
    out_ref[...] = out[:batch]


# ----------------------- Host-side weight preparation -------------------------
def _prepare_kernel_params(params):
    """PyTorch-layout params -> fused (pre-transposed, gate-concatenated, bias-folded)."""
    layers = []
    for layer in params["gru"]:
        w_ih, w_hh = layer["w_ih"], layer["w_hh"]     # (3H, D), (3H, H); gate order r|z|n
        H = w_hh.shape[1]
        b_ih = layer["b_ih"].reshape(3, H)
        b_hh = layer["b_hh"].reshape(3, H)
        w_ih_cat = w_ih.T                             # (D, 3H), MXU-natural
        w_hh_cat = w_hh.T                             # (H, 3H)
        b_gi = jnp.concatenate([
            b_ih[0] + b_hh[0],                        # r: both biases folded
            b_ih[1] + b_hh[1],                        # z: both biases folded
            b_ih[2],                                  # n: input bias only
        ])[None, :]                                   # (1, 3H)
        b_hn = b_hh[2][None, :]                       # (1, H) stays inside r*(.) term
        layers.append((w_ih_cat, w_hh_cat, b_gi, b_hn))
    return layers, params["dense_w"].T, params["dense_b"]   # dense_w -> (H, O)


# --------------------------- Model forward (glue) -----------------------------
@jax.jit
def custom_gru_forward(x, params):
    """x: (B, S, input_size) batch_first. Returns (B, output_dim)."""
    B, S, D = x.shape
    Bp = ((B + 7) // 8) * 8                           # pad batch to a full sublane tile

    layers, dense_w, dense_b = _prepare_kernel_params(params)
    units = layers[0][1].shape[0]                     # w_hh_cat is (H, 3H)
    out_dim = dense_w.shape[1]
    num_layers = len(layers)

    # Time-major, batch zero-padded to Bp, flattened to (S*Bp, D):
    # row t*Bp + b is timestep t of batch element b.
    xt = jnp.transpose(x, (1, 0, 2))                  # (S, B, D)
    xt = jnp.pad(xt, ((0, 0), (0, Bp - B), (0, 0)))
    x2d = xt.reshape(S * Bp, D)

    flat_inputs = [x2d]
    for lr in layers:
        flat_inputs.extend(lr)
    flat_inputs += [dense_w, dense_b]

    kernel = functools.partial(
        _fused_gru_kernel, seq=S, batch=B, batch_padded=Bp,
        hidden=units, num_layers=num_layers)

    vmem_spec = pl.BlockSpec(memory_space=pltpu.MemorySpace.VMEM)
    return pl.pallas_call(
        kernel,
        out_shape=jax.ShapeDtypeStruct((B, out_dim), jnp.float32),
        in_specs=[vmem_spec] * len(flat_inputs),
        out_specs=vmem_spec,
    )(*flat_inputs)


# ----------------------- Deterministic parameter init -------------------------
def init_params(key, input_size, units, output_dim, num_layers):
    k = 1.0 / jnp.sqrt(units)
    params = {"gru": []}
    for i in range(num_layers):
        d_in = input_size if i == 0 else units
        key, k1, k2, k3, k4 = jax.random.split(key, 5)
        params["gru"].append({
            "w_ih": jax.random.uniform(k1, (3 * units, d_in), jnp.float32, -k, k),
            "w_hh": jax.random.uniform(k2, (3 * units, units), jnp.float32, -k, k),
            "b_ih": jax.random.uniform(k3, (1, 3 * units), jnp.float32, -k, k),
            "b_hh": jax.random.uniform(k4, (1, 3 * units), jnp.float32, -k, k),
        })
    key, k1, k2 = jax.random.split(key, 3)
    kd = 1.0 / jnp.sqrt(units)
    params["dense_w"] = jax.random.uniform(k1, (output_dim, units), jnp.float32, -kd, kd)
    params["dense_b"] = jax.random.uniform(k2, (1, output_dim), jnp.float32, -kd, kd)
    return params


# ------------------------------ Pure-JAX reference ----------------------------
def _ref_forward(x, params):
    h_seq = jnp.transpose(x, (1, 0, 2))
    for layer in params["gru"]:
        w_ih, w_hh = layer["w_ih"], layer["w_hh"]
        b_ih, b_hh = layer["b_ih"][0], layer["b_hh"][0]
        H = w_hh.shape[1]
        B = h_seq.shape[1]

        def step(h, xt):
            gi = xt @ w_ih.T + b_ih
            gh = h @ w_hh.T + b_hh
            r = jax.nn.sigmoid(gi[:, :H] + gh[:, :H])
            z = jax.nn.sigmoid(gi[:, H:2 * H] + gh[:, H:2 * H])
            n = jnp.tanh(gi[:, 2 * H:] + r * gh[:, 2 * H:])
            h_new = (1.0 - z) * n + z * h
            return h_new, h_new

        _, h_seq = jax.lax.scan(step, jnp.zeros((B, H), jnp.float32), h_seq)
    return h_seq[-1] @ params["dense_w"].T + params["dense_b"][0]


# ----------------------------------- Main -------------------------------------
if __name__ == "__main__":
    # Match reference and kernel f32 matmul precision (avoids XLA's bf16 default on TPU).
    jax.config.update("jax_default_matmul_precision", "highest")

    # Small shapes consistent with the module's forward:
    batch, seq, input_size = 2, 8, 4
    units, output_dim, num_layers = 32, 3, 2

    key = jax.random.PRNGKey(0)
    key, kx, kp = jax.random.split(key, 3)
    x = jax.random.normal(kx, (batch, seq, input_size), jnp.float32)
    params = init_params(kp, input_size, units, output_dim, num_layers)

    out = custom_gru_forward(x, params)
    out = jax.block_until_ready(out)

    ref = _ref_forward(x, params)
    assert out.shape == (batch, output_dim)
    assert jnp.allclose(out, ref, atol=1e-5, rtol=1e-5), (out, ref)

    print("KERNEL_OK")
</pallas_src>

<mosaic_0001>
module attributes {stable_mosaic.version = 11 : i64} {
  func.func @_fused_gru_kernel(%arg0: memref<64x4xf32, #tpu.memory_space<vmem>>, %arg1: memref<4x96xf32, #tpu.memory_space<vmem>>, %arg2: memref<32x96xf32, #tpu.memory_space<vmem>>, %arg3: memref<1x96xf32, #tpu.memory_space<vmem>>, %arg4: memref<1x32xf32, #tpu.memory_space<vmem>>, %arg5: memref<32x96xf32, #tpu.memory_space<vmem>>, %arg6: memref<32x96xf32, #tpu.memory_space<vmem>>, %arg7: memref<1x96xf32, #tpu.memory_space<vmem>>, %arg8: memref<1x32xf32, #tpu.memory_space<vmem>>, %arg9: memref<32x3xf32, #tpu.memory_space<vmem>>, %arg10: memref<1x3xf32, #tpu.memory_space<vmem>>, %arg11: memref<2x3xf32, #tpu.memory_space<vmem>>) attributes {dimension_semantics = [], scalar_prefetch = 0 : i64, scratch_operands = 0 : i64, tpu.core_type = #tpu.core_type<tc>} {
    %c0 = arith.constant 0 : index
    %c0_0 = arith.constant 0 : index
    %0 = vector.load %arg0[%c0, %c0_0] : memref<64x4xf32, #tpu.memory_space<vmem>>, vector<64x4xf32>
    %c0_1 = arith.constant 0 : index
    %c0_2 = arith.constant 0 : index
    %1 = vector.load %arg1[%c0_1, %c0_2] : memref<4x96xf32, #tpu.memory_space<vmem>>, vector<4x96xf32>
    %cst = arith.constant dense<0.000000e+00> : vector<64x96xf32>
    %2 = tpu.matmul %0, %1, %cst {dimension_numbers = #tpu.dot_dimension_numbers<[1], [0], [0], [1], [0, 0, 1, 1], [], []>, precision = #tpu.contract_precision<fp32>} : vector<64x4xf32>, vector<4x96xf32>, vector<64x96xf32> -> vector<64x96xf32>
    %c0_3 = arith.constant 0 : index
    %c0_4 = arith.constant 0 : index
    %3 = vector.load %arg3[%c0_3, %c0_4] : memref<1x96xf32, #tpu.memory_space<vmem>>, vector<1x96xf32>
    %4 = vector.broadcast %3 : vector<1x96xf32> to vector<64x96xf32>
    %5 = arith.addf %2, %4 : vector<64x96xf32>
    %c0_5 = arith.constant 0 : index
    %c0_6 = arith.constant 0 : index
    %6 = vector.load %arg2[%c0_5, %c0_6] : memref<32x96xf32, #tpu.memory_space<vmem>>, vector<32x96xf32>
    %c0_7 = arith.constant 0 : index
    %c0_8 = arith.constant 0 : index
    %7 = vector.load %arg4[%c0_7, %c0_8] : memref<1x32xf32, #tpu.memory_space<vmem>>, vector<1x32xf32>
    %cst_9 = arith.constant 0.000000e+00 : f32
    %8 = vector.broadcast %cst_9 : f32 to vector<8x32xf32>
    %9 = vector.extract_strided_slice %5 {offsets = [0, 0], sizes = [8, 96], strides = [1, 1]} : vector<64x96xf32> to vector<8x96xf32>
    %cst_10 = arith.constant 0.000000e+00 : f32
    %10 = vector.broadcast %cst_10 : f32 to vector<8x96xf32>
    %11 = vector.extract_strided_slice %9 {offsets = [0, 0], sizes = [8, 64], strides = [1, 1]} : vector<8x96xf32> to vector<8x64xf32>
    %12 = vector.extract_strided_slice %10 {offsets = [0, 0], sizes = [8, 64], strides = [1, 1]} : vector<8x96xf32> to vector<8x64xf32>
    %13 = arith.addf %11, %12 : vector<8x64xf32>
    %cst_11 = arith.constant 5.000000e-01 : f32
    %14 = vector.broadcast %cst_11 : f32 to vector<8x64xf32>
    %15 = arith.mulf %14, %13 : vector<8x64xf32>
    %16 = math.tanh %15 : vector<8x64xf32>
    %cst_12 = arith.constant 5.000000e-01 : f32
    %17 = vector.broadcast %cst_12 : f32 to vector<8x64xf32>
    %18 = arith.mulf %17, %16 : vector<8x64xf32>
    %cst_13 = arith.constant 5.000000e-01 : f32
    %19 = vector.broadcast %cst_13 : f32 to vector<8x64xf32>
    %20 = arith.addf %18, %19 : vector<8x64xf32>
    %21 = vector.extract_strided_slice %20 {offsets = [0, 0], sizes = [8, 32], strides = [1, 1]} : vector<8x64xf32> to vector<8x32xf32>
    %22 = vector.extract_strided_slice %20 {offsets = [0, 32], sizes = [8, 32], strides = [1, 1]} : vector<8x64xf32> to vector<8x32xf32>
    %23 = vector.extract_strided_slice %9 {offsets = [0, 64], sizes = [8, 32], strides = [1, 1]} : vector<8x96xf32> to vector<8x32xf32>
    %24 = vector.extract_strided_slice %10 {offsets = [0, 64], sizes = [8, 32], strides = [1, 1]} : vector<8x96xf32> to vector<8x32xf32>
    %25 = vector.broadcast %7 : vector<1x32xf32> to vector<8x32xf32>
    %26 = arith.addf %24, %25 : vector<8x32xf32>
    %27 = arith.mulf %21, %26 : vector<8x32xf32>
    %28 = arith.addf %23, %27 : vector<8x32xf32>
    %29 = math.tanh %28 : vector<8x32xf32>
    %cst_14 = arith.constant 1.000000e+00 : f32
    %30 = vector.broadcast %cst_14 : f32 to vector<8x32xf32>
    %31 = arith.subf %30, %22 : vector<8x32xf32>
    %32 = arith.mulf %31, %29 : vector<8x32xf32>
    %33 = arith.mulf %22, %8 : vector<8x32xf32>
    %34 = arith.addf %32, %33 : vector<8x32xf32>
    %35 = vector.extract_strided_slice %5 {offsets = [8, 0], sizes = [8, 96], strides = [1, 1]} : vector<64x96xf32> to vector<8x96xf32>
    %cst_15 = arith.constant dense<0.000000e+00> : vector<8x96xf32>
    %36 = tpu.matmul %34, %6, %cst_15 {dimension_numbers = #tpu.dot_dimension_numbers<[1], [0], [0], [1], [0, 0, 1, 1], [], []>, precision = #tpu.contract_precision<fp32>} : vector<8x32xf32>, vector<32x96xf32>, vector<8x96xf32> -> vector<8x96xf32>
    %37 = vector.extract_strided_slice %35 {offsets = [0, 0], sizes = [8, 64], strides = [1, 1]} : vector<8x96xf32> to vector<8x64xf32>
    %38 = vector.extract_strided_slice %36 {offsets = [0, 0], sizes = [8, 64], strides = [1, 1]} : vector<8x96xf32> to vector<8x64xf32>
    %39 = arith.addf %37, %38 : vector<8x64xf32>
    %cst_16 = arith.constant 5.000000e-01 : f32
    %40 = vector.broadcast %cst_16 : f32 to vector<8x64xf32>
    %41 = arith.mulf %40, %39 : vector<8x64xf32>
    %42 = math.tanh %41 : vector<8x64xf32>
    %cst_17 = arith.constant 5.000000e-01 : f32
    %43 = vector.broadcast %cst_17 : f32 to vector<8x64xf32>
    %44 = arith.mulf %43, %42 : vector<8x64xf32>
    %cst_18 = arith.constant 5.000000e-01 : f32
    %45 = vector.broadcast %cst_18 : f32 to vector<8x64xf32>
    %46 = arith.addf %44, %45 : vector<8x64xf32>
    %47 = vector.extract_strided_slice %46 {offsets = [0, 0], sizes = [8, 32], strides = [1, 1]} : vector<8x64xf32> to vector<8x32xf32>
    %48 = vector.extract_strided_slice %46 {offsets = [0, 32], sizes = [8, 32], strides = [1, 1]} : vector<8x64xf32> to vector<8x32xf32>
    %49 = vector.extract_strided_slice %35 {offsets = [0, 64], sizes = [8, 32], strides = [1, 1]} : vector<8x96xf32> to vector<8x32xf32>
    %50 = vector.extract_strided_slice %36 {offsets = [0, 64], sizes = [8, 32], strides = [1, 1]} : vector<8x96xf32> to vector<8x32xf32>
    %51 = vector.broadcast %7 : vector<1x32xf32> to vector<8x32xf32>
    %52 = arith.addf %50, %51 : vector<8x32xf32>
    %53 = arith.mulf %47, %52 : vector<8x32xf32>
    %54 = arith.addf %49, %53 : vector<8x32xf32>
    %55 = math.tanh %54 : vector<8x32xf32>
    %cst_19 = arith.constant 1.000000e+00 : f32
    %56 = vector.broadcast %cst_19 : f32 to vector<8x32xf32>
    %57 = arith.subf %56, %48 : vector<8x32xf32>
    %58 = arith.mulf %57, %55 : vector<8x32xf32>
    %59 = arith.mulf %48, %34 : vector<8x32xf32>
    %60 = arith.addf %58, %59 : vector<8x32xf32>
    %61 = vector.extract_strided_slice %5 {offsets = [16, 0], sizes = [8, 96], strides = [1, 1]} : vector<64x96xf32> to vector<8x96xf32>
    %cst_20 = arith.constant dense<0.000000e+00> : vector<8x96xf32>
    %62 = tpu.matmul %60, %6, %cst_20 {dimension_numbers = #tpu.dot_dimension_numbers<[1], [0], [0], [1], [0, 0, 1, 1], [], []>, precision = #tpu.contract_precision<fp32>} : vector<8x32xf32>, vector<32x96xf32>, vector<8x96xf32> -> vector<8x96xf32>
    %63 = vector.extract_strided_slice %61 {offsets = [0, 0], sizes = [8, 64], strides = [1, 1]} : vector<8x96xf32> to vector<8x64xf32>
    %64 = vector.extract_strided_slice %62 {offsets = [0, 0], sizes = [8, 64], strides = [1, 1]} : vector<8x96xf32> to vector<8x64xf32>
    %65 = arith.addf %63, %64 : vector<8x64xf32>
    %cst_21 = arith.constant 5.000000e-01 : f32
    %66 = vector.broadcast %cst_21 : f32 to vector<8x64xf32>
    %67 = arith.mulf %66, %65 : vector<8x64xf32>
    %68 = math.tanh %67 : vector<8x64xf32>
    %cst_22 = arith.constant 5.000000e-01 : f32
    %69 = vector.broadcast %cst_22 : f32 to vector<8x64xf32>
    %70 = arith.mulf %69, %68 : vector<8x64xf32>
    %cst_23 = arith.constant 5.000000e-01 : f32
    %71 = vector.broadcast %cst_23 : f32 to vector<8x64xf32>
    %72 = arith.addf %70, %71 : vector<8x64xf32>
    %73 = vector.extract_strided_slice %72 {offsets = [0, 0], sizes = [8, 32], strides = [1, 1]} : vector<8x64xf32> to vector<8x32xf32>
    %74 = vector.extract_strided_slice %72 {offsets = [0, 32], sizes = [8, 32], strides = [1, 1]} : vector<8x64xf32> to vector<8x32xf32>
    %75 = vector.extract_strided_slice %61 {offsets = [0, 64], sizes = [8, 32], strides = [1, 1]} : vector<8x96xf32> to vector<8x32xf32>
    %76 = vector.extract_strided_slice %62 {offsets = [0, 64], sizes = [8, 32], strides = [1, 1]} : vector<8x96xf32> to vector<8x32xf32>
    %77 = vector.broadcast %7 : vector<1x32xf32> to vector<8x32xf32>
    %78 = arith.addf %76, %77 : vector<8x32xf32>
    %79 = arith.mulf %73, %78 : vector<8x32xf32>
    %80 = arith.addf %75, %79 : vector<8x32xf32>
    %81 = math.tanh %80 : vector<8x32xf32>
    %cst_24 = arith.constant 1.000000e+00 : f32
    %82 = vector.broadcast %cst_24 : f32 to vector<8x32xf32>
    %83 = arith.subf %82, %74 : vector<8x32xf32>
    %84 = arith.mulf %83, %81 : vector<8x32xf32>
    %85 = arith.mulf %74, %60 : vector<8x32xf32>
    %86 = arith.addf %84, %85 : vector<8x32xf32>
    %87 = vector.extract_strided_slice %5 {offsets = [24, 0], sizes = [8, 96], strides = [1, 1]} : vector<64x96xf32> to vector<8x96xf32>
    %cst_25 = arith.constant dense<0.000000e+00> : vector<8x96xf32>
    %88 = tpu.matmul %86, %6, %cst_25 {dimension_numbers = #tpu.dot_dimension_numbers<[1], [0], [0], [1], [0, 0, 1, 1], [], []>, precision = #tpu.contract_precision<fp32>} : vector<8x32xf32>, vector<32x96xf32>, vector<8x96xf32> -> vector<8x96xf32>
    %89 = vector.extract_strided_slice %87 {offsets = [0, 0], sizes = [8, 64], strides = [1, 1]} : vector<8x96xf32> to vector<8x64xf32>
    %90 = vector.extract_strided_slice %88 {offsets = [0, 0], sizes = [8, 64], strides = [1, 1]} : vector<8x96xf32> to vector<8x64xf32>
    %91 = arith.addf %89, %90 : vector<8x64xf32>
    %cst_26 = arith.constant 5.000000e-01 : f32
    %92 = vector.broadcast %cst_26 : f32 to vector<8x64xf32>
    %93 = arith.mulf %92, %91 : vector<8x64xf32>
    %94 = math.tanh %93 : vector<8x64xf32>
    %cst_27 = arith.constant 5.000000e-01 : f32
    %95 = vector.broadcast %cst_27 : f32 to vector<8x64xf32>
    %96 = arith.mulf %95, %94 : vector<8x64xf32>
    %cst_28 = arith.constant 5.000000e-01 : f32
    %97 = vector.broadcast %cst_28 : f32 to vector<8x64xf32>
    %98 = arith.addf %96, %97 : vector<8x64xf32>
    %99 = vector.extract_strided_slice %98 {offsets = [0, 0], sizes = [8, 32], strides = [1, 1]} : vector<8x64xf32> to vector<8x32xf32>
    %100 = vector.extract_strided_slice %98 {offsets = [0, 32], sizes = [8, 32], strides = [1, 1]} : vector<8x64xf32> to vector<8x32xf32>
    %101 = vector.extract_strided_slice %87 {offsets = [0, 64], sizes = [8, 32], strides = [1, 1]} : vector<8x96xf32> to vector<8x32xf32>
    %102 = vector.extract_strided_slice %88 {offsets = [0, 64], sizes = [8, 32], strides = [1, 1]} : vector<8x96xf32> to vector<8x32xf32>
    %103 = vector.broadcast %7 : vector<1x32xf32> to vector<8x32xf32>
    %104 = arith.addf %102, %103 : vector<8x32xf32>
    %105 = arith.mulf %99, %104 : vector<8x32xf32>
    %106 = arith.addf %101, %105 : vector<8x32xf32>
    %107 = math.tanh %106 : vector<8x32xf32>
    %cst_29 = arith.constant 1.000000e+00 : f32
    %108 = vector.broadcast %cst_29 : f32 to vector<8x32xf32>
    %109 = arith.subf %108, %100 : vector<8x32xf32>
    %110 = arith.mulf %109, %107 : vector<8x32xf32>
    %111 = arith.mulf %100, %86 : vector<8x32xf32>
    %112 = arith.addf %110, %111 : vector<8x32xf32>
    %113 = vector.extract_strided_slice %5 {offsets = [32, 0], sizes = [8, 96], strides = [1, 1]} : vector<64x96xf32> to vector<8x96xf32>
    %cst_30 = arith.constant dense<0.000000e+00> : vector<8x96xf32>
    %114 = tpu.matmul %112, %6, %cst_30 {dimension_numbers = #tpu.dot_dimension_numbers<[1], [0], [0], [1], [0, 0, 1, 1], [], []>, precision = #tpu.contract_precision<fp32>} : vector<8x32xf32>, vector<32x96xf32>, vector<8x96xf32> -> vector<8x96xf32>
    %115 = vector.extract_strided_slice %113 {offsets = [0, 0], sizes = [8, 64], strides = [1, 1]} : vector<8x96xf32> to vector<8x64xf32>
    %116 = vector.extract_strided_slice %114 {offsets = [0, 0], sizes = [8, 64], strides = [1, 1]} : vector<8x96xf32> to vector<8x64xf32>
    %117 = arith.addf %115, %116 : vector<8x64xf32>
    %cst_31 = arith.constant 5.000000e-01 : f32
    %118 = vector.broadcast %cst_31 : f32 to vector<8x64xf32>
    %119 = arith.mulf %118, %117 : vector<8x64xf32>
    %120 = math.tanh %119 : vector<8x64xf32>
    %cst_32 = arith.constant 5.000000e-01 : f32
    %121 = vector.broadcast %cst_32 : f32 to vector<8x64xf32>
    %122 = arith.mulf %121, %120 : vector<8x64xf32>
    %cst_33 = arith.constant 5.000000e-01 : f32
    %123 = vector.broadcast %cst_33 : f32 to vector<8x64xf32>
    %124 = arith.addf %122, %123 : vector<8x64xf32>
    %125 = vector.extract_strided_slice %124 {offsets = [0, 0], sizes = [8, 32], strides = [1, 1]} : vector<8x64xf32> to vector<8x32xf32>
    %126 = vector.extract_strided_slice %124 {offsets = [0, 32], sizes = [8, 32], strides = [1, 1]} : vector<8x64xf32> to vector<8x32xf32>
    %127 = vector.extract_strided_slice %113 {offsets = [0, 64], sizes = [8, 32], strides = [1, 1]} : vector<8x96xf32> to vector<8x32xf32>
    %128 = vector.extract_strided_slice %114 {offsets = [0, 64], sizes = [8, 32], strides = [1, 1]} : vector<8x96xf32> to vector<8x32xf32>
    %129 = vector.broadcast %7 : vector<1x32xf32> to vector<8x32xf32>
    %130 = arith.addf %128, %129 : vector<8x32xf32>
    %131 = arith.mulf %125, %130 : vector<8x32xf32>
    %132 = arith.addf %127, %131 : vector<8x32xf32>
    %133 = math.tanh %132 : vector<8x32xf32>
    %cst_34 = arith.constant 1.000000e+00 : f32
    %134 = vector.broadcast %cst_34 : f32 to vector<8x32xf32>
    %135 = arith.subf %134, %126 : vector<8x32xf32>
    %136 = arith.mulf %135, %133 : vector<8x32xf32>
    %137 = arith.mulf %126, %112 : vector<8x32xf32>
    %138 = arith.addf %136, %137 : vector<8x32xf32>
    %139 = vector.extract_strided_slice %5 {offsets = [40, 0], sizes = [8, 96], strides = [1, 1]} : vector<64x96xf32> to vector<8x96xf32>
    %cst_35 = arith.constant dense<0.000000e+00> : vector<8x96xf32>
    %140 = tpu.matmul %138, %6, %cst_35 {dimension_numbers = #tpu.dot_dimension_numbers<[1], [0], [0], [1], [0, 0, 1, 1], [], []>, precision = #tpu.contract_precision<fp32>} : vector<8x32xf32>, vector<32x96xf32>, vector<8x96xf32> -> vector<8x96xf32>
    %141 = vector.extract_strided_slice %139 {offsets = [0, 0], sizes = [8, 64], strides = [1, 1]} : vector<8x96xf32> to vector<8x64xf32>
    %142 = vector.extract_strided_slice %140 {offsets = [0, 0], sizes = [8, 64], strides = [1, 1]} : vector<8x96xf32> to vector<8x64xf32>
    %143 = arith.addf %141, %142 : vector<8x64xf32>
    %cst_36 = arith.constant 5.000000e-01 : f32
    %144 = vector.broadcast %cst_36 : f32 to vector<8x64xf32>
    %145 = arith.mulf %144, %143 : vector<8x64xf32>
    %146 = math.tanh %145 : vector<8x64xf32>
    %cst_37 = arith.constant 5.000000e-01 : f32
    %147 = vector.broadcast %cst_37 : f32 to vector<8x64xf32>
    %148 = arith.mulf %147, %146 : vector<8x64xf32>
    %cst_38 = arith.constant 5.000000e-01 : f32
    %149 = vector.broadcast %cst_38 : f32 to vector<8x64xf32>
    %150 = arith.addf %148, %149 : vector<8x64xf32>
    %151 = vector.extract_strided_slice %150 {offsets = [0, 0], sizes = [8, 32], strides = [1, 1]} : vector<8x64xf32> to vector<8x32xf32>
    %152 = vector.extract_strided_slice %150 {offsets = [0, 32], sizes = [8, 32], strides = [1, 1]} : vector<8x64xf32> to vector<8x32xf32>
    %153 = vector.extract_strided_slice %139 {offsets = [0, 64], sizes = [8, 32], strides = [1, 1]} : vector<8x96xf32> to vector<8x32xf32>
    %154 = vector.extract_strided_slice %140 {offsets = [0, 64], sizes = [8, 32], strides = [1, 1]} : vector<8x96xf32> to vector<8x32xf32>
    %155 = vector.broadcast %7 : vector<1x32xf32> to vector<8x32xf32>
    %156 = arith.addf %154, %155 : vector<8x32xf32>
    %157 = arith.mulf %151, %156 : vector<8x32xf32>
    %158 = arith.addf %153, %157 : vector<8x32xf32>
    %159 = math.tanh %158 : vector<8x32xf32>
    %cst_39 = arith.constant 1.000000e+00 : f32
    %160 = vector.broadcast %cst_39 : f32 to vector<8x32xf32>
    %161 = arith.subf %160, %152 : vector<8x32xf32>
    %162 = arith.mulf %161, %159 : vector<8x32xf32>
    %163 = arith.mulf %152, %138 : vector<8x32xf32>
    %164 = arith.addf %162, %163 : vector<8x32xf32>
    %165 = vector.extract_strided_slice %5 {offsets = [48, 0], sizes = [8, 96], strides = [1, 1]} : vector<64x96xf32> to vector<8x96xf32>
    %cst_40 = arith.constant dense<0.000000e+00> : vector<8x96xf32>
    %166 = tpu.matmul %164, %6, %cst_40 {dimension_numbers = #tpu.dot_dimension_numbers<[1], [0], [0], [1], [0, 0, 1, 1], [], []>, precision = #tpu.contract_precision<fp32>} : vector<8x32xf32>, vector<32x96xf32>, vector<8x96xf32> -> vector<8x96xf32>
    %167 = vector.extract_strided_slice %165 {offsets = [0, 0], sizes = [8, 64], strides = [1, 1]} : vector<8x96xf32> to vector<8x64xf32>
    %168 = vector.extract_strided_slice %166 {offsets = [0, 0], sizes = [8, 64], strides = [1, 1]} : vector<8x96xf32> to vector<8x64xf32>
    %169 = arith.addf %167, %168 : vector<8x64xf32>
    %cst_41 = arith.constant 5.000000e-01 : f32
    %170 = vector.broadcast %cst_41 : f32 to vector<8x64xf32>
    %171 = arith.mulf %170, %169 : vector<8x64xf32>
    %172 = math.tanh %171 : vector<8x64xf32>
    %cst_42 = arith.constant 5.000000e-01 : f32
    %173 = vector.broadcast %cst_42 : f32 to vector<8x64xf32>
    %174 = arith.mulf %173, %172 : vector<8x64xf32>
    %cst_43 = arith.constant 5.000000e-01 : f32
    %175 = vector.broadcast %cst_43 : f32 to vector<8x64xf32>
    %176 = arith.addf %174, %175 : vector<8x64xf32>
    %177 = vector.extract_strided_slice %176 {offsets = [0, 0], sizes = [8, 32], strides = [1, 1]} : vector<8x64xf32> to vector<8x32xf32>
    %178 = vector.extract_strided_slice %176 {offsets = [0, 32], sizes = [8, 32], strides = [1, 1]} : vector<8x64xf32> to vector<8x32xf32>
    %179 = vector.extract_strided_slice %165 {offsets = [0, 64], sizes = [8, 32], strides = [1, 1]} : vector<8x96xf32> to vector<8x32xf32>
    %180 = vector.extract_strided_slice %166 {offsets = [0, 64], sizes = [8, 32], strides = [1, 1]} : vector<8x96xf32> to vector<8x32xf32>
    %181 = vector.broadcast %7 : vector<1x32xf32> to vector<8x32xf32>
    %182 = arith.addf %180, %181 : vector<8x32xf32>
    %183 = arith.mulf %177, %182 : vector<8x32xf32>
    %184 = arith.addf %179, %183 : vector<8x32xf32>
    %185 = math.tanh %184 : vector<8x32xf32>
    %cst_44 = arith.constant 1.000000e+00 : f32
    %186 = vector.broadcast %cst_44 : f32 to vector<8x32xf32>
    %187 = arith.subf %186, %178 : vector<8x32xf32>
    %188 = arith.mulf %187, %185 : vector<8x32xf32>
    %189 = arith.mulf %178, %164 : vector<8x32xf32>
    %190 = arith.addf %188, %189 : vector<8x32xf32>
    %191 = vector.extract_strided_slice %5 {offsets = [56, 0], sizes = [8, 96], strides = [1, 1]} : vector<64x96xf32> to vector<8x96xf32>
    %cst_45 = arith.constant dense<0.000000e+00> : vector<8x96xf32>
    %192 = tpu.matmul %190, %6, %cst_45 {dimension_numbers = #tpu.dot_dimension_numbers<[1], [0], [0], [1], [0, 0, 1, 1], [], []>, precision = #tpu.contract_precision<fp32>} : vector<8x32xf32>, vector<32x96xf32>, vector<8x96xf32> -> vector<8x96xf32>
    %193 = vector.extract_strided_slice %191 {offsets = [0, 0], sizes = [8, 64], strides = [1, 1]} : vector<8x96xf32> to vector<8x64xf32>
    %194 = vector.extract_strided_slice %192 {offsets = [0, 0], sizes = [8, 64], strides = [1, 1]} : vector<8x96xf32> to vector<8x64xf32>
    %195 = arith.addf %193, %194 : vector<8x64xf32>
    %cst_46 = arith.constant 5.000000e-01 : f32
    %196 = vector.broadcast %cst_46 : f32 to vector<8x64xf32>
    %197 = arith.mulf %196, %195 : vector<8x64xf32>
    %198 = math.tanh %197 : vector<8x64xf32>
    %cst_47 = arith.constant 5.000000e-01 : f32
    %199 = vector.broadcast %cst_47 : f32 to vector<8x64xf32>
    %200 = arith.mulf %199, %198 : vector<8x64xf32>
    %cst_48 = arith.constant 5.000000e-01 : f32
    %201 = vector.broadcast %cst_48 : f32 to vector<8x64xf32>
    %202 = arith.addf %200, %201 : vector<8x64xf32>
    %203 = vector.extract_strided_slice %202 {offsets = [0, 0], sizes = [8, 32], strides = [1, 1]} : vector<8x64xf32> to vector<8x32xf32>
    %204 = vector.extract_strided_slice %202 {offsets = [0, 32], sizes = [8, 32], strides = [1, 1]} : vector<8x64xf32> to vector<8x32xf32>
    %205 = vector.extract_strided_slice %191 {offsets = [0, 64], sizes = [8, 32], strides = [1, 1]} : vector<8x96xf32> to vector<8x32xf32>
    %206 = vector.extract_strided_slice %192 {offsets = [0, 64], sizes = [8, 32], strides = [1, 1]} : vector<8x96xf32> to vector<8x32xf32>
    %207 = vector.broadcast %7 : vector<1x32xf32> to vector<8x32xf32>
    %208 = arith.addf %206, %207 : vector<8x32xf32>
    %209 = arith.mulf %203, %208 : vector<8x32xf32>
    %210 = arith.addf %205, %209 : vector<8x32xf32>
    %211 = math.tanh %210 : vector<8x32xf32>
    %cst_49 = arith.constant 1.000000e+00 : f32
    %212 = vector.broadcast %cst_49 : f32 to vector<8x32xf32>
    %213 = arith.subf %212, %204 : vector<8x32xf32>
    %214 = arith.mulf %213, %211 : vector<8x32xf32>
    %215 = arith.mulf %204, %190 : vector<8x32xf32>
    %216 = arith.addf %214, %215 : vector<8x32xf32>
    %217 = tpu.concatenate %34, %60, %86, %112, %138, %164, %190, %216 in 0 : vector<8x32xf32>, vector<8x32xf32>, vector<8x32xf32>, vector<8x32xf32>, vector<8x32xf32>, vector<8x32xf32>, vector<8x32xf32>, vector<8x32xf32> -> vector<64x32xf32>
    %c0_50 = arith.constant 0 : index
    %c0_51 = arith.constant 0 : index
    %218 = vector.load %arg5[%c0_50, %c0_51] : memref<32x96xf32, #tpu.memory_space<vmem>>, vector<32x96xf32>
    %cst_52 = arith.constant dense<0.000000e+00> : vector<64x96xf32>
    %219 = tpu.matmul %217, %218, %cst_52 {dimension_numbers = #tpu.dot_dimension_numbers<[1], [0], [0], [1], [0, 0, 1, 1], [], []>, precision = #tpu.contract_precision<fp32>} : vector<64x32xf32>, vector<32x96xf32>, vector<64x96xf32> -> vector<64x96xf32>
    %c0_53 = arith.constant 0 : index
    %c0_54 = arith.constant 0 : index
    %220 = vector.load %arg7[%c0_53, %c0_54] : memref<1x96xf32, #tpu.memory_space<vmem>>, vector<1x96xf32>
    %221 = vector.broadcast %220 : vector<1x96xf32> to vector<64x96xf32>
    %222 = arith.addf %219, %221 : vector<64x96xf32>
    %c0_55 = arith.constant 0 : index
    %c0_56 = arith.constant 0 : index
    %223 = vector.load %arg6[%c0_55, %c0_56] : memref<32x96xf32, #tpu.memory_space<vmem>>, vector<32x96xf32>
    %c0_57 = arith.constant 0 : index
    %c0_58 = arith.constant 0 : index
    %224 = vector.load %arg8[%c0_57, %c0_58] : memref<1x32xf32, #tpu.memory_space<vmem>>, vector<1x32xf32>
    %cst_59 = arith.constant 0.000000e+00 : f32
    %225 = vector.broadcast %cst_59 : f32 to vector<8x32xf32>
    %226 = vector.extract_strided_slice %222 {offsets = [0, 0], sizes = [8, 96], strides = [1, 1]} : vector<64x96xf32> to vector<8x96xf32>
    %cst_60 = arith.constant 0.000000e+00 : f32
    %227 = vector.broadcast %cst_60 : f32 to vector<8x96xf32>
    %228 = vector.extract_strided_slice %226 {offsets = [0, 0], sizes = [8, 64], strides = [1, 1]} : vector<8x96xf32> to vector<8x64xf32>
    %229 = vector.extract_strided_slice %227 {offsets = [0, 0], sizes = [8, 64], strides = [1, 1]} : vector<8x96xf32> to vector<8x64xf32>
    %230 = arith.addf %228, %229 : vector<8x64xf32>
    %cst_61 = arith.constant 5.000000e-01 : f32
    %231 = vector.broadcast %cst_61 : f32 to vector<8x64xf32>
    %232 = arith.mulf %231, %230 : vector<8x64xf32>
    %233 = math.tanh %232 : vector<8x64xf32>
    %cst_62 = arith.constant 5.000000e-01 : f32
    %234 = vector.broadcast %cst_62 : f32 to vector<8x64xf32>
    %235 = arith.mulf %234, %233 : vector<8x64xf32>
    %cst_63 = arith.constant 5.000000e-01 : f32
    %236 = vector.broadcast %cst_63 : f32 to vector<8x64xf32>
    %237 = arith.addf %235, %236 : vector<8x64xf32>
    %238 = vector.extract_strided_slice %237 {offsets = [0, 0], sizes = [8, 32], strides = [1, 1]} : vector<8x64xf32> to vector<8x32xf32>
    %239 = vector.extract_strided_slice %237 {offsets = [0, 32], sizes = [8, 32], strides = [1, 1]} : vector<8x64xf32> to vector<8x32xf32>
    %240 = vector.extract_strided_slice %226 {offsets = [0, 64], sizes = [8, 32], strides = [1, 1]} : vector<8x96xf32> to vector<8x32xf32>
    %241 = vector.extract_strided_slice %227 {offsets = [0, 64], sizes = [8, 32], strides = [1, 1]} : vector<8x96xf32> to vector<8x32xf32>
    %242 = vector.broadcast %224 : vector<1x32xf32> to vector<8x32xf32>
    %243 = arith.addf %241, %242 : vector<8x32xf32>
    %244 = arith.mulf %238, %243 : vector<8x32xf32>
    %245 = arith.addf %240, %244 : vector<8x32xf32>
    %246 = math.tanh %245 : vector<8x32xf32>
    %cst_64 = arith.constant 1.000000e+00 : f32
    %247 = vector.broadcast %cst_64 : f32 to vector<8x32xf32>
    %248 = arith.subf %247, %239 : vector<8x32xf32>
    %249 = arith.mulf %248, %246 : vector<8x32xf32>
    %250 = arith.mulf %239, %225 : vector<8x32xf32>
    %251 = arith.addf %249, %250 : vector<8x32xf32>
    %252 = vector.extract_strided_slice %222 {offsets = [8, 0], sizes = [8, 96], strides = [1, 1]} : vector<64x96xf32> to vector<8x96xf32>
    %cst_65 = arith.constant dense<0.000000e+00> : vector<8x96xf32>
    %253 = tpu.matmul %251, %223, %cst_65 {dimension_numbers = #tpu.dot_dimension_numbers<[1], [0], [0], [1], [0, 0, 1, 1], [], []>, precision = #tpu.contract_precision<fp32>} : vector<8x32xf32>, vector<32x96xf32>, vector<8x96xf32> -> vector<8x96xf32>
    %254 = vector.extract_strided_slice %252 {offsets = [0, 0], sizes = [8, 64], strides = [1, 1]} : vector<8x96xf32> to vector<8x64xf32>
    %255 = vector.extract_strided_slice %253 {offsets = [0, 0], sizes = [8, 64], strides = [1, 1]} : vector<8x96xf32> to vector<8x64xf32>
    %256 = arith.addf %254, %255 : vector<8x64xf32>
    %cst_66 = arith.constant 5.000000e-01 : f32
    %257 = vector.broadcast %cst_66 : f32 to vector<8x64xf32>
    %258 = arith.mulf %257, %256 : vector<8x64xf32>
    %259 = math.tanh %258 : vector<8x64xf32>
    %cst_67 = arith.constant 5.000000e-01 : f32
    %260 = vector.broadcast %cst_67 : f32 to vector<8x64xf32>
    %261 = arith.mulf %260, %259 : vector<8x64xf32>
    %cst_68 = arith.constant 5.000000e-01 : f32
    %262 = vector.broadcast %cst_68 : f32 to vector<8x64xf32>
    %263 = arith.addf %261, %262 : vector<8x64xf32>
    %264 = vector.extract_strided_slice %263 {offsets = [0, 0], sizes = [8, 32], strides = [1, 1]} : vector<8x64xf32> to vector<8x32xf32>
    %265 = vector.extract_strided_slice %263 {offsets = [0, 32], sizes = [8, 32], strides = [1, 1]} : vector<8x64xf32> to vector<8x32xf32>
    %266 = vector.extract_strided_slice %252 {offsets = [0, 64], sizes = [8, 32], strides = [1, 1]} : vector<8x96xf32> to vector<8x32xf32>
    %267 = vector.extract_strided_slice %253 {offsets = [0, 64], sizes = [8, 32], strides = [1, 1]} : vector<8x96xf32> to vector<8x32xf32>
    %268 = vector.broadcast %224 : vector<1x32xf32> to vector<8x32xf32>
    %269 = arith.addf %267, %268 : vector<8x32xf32>
    %270 = arith.mulf %264, %269 : vector<8x32xf32>
    %271 = arith.addf %266, %270 : vector<8x32xf32>
    %272 = math.tanh %271 : vector<8x32xf32>
    %cst_69 = arith.constant 1.000000e+00 : f32
    %273 = vector.broadcast %cst_69 : f32 to vector<8x32xf32>
    %274 = arith.subf %273, %265 : vector<8x32xf32>
    %275 = arith.mulf %274, %272 : vector<8x32xf32>
    %276 = arith.mulf %265, %251 : vector<8x32xf32>
    %277 = arith.addf %275, %276 : vector<8x32xf32>
    %278 = vector.extract_strided_slice %222 {offsets = [16, 0], sizes = [8, 96], strides = [1, 1]} : vector<64x96xf32> to vector<8x96xf32>
    %cst_70 = arith.constant dense<0.000000e+00> : vector<8x96xf32>
    %279 = tpu.matmul %277, %223, %cst_70 {dimension_numbers = #tpu.dot_dimension_numbers<[1], [0], [0], [1], [0, 0, 1, 1], [], []>, precision = #tpu.contract_precision<fp32>} : vector<8x32xf32>, vector<32x96xf32>, vector<8x96xf32> -> vector<8x96xf32>
    %280 = vector.extract_strided_slice %278 {offsets = [0, 0], sizes = [8, 64], strides = [1, 1]} : vector<8x96xf32> to vector<8x64xf32>
    %281 = vector.extract_strided_slice %279 {offsets = [0, 0], sizes = [8, 64], strides = [1, 1]} : vector<8x96xf32> to vector<8x64xf32>
    %282 = arith.addf %280, %281 : vector<8x64xf32>
    %cst_71 = arith.constant 5.000000e-01 : f32
    %283 = vector.broadcast %cst_71 : f32 to vector<8x64xf32>
    %284 = arith.mulf %283, %282 : vector<8x64xf32>
    %285 = math.tanh %284 : vector<8x64xf32>
    %cst_72 = arith.constant 5.000000e-01 : f32
    %286 = vector.broadcast %cst_72 : f32 to vector<8x64xf32>
    %287 = arith.mulf %286, %285 : vector<8x64xf32>
    %cst_73 = arith.constant 5.000000e-01 : f32
    %288 = vector.broadcast %cst_73 : f32 to vector<8x64xf32>
    %289 = arith.addf %287, %288 : vector<8x64xf32>
    %290 = vector.extract_strided_slice %289 {offsets = [0, 0], sizes = [8, 32], strides = [1, 1]} : vector<8x64xf32> to vector<8x32xf32>
    %291 = vector.extract_strided_slice %289 {offsets = [0, 32], sizes = [8, 32], strides = [1, 1]} : vector<8x64xf32> to vector<8x32xf32>
    %292 = vector.extract_strided_slice %278 {offsets = [0, 64], sizes = [8, 32], strides = [1, 1]} : vector<8x96xf32> to vector<8x32xf32>
    %293 = vector.extract_strided_slice %279 {offsets = [0, 64], sizes = [8, 32], strides = [1, 1]} : vector<8x96xf32> to vector<8x32xf32>
    %294 = vector.broadcast %224 : vector<1x32xf32> to vector<8x32xf32>
    %295 = arith.addf %293, %294 : vector<8x32xf32>
    %296 = arith.mulf %290, %295 : vector<8x32xf32>
    %297 = arith.addf %292, %296 : vector<8x32xf32>
    %298 = math.tanh %297 : vector<8x32xf32>
    %cst_74 = arith.constant 1.000000e+00 : f32
    %299 = vector.broadcast %cst_74 : f32 to vector<8x32xf32>
    %300 = arith.subf %299, %291 : vector<8x32xf32>
    %301 = arith.mulf %300, %298 : vector<8x32xf32>
    %302 = arith.mulf %291, %277 : vector<8x32xf32>
    %303 = arith.addf %301, %302 : vector<8x32xf32>
    %304 = vector.extract_strided_slice %222 {offsets = [24, 0], sizes = [8, 96], strides = [1, 1]} : vector<64x96xf32> to vector<8x96xf32>
    %cst_75 = arith.constant dense<0.000000e+00> : vector<8x96xf32>
    %305 = tpu.matmul %303, %223, %cst_75 {dimension_numbers = #tpu.dot_dimension_numbers<[1], [0], [0], [1], [0, 0, 1, 1], [], []>, precision = #tpu.contract_precision<fp32>} : vector<8x32xf32>, vector<32x96xf32>, vector<8x96xf32> -> vector<8x96xf32>
    %306 = vector.extract_strided_slice %304 {offsets = [0, 0], sizes = [8, 64], strides = [1, 1]} : vector<8x96xf32> to vector<8x64xf32>
    %307 = vector.extract_strided_slice %305 {offsets = [0, 0], sizes = [8, 64], strides = [1, 1]} : vector<8x96xf32> to vector<8x64xf32>
    %308 = arith.addf %306, %307 : vector<8x64xf32>
    %cst_76 = arith.constant 5.000000e-01 : f32
    %309 = vector.broadcast %cst_76 : f32 to vector<8x64xf32>
    %310 = arith.mulf %309, %308 : vector<8x64xf32>
    %311 = math.tanh %310 : vector<8x64xf32>
    %cst_77 = arith.constant 5.000000e-01 : f32
    %312 = vector.broadcast %cst_77 : f32 to vector<8x64xf32>
    %313 = arith.mulf %312, %311 : vector<8x64xf32>
    %cst_78 = arith.constant 5.000000e-01 : f32
    %314 = vector.broadcast %cst_78 : f32 to vector<8x64xf32>
    %315 = arith.addf %313, %314 : vector<8x64xf32>
    %316 = vector.extract_strided_slice %315 {offsets = [0, 0], sizes = [8, 32], strides = [1, 1]} : vector<8x64xf32> to vector<8x32xf32>
    %317 = vector.extract_strided_slice %315 {offsets = [0, 32], sizes = [8, 32], strides = [1, 1]} : vector<8x64xf32> to vector<8x32xf32>
    %318 = vector.extract_strided_slice %304 {offsets = [0, 64], sizes = [8, 32], strides = [1, 1]} : vector<8x96xf32> to vector<8x32xf32>
    %319 = vector.extract_strided_slice %305 {offsets = [0, 64], sizes = [8, 32], strides = [1, 1]} : vector<8x96xf32> to vector<8x32xf32>
    %320 = vector.broadcast %224 : vector<1x32xf32> to vector<8x32xf32>
    %321 = arith.addf %319, %320 : vector<8x32xf32>
    %322 = arith.mulf %316, %321 : vector<8x32xf32>
    %323 = arith.addf %318, %322 : vector<8x32xf32>
    %324 = math.tanh %323 : vector<8x32xf32>
    %cst_79 = arith.constant 1.000000e+00 : f32
    %325 = vector.broadcast %cst_79 : f32 to vector<8x32xf32>
    %326 = arith.subf %325, %317 : vector<8x32xf32>
    %327 = arith.mulf %326, %324 : vector<8x32xf32>
    %328 = arith.mulf %317, %303 : vector<8x32xf32>
    %329 = arith.addf %327, %328 : vector<8x32xf32>
    %330 = vector.extract_strided_slice %222 {offsets = [32, 0], sizes = [8, 96], strides = [1, 1]} : vector<64x96xf32> to vector<8x96xf32>
    %cst_80 = arith.constant dense<0.000000e+00> : vector<8x96xf32>
    %331 = tpu.matmul %329, %223, %cst_80 {dimension_numbers = #tpu.dot_dimension_numbers<[1], [0], [0], [1], [0, 0, 1, 1], [], []>, precision = #tpu.contract_precision<fp32>} : vector<8x32xf32>, vector<32x96xf32>, vector<8x96xf32> -> vector<8x96xf32>
    %332 = vector.extract_strided_slice %330 {offsets = [0, 0], sizes = [8, 64], strides = [1, 1]} : vector<8x96xf32> to vector<8x64xf32>
    %333 = vector.extract_strided_slice %331 {offsets = [0, 0], sizes = [8, 64], strides = [1, 1]} : vector<8x96xf32> to vector<8x64xf32>
    %334 = arith.addf %332, %333 : vector<8x64xf32>
    %cst_81 = arith.constant 5.000000e-01 : f32
    %335 = vector.broadcast %cst_81 : f32 to vector<8x64xf32>
    %336 = arith.mulf %335, %334 : vector<8x64xf32>
    %337 = math.tanh %336 : vector<8x64xf32>
    %cst_82 = arith.constant 5.000000e-01 : f32
    %338 = vector.broadcast %cst_82 : f32 to vector<8x64xf32>
    %339 = arith.mulf %338, %337 : vector<8x64xf32>
    %cst_83 = arith.constant 5.000000e-01 : f32
    %340 = vector.broadcast %cst_83 : f32 to vector<8x64xf32>
    %341 = arith.addf %339, %340 : vector<8x64xf32>
    %342 = vector.extract_strided_slice %341 {offsets = [0, 0], sizes = [8, 32], strides = [1, 1]} : vector<8x64xf32> to vector<8x32xf32>
    %343 = vector.extract_strided_slice %341 {offsets = [0, 32], sizes = [8, 32], strides = [1, 1]} : vector<8x64xf32> to vector<8x32xf32>
    %344 = vector.extract_strided_slice %330 {offsets = [0, 64], sizes = [8, 32], strides = [1, 1]} : vector<8x96xf32> to vector<8x32xf32>
    %345 = vector.extract_strided_slice %331 {offsets = [0, 64], sizes = [8, 32], strides = [1, 1]} : vector<8x96xf32> to vector<8x32xf32>
    %346 = vector.broadcast %224 : vector<1x32xf32> to vector<8x32xf32>
    %347 = arith.addf %345, %346 : vector<8x32xf32>
    %348 = arith.mulf %342, %347 : vector<8x32xf32>
    %349 = arith.addf %344, %348 : vector<8x32xf32>
    %350 = math.tanh %349 : vector<8x32xf32>
    %cst_84 = arith.constant 1.000000e+00 : f32
    %351 = vector.broadcast %cst_84 : f32 to vector<8x32xf32>
    %352 = arith.subf %351, %343 : vector<8x32xf32>
    %353 = arith.mulf %352, %350 : vector<8x32xf32>
    %354 = arith.mulf %343, %329 : vector<8x32xf32>
    %355 = arith.addf %353, %354 : vector<8x32xf32>
    %356 = vector.extract_strided_slice %222 {offsets = [40, 0], sizes = [8, 96], strides = [1, 1]} : vector<64x96xf32> to vector<8x96xf32>
    %cst_85 = arith.constant dense<0.000000e+00> : vector<8x96xf32>
    %357 = tpu.matmul %355, %223, %cst_85 {dimension_numbers = #tpu.dot_dimension_numbers<[1], [0], [0], [1], [0, 0, 1, 1], [], []>, precision = #tpu.contract_precision<fp32>} : vector<8x32xf32>, vector<32x96xf32>, vector<8x96xf32> -> vector<8x96xf32>
    %358 = vector.extract_strided_slice %356 {offsets = [0, 0], sizes = [8, 64], strides = [1, 1]} : vector<8x96xf32> to vector<8x64xf32>
    %359 = vector.extract_strided_slice %357 {offsets = [0, 0], sizes = [8, 64], strides = [1, 1]} : vector<8x96xf32> to vector<8x64xf32>
    %360 = arith.addf %358, %359 : vector<8x64xf32>
    %cst_86 = arith.constant 5.000000e-01 : f32
    %361 = vector.broadcast %cst_86 : f32 to vector<8x64xf32>
    %362 = arith.mulf %361, %360 : vector<8x64xf32>
    %363 = math.tanh %362 : vector<8x64xf32>
    %cst_87 = arith.constant 5.000000e-01 : f32
    %364 = vector.broadcast %cst_87 : f32 to vector<8x64xf32>
    %365 = arith.mulf %364, %363 : vector<8x64xf32>
    %cst_88 = arith.constant 5.000000e-01 : f32
    %366 = vector.broadcast %cst_88 : f32 to vector<8x64xf32>
    %367 = arith.addf %365, %366 : vector<8x64xf32>
    %368 = vector.extract_strided_slice %367 {offsets = [0, 0], sizes = [8, 32], strides = [1, 1]} : vector<8x64xf32> to vector<8x32xf32>
    %369 = vector.extract_strided_slice %367 {offsets = [0, 32], sizes = [8, 32], strides = [1, 1]} : vector<8x64xf32> to vector<8x32xf32>
    %370 = vector.extract_strided_slice %356 {offsets = [0, 64], sizes = [8, 32], strides = [1, 1]} : vector<8x96xf32> to vector<8x32xf32>
    %371 = vector.extract_strided_slice %357 {offsets = [0, 64], sizes = [8, 32], strides = [1, 1]} : vector<8x96xf32> to vector<8x32xf32>
    %372 = vector.broadcast %224 : vector<1x32xf32> to vector<8x32xf32>
    %373 = arith.addf %371, %372 : vector<8x32xf32>
    %374 = arith.mulf %368, %373 : vector<8x32xf32>
    %375 = arith.addf %370, %374 : vector<8x32xf32>
    %376 = math.tanh %375 : vector<8x32xf32>
    %cst_89 = arith.constant 1.000000e+00 : f32
    %377 = vector.broadcast %cst_89 : f32 to vector<8x32xf32>
    %378 = arith.subf %377, %369 : vector<8x32xf32>
    %379 = arith.mulf %378, %376 : vector<8x32xf32>
    %380 = arith.mulf %369, %355 : vector<8x32xf32>
    %381 = arith.addf %379, %380 : vector<8x32xf32>
    %382 = vector.extract_strided_slice %222 {offsets = [48, 0], sizes = [8, 96], strides = [1, 1]} : vector<64x96xf32> to vector<8x96xf32>
    %cst_90 = arith.constant dense<0.000000e+00> : vector<8x96xf32>
    %383 = tpu.matmul %381, %223, %cst_90 {dimension_numbers = #tpu.dot_dimension_numbers<[1], [0], [0], [1], [0, 0, 1, 1], [], []>, precision = #tpu.contract_precision<fp32>} : vector<8x32xf32>, vector<32x96xf32>, vector<8x96xf32> -> vector<8x96xf32>
    %384 = vector.extract_strided_slice %382 {offsets = [0, 0], sizes = [8, 64], strides = [1, 1]} : vector<8x96xf32> to vector<8x64xf32>
    %385 = vector.extract_strided_slice %383 {offsets = [0, 0], sizes = [8, 64], strides = [1, 1]} : vector<8x96xf32> to vector<8x64xf32>
    %386 = arith.addf %384, %385 : vector<8x64xf32>
    %cst_91 = arith.constant 5.000000e-01 : f32
    %387 = vector.broadcast %cst_91 : f32 to vector<8x64xf32>
    %388 = arith.mulf %387, %386 : vector<8x64xf32>
    %389 = math.tanh %388 : vector<8x64xf32>
    %cst_92 = arith.constant 5.000000e-01 : f32
    %390 = vector.broadcast %cst_92 : f32 to vector<8x64xf32>
    %391 = arith.mulf %390, %389 : vector<8x64xf32>
    %cst_93 = arith.constant 5.000000e-01 : f32
    %392 = vector.broadcast %cst_93 : f32 to vector<8x64xf32>
    %393 = arith.addf %391, %392 : vector<8x64xf32>
    %394 = vector.extract_strided_slice %393 {offsets = [0, 0], sizes = [8, 32], strides = [1, 1]} : vector<8x64xf32> to vector<8x32xf32>
    %395 = vector.extract_strided_slice %393 {offsets = [0, 32], sizes = [8, 32], strides = [1, 1]} : vector<8x64xf32> to vector<8x32xf32>
    %396 = vector.extract_strided_slice %382 {offsets = [0, 64], sizes = [8, 32], strides = [1, 1]} : vector<8x96xf32> to vector<8x32xf32>
    %397 = vector.extract_strided_slice %383 {offsets = [0, 64], sizes = [8, 32], strides = [1, 1]} : vector<8x96xf32> to vector<8x32xf32>
    %398 = vector.broadcast %224 : vector<1x32xf32> to vector<8x32xf32>
    %399 = arith.addf %397, %398 : vector<8x32xf32>
    %400 = arith.mulf %394, %399 : vector<8x32xf32>
    %401 = arith.addf %396, %400 : vector<8x32xf32>
    %402 = math.tanh %401 : vector<8x32xf32>
    %cst_94 = arith.constant 1.000000e+00 : f32
    %403 = vector.broadcast %cst_94 : f32 to vector<8x32xf32>
    %404 = arith.subf %403, %395 : vector<8x32xf32>
    %405 = arith.mulf %404, %402 : vector<8x32xf32>
    %406 = arith.mulf %395, %381 : vector<8x32xf32>
    %407 = arith.addf %405, %406 : vector<8x32xf32>
    %408 = vector.extract_strided_slice %222 {offsets = [56, 0], sizes = [8, 96], strides = [1, 1]} : vector<64x96xf32> to vector<8x96xf32>
    %cst_95 = arith.constant dense<0.000000e+00> : vector<8x96xf32>
    %409 = tpu.matmul %407, %223, %cst_95 {dimension_numbers = #tpu.dot_dimension_numbers<[1], [0], [0], [1], [0, 0, 1, 1], [], []>, precision = #tpu.contract_precision<fp32>} : vector<8x32xf32>, vector<32x96xf32>, vector<8x96xf32> -> vector<8x96xf32>
    %410 = vector.extract_strided_slice %408 {offsets = [0, 0], sizes = [8, 64], strides = [1, 1]} : vector<8x96xf32> to vector<8x64xf32>
    %411 = vector.extract_strided_slice %409 {offsets = [0, 0], sizes = [8, 64], strides = [1, 1]} : vector<8x96xf32> to vector<8x64xf32>
    %412 = arith.addf %410, %411 : vector<8x64xf32>
    %cst_96 = arith.constant 5.000000e-01 : f32
    %413 = vector.broadcast %cst_96 : f32 to vector<8x64xf32>
    %414 = arith.mulf %413, %412 : vector<8x64xf32>
    %415 = math.tanh %414 : vector<8x64xf32>
    %cst_97 = arith.constant 5.000000e-01 : f32
    %416 = vector.broadcast %cst_97 : f32 to vector<8x64xf32>
    %417 = arith.mulf %416, %415 : vector<8x64xf32>
    %cst_98 = arith.constant 5.000000e-01 : f32
    %418 = vector.broadcast %cst_98 : f32 to vector<8x64xf32>
    %419 = arith.addf %417, %418 : vector<8x64xf32>
    %420 = vector.extract_strided_slice %419 {offsets = [0, 0], sizes = [8, 32], strides = [1, 1]} : vector<8x64xf32> to vector<8x32xf32>
    %421 = vector.extract_strided_slice %419 {offsets = [0, 32], sizes = [8, 32], strides = [1, 1]} : vector<8x64xf32> to vector<8x32xf32>
    %422 = vector.extract_strided_slice %408 {offsets = [0, 64], sizes = [8, 32], strides = [1, 1]} : vector<8x96xf32> to vector<8x32xf32>
    %423 = vector.extract_strided_slice %409 {offsets = [0, 64], sizes = [8, 32], strides = [1, 1]} : vector<8x96xf32> to vector<8x32xf32>
    %424 = vector.broadcast %224 : vector<1x32xf32> to vector<8x32xf32>
    %425 = arith.addf %423, %424 : vector<8x32xf32>
    %426 = arith.mulf %420, %425 : vector<8x32xf32>
    %427 = arith.addf %422, %426 : vector<8x32xf32>
    %428 = math.tanh %427 : vector<8x32xf32>
    %cst_99 = arith.constant 1.000000e+00 : f32
    %429 = vector.broadcast %cst_99 : f32 to vector<8x32xf32>
    %430 = arith.subf %429, %421 : vector<8x32xf32>
    %431 = arith.mulf %430, %428 : vector<8x32xf32>
    %432 = arith.mulf %421, %407 : vector<8x32xf32>
    %433 = arith.addf %431, %432 : vector<8x32xf32>
    %c0_100 = arith.constant 0 : index
    %c0_101 = arith.constant 0 : index
    %434 = vector.load %arg9[%c0_100, %c0_101] : memref<32x3xf32, #tpu.memory_space<vmem>>, vector<32x3xf32>
    %cst_102 = arith.constant dense<0.000000e+00> : vector<8x3xf32>
    %435 = tpu.matmul %433, %434, %cst_102 {dimension_numbers = #tpu.dot_dimension_numbers<[1], [0], [0], [1], [0, 0, 1, 1], [], []>, precision = #tpu.contract_precision<fp32>} : vector<8x32xf32>, vector<32x3xf32>, vector<8x3xf32> -> vector<8x3xf32>
    %c0_103 = arith.constant 0 : index
    %c0_104 = arith.constant 0 : index
    %436 = vector.load %arg10[%c0_103, %c0_104] : memref<1x3xf32, #tpu.memory_space<vmem>>, vector<1x3xf32>
    %437 = vector.broadcast %436 : vector<1x3xf32> to vector<8x3xf32>
    %438 = arith.addf %435, %437 : vector<8x3xf32>
    %439 = vector.extract_strided_slice %438 {offsets = [0, 0], sizes = [2, 3], strides = [1, 1]} : vector<8x3xf32> to vector<2x3xf32>
    %c0_105 = arith.constant 0 : index
    %c0_106 = arith.constant 0 : index
    %440 = vector.load %arg11[%c0_105, %c0_106] : memref<2x3xf32, #tpu.memory_space<vmem>>, vector<2x3xf32>
    tpu.vector_store %arg11[%c0_105, %c0_106], %439 {strides = array<i32>} : memref<2x3xf32, #tpu.memory_space<vmem>>, vector<2x3xf32>,
    return
  }
}

</mosaic_0001>

<bundles_post_ra>
// kernel: custom_gru_forward.1
= control target key start
LH: loop header
LB: loop body
LE: loop exit
PB: predicated region body
PF: predicated region fallthrough
CT: control target
= control target key end

     0   :  { %vm80_vm0 = vcmask 1043456   ;;  %vm55_vm1 = vcmask 31744   ;;  %s13110_s0 = inlined_call_operand.vmem [shape: f32[64,4], index: 0, kind: input, shape index: {}]   ;;  %s13111_s1 = inlined_call_operand.vmem [shape: f32[4,96], index: 1, kind: input, shape index: {}]   ;;  %s13112_s2 = inlined_call_operand.vmem [shape: f32[32,96], index: 2, kind: input, shape index: {}]   ;;  %s13113_s3 = inlined_call_operand.vmem [shape: f32[1,96], index: 3, kind: input, shape index: {}]   ;;  %s13114_s4 = inlined_call_operand.vmem [shape: f32[1,32], index: 4, kind: input, shape index: {}]   ;;  %s13115_s5 = inlined_call_operand.vmem [shape: f32[32,96], index: 5, kind: input, shape index: {}]   ;;  %s13116_s6 = inlined_call_operand.vmem [shape: f32[32,96], index: 6, kind: input, shape index: {}]   ;;  %s13117_s7 = inlined_call_operand.vmem [shape: f32[1,96], index: 7, kind: input, shape index: {}]   ;;  %s13118_s8 = inlined_call_operand.vmem [shape: f32[1,32], index: 8, kind: input, shape index: {}]   ;;  %s13119_s9 = inlined_call_operand.vmem [shape: f32[32,3], index: 9, kind: input, shape index: {}]   ;;  %s13120_s10 = inlined_call_operand.vmem [shape: f32[1,3], index: 10, kind: input, shape index: {}]   ;;  %s13121_s11 = inlined_call_operand.hbm [shape: f32[2,3], index: 11, kind: output, shape index: {}]  }
   0x1   :  { %v47_v0 = vld [vmem:[%s13111_s1] sm:$0xf]  ;;  %v40_v2 = vld [vmem:[%s13110_s0 + $0x8] sm:$0xff]  ;;  %v41_v6 = vld [vmem:[%s13110_s0 + $0x10] sm:$0xff] }
   0x2   :  { %v39_v1 = vld [vmem:[%s13110_s0] sm:$0xff]  ;;  %v82_v3 = vsel %vm80_vm0, %v47_v0, 0  ;;  %v60_v5 = vsel %vm55_vm1, %v40_v2, 0  ;;  %v42_v7 = vld [vmem:[%s13110_s0 + $0x18] sm:$0xff]  ;;  %v63_v12 = vsel %vm55_vm1, %v41_v6, 0  ;;  %v44_v13 = vld [vmem:[%s13110_s0 + $0x28] sm:$0xff] }
   0x3   :  { %v57_v4 = vsel %vm55_vm1, %v39_v1, 0  ;;  %v43_v8 = vld [vmem:[%s13110_s0 + $0x20] sm:$0xff]  ;;  %v11383_v9 = vand.u32 4294901760, %v82_v3  ;;  %v11387_v11 = vand.u32 4294901760, %v60_v5  ;;  %v45_v14 = vld [vmem:[%s13110_s0 + $0x30] sm:$0xff]  ;;  %v11396_v15 = vand.u32 4294901760, %v63_v12 }
   0x4   :  { %v11385_v10 = vand.u32 4294901760, %v57_v4  ;;  %v66_v16 = vsel %vm55_vm1, %v42_v7, 0  ;;  %v69_v17 = vsel %vm55_vm1, %v43_v8, 0  ;;  %v72_v18 = vsel %vm55_vm1, %v44_v13, 0 }
   0x5   :  { %10012 = vmatprep.subr.mxu0 %v11383_v9  ;;  %v262_v20 = vsub.f32 %v82_v3, %v11383_v9  ;;  %v11407_v21 = vsub.f32 %v60_v5, %v11387_v11  ;;  %v11410_v22 = vand.u32 4294901760, %v66_v16 }
   0x6   :  { %v11403_v19 = vsub.f32 %v57_v4, %v11385_v10  ;;  %10028 = vmatprep.mubr.f32.mxu1 %v11385_v10 }
   0x7   :  { %16 = vsyncpa [#allocation3], 0  ;;  %10013 = vmatpush3.msra.mxu0 %v11383_v9  ;;  %v11414_v23 = vsub.f32 %v63_v12, %v11396_v15  ;;  %v11416_v24 = vand.u32 4294901760, %v69_v17  ;;  %v11418_v25 = vand.u32 4294901760, %v72_v18  ;;  %v75_v26 = vsel %vm55_vm1, %v45_v14, 0  ;;  %v46_v43 = vld [vmem:[%s13110_s0 + $0x38] sm:$0xff] }
   0x8   :  { %v152_v27 = vand.u32 4294901760, %v11403_v19  ;;  %v263_v28 = vand.u32 4294901760, %v262_v20  ;;  %10040 = vmatprep.subr.mxu0 %v262_v20  ;;  %v162_v29 = vand.u32 4294901760, %v11407_v21  ;;  %v11424_v30 = vsub.f32 %v66_v16, %v11410_v22  ;;  %v11482_v63 = vld [vmem:[%s13113_s3] ss:$0 sm:$0xff]  ;;  %s11298_s18 = smov 64  }
   0x9   :  { %v172_v31 = vand.u32 4294901760, %v11414_v23  ;;  %v11428_v32 = vsub.f32 %v69_v17, %v11416_v24  ;;  %v11431_v33 = vsub.f32 %v72_v18, %v11418_v25  ;;  %v11433_v34 = vand.u32 4294901760, %v75_v26  ;;  %s11302_s27 = smov [#allocation2]  }
   0xa   :  { %v153_v35 = vsub.f32 %v11403_v19, %v152_v27  ;;  %v264_v36 = vsub.f32 %v262_v20, %v263_v28  ;;  %v163_v37 = vsub.f32 %v11407_v21, %v162_v29  ;;  %v182_v38 = vand.u32 4294901760, %v11424_v30  ;;  %s9423_s28 = sshll.u32 %s11302_s27, 4  ;;  %s9424_s28 = int_to_ptr.vmem [resolvable:$true] %s9423_s28 }
   0xb   :  { %v173_v39 = vsub.f32 %v11414_v23, %v172_v31  ;;  %v192_v40 = vand.u32 4294901760, %v11428_v32  ;;  %v202_v41 = vand.u32 4294901760, %v11431_v33  ;;  %v211_v42 = vsub.f32 %v75_v26, %v11433_v34  ;;  %s11276_s29 = scalar_lea.vmem %s9424_s28, 32  ;;  %p11281_p1 = scmp.lt.s32.totalorder %s9424_s28, %s9424_s28 }
   0xc   :  { %v154_v44 = vand.u32 4294901760, %v153_v35  ;;  %v265_v45 = vand.u32 4294901760, %v264_v36  ;;  %v164_v46 = vand.u32 4294901760, %v163_v37  ;;  %v183_v47 = vsub.f32 %v11424_v30, %v182_v38  ;;  %p11277_p0 = scmp.ne.s32.totalorder %s9424_s28, %s11276_s29  ;;  %p11282_p2 = scmp.lt.s32.totalorder %s11276_s29, %s11276_s29 }
   0xd   :  { %v174_v48 = vand.u32 4294901760, %v173_v39  ;;  %v193_v49 = vsub.f32 %v11428_v32, %v192_v40  ;;  %v212_v50 = vand.u32 4294901760, %v211_v42  ;;  %v78_v51 = vsel %vm55_vm1, %v46_v43, 0 }
   0xe   :  { %10014 = vmatprep.mubr.f32.mxu0 %v154_v44  ;;  %10026 = vmatprep.subr.mxu1 %v265_v45  ;;  %v184_v52 = vand.u32 4294901760, %v183_v47  ;;  %v203_v53 = vsub.f32 %v11431_v33, %v202_v41  ;;  %v220_v54 = vand.u32 4294901760, %v78_v51  ;;  %vm11301_vm2 = vmmov 0   ;;  %p11283_p3 = por %p11282_p2, %p11281_p1 }
   0xf   :  { %10015 = vmatmul.mubr.f32.vlgmr.msra.gmra.mxu0 %v164_v46  ;;  %10027 = vmatpush3.msra.mxu1 %v265_v45  ;;  %v194_v55 = vand.u32 4294901760, %v193_v49  ;;  %v213_v56 = vsub.f32 %v211_v42, %v212_v50  ;;  %vm866_vm3 = vcmask 261120   ;;  %vm9415_vm4 = vcmask 17408  }
  0x10   :  { %10041 = vmatpush3.msra.mxu0 %v262_v20  ;;  %10029 = vmatmul.mubr.f32.vlgmr.msra.gmra.mxu1 %v11387_v11  ;;  %v221_v57 = vsub.f32 %v78_v51, %v220_v54  ;;  %v204_v58 = vand.u32 4294901760, %v203_v53  ;;  %p11284_p4 = pnand %p11283_p3, %p11277_p0 }
  0x11   :  { %10054 = vmatprep.subr.mxu1 %v11383_v9  ;;  %10017 = vmatprep.mubr.f32.mxu0 %v174_v48  ;;  %v214_v60 = vand.u32 4294901760, %v213_v56 }
  0x12   :  { %10055 = vmatpush3.msra.mxu1 %v11383_v9  ;;  %10031 = vmatprep.mubr.f32.mxu1 %v11396_v15  ;;  %v222_v59 = vand.u32 4294901760, %v221_v57 }
  0x13   :  { %10018 = vmatmul.mubr.f32.gmra.mxu0 %v184_v52  ;;  %10068 = vmatprep.subr.mxu0 %v263_v28 }
  0x14   :  { %10032 = vmatmul.mubr.f32.gmra.mxu1 %v11410_v22  ;;  %10020 = vmatprep.mubr.f32.mxu0 %v194_v55  ;;  %v223_v61 = vsub.f32 %v221_v57, %v222_v59 }
  0x15   :  { %10034 = vmatprep.mubr.f32.mxu1 %v11416_v24  ;;  %10082 = vmatprep.subr.mxu1 %v11383_v9 }
  0x16   :  { %v224_v62 = vand.u32 4294901760, %v223_v61 }
  0x17   :  { %10021 = vmatmul.mubr.f32.gmra.mxu0 %v204_v58 }
  0x18   :  { %10035 = vmatmul.mubr.f32.gmra.mxu1 %v11418_v25  ;;  %10023 = vmatprep.mubr.f32.mxu0 %v214_v60 }
  0x19   :  { %10037 = vmatprep.mubr.f32.mxu1 %v11433_v34 }
  0x1b   :  { %10024 = vmatmul.mubr.f32.gmra.mxu0 %v224_v62 }
  0x1c   :  { %10038 = vmatmul.mubr.f32.gmra.mxu1 %v220_v54  ;;  %10042 = vmatprep.mubr.f32.mxu0 %v11403_v19 }
  0x1d   :  { %10056 = vmatprep.mubr.f32.mxu1 %v152_v27 }
  0x1f   :  { %10043 = vmatmul.mubr.f32.vlgmr.msra.gmra.mxu0 %v11407_v21 }
  0x20   :  { %10069 = vmatpush3.msra.mxu0 %v263_v28  ;;  %10057 = vmatmul.mubr.f32.vlgmr.msra.gmra.mxu1 %v162_v29 }
  0x21   :  { %10083 = vmatpush3.msra.mxu1 %v11383_v9  ;;  %10045 = vmatprep.mubr.f32.mxu0 %v11414_v23 }
  0x22   :  { %10059 = vmatprep.mubr.f32.mxu1 %v172_v31 }
  0x23   :  { %10046 = vmatmul.mubr.f32.gmra.mxu0 %v11424_v30 }
  0x24   :  { %10060 = vmatmul.mubr.f32.gmra.mxu1 %v182_v38  ;;  %10048 = vmatprep.mubr.f32.mxu0 %v11428_v32 }
  0x25   :  { %10062 = vmatprep.mubr.f32.mxu1 %v192_v40 }
  0x27   :  { %10049 = vmatmul.mubr.f32.gmra.mxu0 %v11431_v33 }
  0x28   :  { %10063 = vmatmul.mubr.f32.gmra.mxu1 %v202_v41  ;;  %10051 = vmatprep.mubr.f32.mxu0 %v211_v42 }
  0x29   :  { %10065 = vmatprep.mubr.f32.mxu1 %v212_v50 }
  0x2b   :  { %10052 = vmatmul.mubr.f32.gmra.mxu0 %v221_v57 }
  0x2c   :  { %10066 = vmatmul.mubr.f32.gmra.mxu1 %v222_v59  ;;  %10070 = vmatprep.mubr.f32.mxu0 %v11385_v10 }
  0x2d   :  { %10084 = vmatprep.mubr.f32.mxu1 %v11385_v10 }
  0x2f   :  { %10071 = vmatmul.mubr.f32.vlgmr.msra.gmra.mxu0 %v11387_v11 }
  0x30   :  { %10085 = vmatmul.mubr.f32.vlgmr.msra.gmra.mxu1 %v11387_v11  ;;  %10073 = vmatprep.mubr.f32.mxu0 %v11396_v15 }
  0x31   :  { %10087 = vmatprep.mubr.f32.mxu1 %v11396_v15 }
  0x33   :  { %10074 = vmatmul.mubr.f32.gmra.mxu0 %v11410_v22 }
  0x34   :  { %10088 = vmatmul.mubr.f32.gmra.mxu1 %v11410_v22  ;;  %10076 = vmatprep.mubr.f32.mxu0 %v11416_v24 }
  0x35   :  { %10090 = vmatprep.mubr.f32.mxu1 %v11416_v24 }
  0x37   :  { %10077 = vmatmul.mubr.f32.gmra.mxu0 %v11418_v25 }
  0x38   :  { %10091 = vmatmul.mubr.f32.gmra.mxu1 %v11418_v25  ;;  %10079 = vmatprep.mubr.f32.mxu0 %v11433_v34 }
  0x39   :  { %10093 = vmatprep.mubr.f32.mxu1 %v11433_v34 }
  0x3b   :  { %10080 = vmatmul.mubr.f32.gmra.mxu0 %v220_v54 }
  0x3c   :  { %10094 = vmatmul.mubr.f32.gmra.mxu1 %v220_v54 }
  0xcf   :  { %v10016_v0 = vpop.f32.mrf.mxu0 }
  0xd0   :  { %v167_v1 = vadd.f32 %v10016_v0, %v11482_v63  ;;  %v10030_v2 = vpop.f32.mrf.mxu1 }
  0xd1   :  { %v156_v3 = vpop.f32.mrf.mxu0 }
  0xd2   :  { %v309_v4 = vadd.f32 %v10030_v2, %v167_v1  ;;  %v302_v5 = vpop.f32.mrf.mxu1  ;;  %v157_v34 = vadd.f32 %v11482_v63, %v156_v3 }
  0xd3   :  { %v10019_v6 = vpop.f32.mrf.mxu0 }
  0xd4   :  { %v187_v7 = vadd.f32 %v10019_v6, %v11482_v63  ;;  %v10033_v8 = vpop.f32.mrf.mxu1  ;;  %v303_v41 = vadd.f32 %v302_v5, %v157_v34 }
  0xd5   :  { %v11486_v9 = vpop.f32.mrf.mxu0 }
  0xd6   :  { %v321_v10 = vadd.f32 %v10033_v8, %v187_v7  ;;  %v11488_v11 = vpop.f32.mrf.mxu1 }
  0xd7   :  { %v10022_v12 = vpop.f32.mrf.mxu0 }
  0xd8   :  { %v207_v13 = vadd.f32 %v10022_v12, %v11482_v63  ;;  %v10036_v14 = vpop.f32.mrf.mxu1 }
  0xd9   :  { %v11491_v15 = vpop.f32.mrf.mxu0 }
  0xda   :  { %v333_v16 = vadd.f32 %v10036_v14, %v207_v13  ;;  %v11493_v17 = vpop.f32.mrf.mxu1 }
  0xdb   :  { %v10025_v18 = vpop.f32.mrf.mxu0 }
  0xdc   :  { %v227_v19 = vadd.f32 %v10025_v18, %v11482_v63  ;;  %v10039_v20 = vpop.f32.mrf.mxu1 }
  0xdd   :  { %v11496_v21 = vpop.f32.mrf.mxu0 }
  0xde   :  { %v345_v22 = vadd.f32 %v10039_v20, %v227_v19  ;;  %v11498_v23 = vpop.f32.mrf.mxu1  ;;  %v9432_v20 = vld [vmem:[%s13114_s4] ss:$0 sm:$0xff]  ;;  %s11300_s4 = smov 96  }
  0xdf   :  { %v10044_v24 = vpop.f32.mrf.mxu0 }
  0xe0   :  { %v426_v25 = vadd.f32 %v10044_v24, %v309_v4  ;;  %v10058_v26 = vpop.f32.mrf.mxu1 }
  0xe1   :  { %v418_v27 = vpop.f32.mrf.mxu0 }
  0xe2   :  { %v550_v28 = vadd.f32 %v10058_v26, %v426_v25  ;;  %v541_v29 = vpop.f32.mrf.mxu1  ;;  %v419_v45 = vadd.f32 %v418_v27, %v303_v41  ;;  %v834_v27 = vld [vmem:[%s13112_s2 + $0x18] sm:$0xff] }
  0xe3   :  { %v10047_v30 = vpop.f32.mrf.mxu0 }
  0xe4   :  { %v440_v31 = vadd.f32 %v10047_v30, %v321_v10  ;;  %v10061_v32 = vpop.f32.mrf.mxu1  ;;  %v542_v52 = vadd.f32 %v541_v29, %v419_v45  ;;  %v832_v29 = vld [vmem:[%s13112_s2 + $0x8] sm:$0xff]  ;;  %v13125_v30 = vmov 0.0  }
  0xe5   :  { %v11500_v33 = vpop.f32.mrf.mxu0  ;;  %10096 = vmatprep.subr.mxu0 %v13125_v30  ;;  %10107 = vmatprep.subr.mxu1 %v13125_v30  ;;  %v11548_v34 = vand.u32 4294901760, %v832_v29 }
  0xe6   :  { %v566_v35 = vadd.f32 %v10061_v32, %v440_v31  ;;  %v11503_v36 = vpop.f32.mrf.mxu1  ;;  %v11544_v31 = vand.u32 4294901760, %v834_v27  ;;  %10115 = vmatprep.mubr.msk.f32.mxu1 %vm11301_vm2, %v13125_v30  ;;  %10104 = vmatprep.mubr.msk.f32.mxu0 %vm11301_vm2, %v13125_v30 }
  0xe7   :  { %v10050_v37 = vpop.f32.mrf.mxu0 }
  0xe8   :  { %v454_v38 = vadd.f32 %v10050_v37, %v333_v16  ;;  %v10064_v39 = vpop.f32.mrf.mxu1  ;;  %10097 = vmatpush3.msra.mxu0 %v11544_v31 }
  0xe9   :  { %v11505_v40 = vpop.f32.mrf.mxu0  ;;  %10098 = vmatprep.subr.mxu0 %v13125_v30 }
  0xea   :  { %v582_v42 = vadd.f32 %v10064_v39, %v454_v38  ;;  %v11507_v43 = vpop.f32.mrf.mxu1  ;;  %v11558_v38 = vsub.f32 %v832_v29, %v11548_v34 }
  0xeb   :  { %v10053_v44 = vpop.f32.mrf.mxu0 }
  0xec   :  { %v468_v46 = vadd.f32 %v10053_v44, %v345_v22  ;;  %v10067_v47 = vpop.f32.mrf.mxu1 }
  0xed   :  { %v11509_v48 = vpop.f32.mrf.mxu0 }
  0xee   :  { %v598_v49 = vadd.f32 %v10067_v47, %v468_v46  ;;  %v11511_v50 = vpop.f32.mrf.mxu1 }
  0xef   :  { %v10072_v51 = vpop.f32.mrf.mxu0 }
  0xf0   :  { %v678_v53 = vadd.f32 %v10072_v51, %v550_v28  ;;  %v10086_v54 = vpop.f32.mrf.mxu1  ;;  %v833_v28 = vld [vmem:[%s13112_s2 + $0x10] sm:$0xff] }
  0xf1   :  { %v671_v55 = vpop.f32.mrf.mxu0  ;;  %v11546_v32 = vand.u32 4294901760, %v833_v28 }
  0xf2   :  { %v11513_v56 = vadd.f32 %v10086_v54, %v678_v53  ;;  %v672_v57 = vadd.f32 %v671_v55, %v542_v52  ;;  %v785_v58 = vpop.f32.mrf.mxu1  ;;  %v831_v53 = vld [vmem:[%s13112_s2] sm:$0xff] }
  0xf3   :  { %v10075_v59 = vpop.f32.mrf.mxu0  ;;  %v11555_v37 = vsub.f32 %v833_v28, %v11546_v32  ;;  %10099 = vmatpush3.msra.mxu0 %v11546_v32  ;;  %v11596_v54 = vand.u32 4294901760, %v831_v53 }
  0xf4   :  { %v786_v60 = vadd.f32 %v785_v58, %v672_v57  ;;  %v690_v61 = vadd.f32 %v10075_v59, %v566_v35  ;;  %v10089_v62 = vpop.f32.mrf.mxu1  ;;  %v11552_v35 = vsub.f32 %v834_v27, %v11544_v31  ;;  %10100 = vmatprep.subr.mxu0 %v13125_v30 }
  0xf5   :  { %v11515_v0 = vpop.f32.mrf.mxu0  ;;  %v11565_v41 = vand.u32 4294901760, %v11555_v37  ;;  %10101 = vmatpush3.msra.mxu0 %v11548_v34  ;;  %v11599_v55 = vsub.f32 %v831_v53, %v11596_v54 }
  0xf6   :  { %v837_v1 = vmul.f32 0.5, %v786_v60  ;;  %v11517_v2 = vadd.f32 %v10089_v62, %v690_v61  ;;  %v11519_v3 = vpop.f32.mrf.mxu1  ;;  %v11562_v39 = vand.u32 4294901760, %v11552_v35  ;;  %10102 = vmatprep.subr.mxu0 %v13125_v30 }
  0xf7   :  { %v10078_v4 = vpop.f32.mrf.mxu0  ;;  %v983_v45 = vsub.f32 %v11555_v37, %v11565_v41  ;;  %10103 = vmatpush3.msra.mxu0 %v11596_v54  ;;  %v11604_v57 = vand.u32 4294901760, %v11599_v55 }
  0xf8   :  { %11211 = vtanh.f32 %v837_v1  ;;  %v702_v5 = vadd.f32 %v10078_v4, %v582_v42  ;;  %v10092_v6 = vpop.f32.mrf.mxu1  ;;  %v11569_v42 = vand.u32 4294901760, %v11558_v38  ;;  %v976_v44 = vsub.f32 %v11552_v35, %v11562_v39  ;;  %10118 = vmatprep.subr.mxu0 %v13125_v30 }
  0xf9   :  { %v11521_v7 = vpop.f32.mrf.mxu0  ;;  %v11583_v51 = vand.u32 4294901760, %v983_v45  ;;  %v997_v58 = vsub.f32 %v11599_v55, %v11604_v57 }
  0xfa   :  { %v11523_v8 = vadd.f32 %v10092_v6, %v702_v5  ;;  %v11525_v10 = vpop.f32.mrf.mxu1  ;;  %v990_v46 = vsub.f32 %v11558_v38, %v11569_v42 }
  0xfb   :  { %v10081_v12 = vpop.f32.mrf.mxu0  ;;  %v11608_v59 = vand.u32 4294901760, %v997_v58 }
  0xfc   :  { %v714_v13 = vadd.f32 %v10081_v12, %v598_v49  ;;  %v10095_v14 = vpop.f32.mrf.mxu1  ;;  %v11581_v49 = vand.u32 4294901760, %v976_v44  ;;  %v11586_v52 = vand.u32 4294901760, %v990_v46 }
  0xfe   :  { %v11527_v16 = vadd.f32 %v10095_v14, %v714_v13  ;;  %10108 = vmatpush3.msra.mxu1 %v11581_v49 }
  0xff   :  { %10109 = vmatprep.subr.mxu1 %v13125_v30 }
 0x100   :  { %10110 = vmatpush3.msra.mxu1 %v11583_v51 }
 0x101   :  { %10111 = vmatprep.subr.mxu1 %v13125_v30 }
 0x102   :  { %10112 = vmatpush3.msra.mxu1 %v11586_v52 }
 0x103   :  { %10113 = vmatprep.subr.mxu1 %v13125_v30 }
 0x104   :  { %10114 = vmatpush3.msra.mxu1 %v11608_v59 }
 0x105   :  { %v11212_v18 = vpop.eup %11211  ;;  %10129 = vmatprep.subr.mxu1 %v13125_v30 }
 0x106   :  { %v839_v19 = vmul.f32 0.5, %v11212_v18 }
 0x108   :  { %v840_v22 = vadd.f32 0.5, %v839_v19 }
 0x10a   :  { %v848_v24 = vmul.f32 %v9432_v20, %v840_v22  ;;  %v861_v1 = vmul.f32 0.0, %v840_v22 }
 0x10c   :  { %850 = vrot.lane.b32.xlu0 %v848_v24, %s11298_s18 }
 0x17e   :  { %v851_v25 = vpop.permute.xlu0 %850 }
 0x17f   :  { %v853_v26 = vadd.f32 %v851_v25, %v786_v60  ;;  %v855_v60 = vsub.f32 1.0, %v840_v22  ;;  %v11702_v25 = vpop.f32.mrf.mxu0 }
 0x181   :  { %11213 = vtanh.f32 %v853_v26 }
 0x18e   :  { %v11214_v47 = vpop.eup %11213 }
 0x18f   :  { %857 = vrot.lane.b32.xlu0 %v11214_v47, %s11300_s4 }
 0x201   :  { %v858_v61 = vpop.permute.xlu0 %857 }
 0x202   :  { %v860_v62 = vmul.f32 %v858_v61, %v855_v60 }
 0x204   :  { %v11616_v4 = vadd.f32 %v861_v1, %v860_v62 }
 0x206   :  { %864 = vrot.lane.b32.xlu1 %v11616_v4, %s11300_s4 }
 0x20a   :  { %1359 = vrot.lane.b32.xlu1 %v9432_v20, %s11298_s18  ;;  %v11700_v20 = vpop.f32.mrf.mxu1 }
 0x278   :  { %v865_v5 = vpop.permute.xlu1 %864 }
 0x279   :  { %v867_v6 = vsel %vm866_vm3, %v865_v5, 0 }
 0x27a   :  { %v11622_v12 = vand.u32 4294901760, %v867_v6 }
 0x27c   :  { %v11625_v13 = vsub.f32 %v867_v6, %v11622_v12  ;;  %10116 = vmatmul.mubr.f32.vlgmr.msra.gmra.mxu1 %v11622_v12  ;;  %v11704_v5 = vpop.permute.xlu1 %1359 }
 0x27d   :  { %10130 = vmatpush3.msra.mxu1 %v11544_v31  ;;  %10137 = vmatprep.mubr.msk.f32.mxu1 %vm11301_vm2, %v13125_v30 }
 0x27e   :  { %13127 = vst [vmem:[#allocation5_spill] sm:$0xff] %v11625_v13  ;;  %10131 = vmatprep.subr.mxu1 %v13125_v30  ;;  %v11633_v14 = vand.u32 4294901760, %v11625_v13 }
 0x27f   :  { %10132 = vmatpush3.msra.mxu1 %v11546_v32 }
 0x280   :  { %10133 = vmatprep.subr.mxu1 %v13125_v30  ;;  %v941_v18 = vsub.f32 %v11625_v13, %v11633_v14 }
 0x281   :  { %10134 = vmatpush3.msra.mxu1 %v11548_v34 }
 0x282   :  { %10135 = vmatprep.subr.mxu1 %v13125_v30  ;;  %v11641_v19 = vand.u32 4294901760, %v941_v18 }
 0x283   :  { %10136 = vmatpush3.msra.mxu1 %v11596_v54 }
 0x284   :  { %10138 = vmatmul.mubr.f32.vlgmr.msra.gmra.mxu1 %v11633_v14  ;;  %10151 = vmatprep.subr.mxu1 %v13125_v30 }
 0x285   :  { %10105 = vmatmul.mubr.f32.vlgmr.msra.gmra.mxu0 %v11641_v19  ;;  %10152 = vmatpush3.msra.mxu1 %v11544_v31 }
 0x286   :  { %10119 = vmatpush3.msra.mxu0 %v11552_v35  ;;  %10153 = vmatprep.subr.mxu1 %v13125_v30 }
 0x287   :  { %10120 = vmatprep.subr.mxu0 %v13125_v30  ;;  %10154 = vmatpush3.msra.mxu1 %v11546_v32 }
 0x288   :  { %10121 = vmatpush3.msra.mxu0 %v11555_v37  ;;  %10155 = vmatprep.subr.mxu1 %v13125_v30 }
 0x289   :  { %10122 = vmatprep.subr.mxu0 %v13125_v30  ;;  %10156 = vmatpush3.msra.mxu1 %v11548_v34 }
 0x28a   :  { %10123 = vmatpush3.msra.mxu0 %v11558_v38  ;;  %10157 = vmatprep.subr.mxu1 %v13125_v30 }
 0x28b   :  { %10124 = vmatprep.subr.mxu0 %v13125_v30  ;;  %10126 = vmatprep.mubr.msk.f32.mxu0 %vm11301_vm2, %v13125_v30 }
 0x28c   :  { %10125 = vmatpush3.msra.mxu0 %v11599_v55  ;;  %10158 = vmatpush3.msra.mxu1 %v11596_v54 }
 0x28d   :  { %10159 = vmatprep.mubr.msk.f32.mxu1 %vm11301_vm2, %v13125_v30  ;;  %10127 = vmatmul.mubr.f32.vlgmr.msra.gmra.mxu0 %v11625_v13 }
 0x28e   :  { %10140 = vmatprep.subr.mxu0 %v13125_v30  ;;  %10160 = vmatmul.mubr.f32.vlgmr.msra.gmra.mxu1 %v11622_v12 }
 0x28f   :  { %10141 = vmatpush3.msra.mxu0 %v11562_v39  ;;  %10148 = vmatprep.mubr.msk.f32.mxu0 %vm11301_vm2, %v13125_v30 }
 0x290   :  { %10142 = vmatprep.subr.mxu0 %v13125_v30  ;;  %10173 = vmatprep.subr.mxu1 %v13125_v30 }
 0x291   :  { %10143 = vmatpush3.msra.mxu0 %v11565_v41  ;;  %10174 = vmatpush3.msra.mxu1 %v11581_v49 }
 0x292   :  { %10144 = vmatprep.subr.mxu0 %v13125_v30  ;;  %10175 = vmatprep.subr.mxu1 %v13125_v30 }
 0x293   :  { %10145 = vmatpush3.msra.mxu0 %v11569_v42  ;;  %10176 = vmatpush3.msra.mxu1 %v11583_v51 }
 0x294   :  { %10146 = vmatprep.subr.mxu0 %v13125_v30  ;;  %10177 = vmatprep.subr.mxu1 %v13125_v30 }
 0x295   :  { %10147 = vmatpush3.msra.mxu0 %v11604_v57  ;;  %10178 = vmatpush3.msra.mxu1 %v11586_v52 }
 0x296   :  { %10149 = vmatmul.mubr.f32.vlgmr.msra.gmra.mxu0 %v11622_v12  ;;  %10179 = vmatprep.subr.mxu1 %v13125_v30 }
 0x297   :  { %10180 = vmatpush3.msra.mxu1 %v11608_v59  ;;  %10162 = vmatprep.subr.mxu0 %v13125_v30 }
 0x298   :  { %10181 = vmatprep.mubr.msk.f32.mxu1 %vm11301_vm2, %v13125_v30  ;;  %10195 = vmatprep.subr.mxu1 %v13125_v30 }
 0x299   :  { %10163 = vmatpush3.msra.mxu0 %v11544_v31  ;;  %10170 = vmatprep.mubr.msk.f32.mxu0 %vm11301_vm2, %v13125_v30 }
 0x29a   :  { %10164 = vmatprep.subr.mxu0 %v13125_v30 }
 0x29b   :  { %10165 = vmatpush3.msra.mxu0 %v11546_v32 }
 0x29c   :  { %10166 = vmatprep.subr.mxu0 %v13125_v30 }
 0x29d   :  { %10167 = vmatpush3.msra.mxu0 %v11548_v34 }
 0x29e   :  { %10168 = vmatprep.subr.mxu0 %v13125_v30 }
 0x29f   :  { %10169 = vmatpush3.msra.mxu0 %v11596_v54 }
 0x2a0   :  { %10184 = vmatprep.subr.mxu0 %v13125_v30 }
 0x33c   :  { %v1035_v22 = vpop.f32.mrf.mxu1 }
 0x33e   :  { %v10117_v24 = vpop.f32.mrf.mxu1 }
 0x344   :  { %v1192_v26 = vpop.f32.mrf.mxu1 }
 0x345   :  { %v944_v27 = vpop.f32.mrf.mxu0 }
 0x346   :  { %v10139_v28 = vpop.f32.mrf.mxu1  ;;  %v1036_v46 = vadd.f32 %v1035_v22, %v944_v27 }
 0x347   :  { %v10106_v29 = vpop.f32.mrf.mxu0 }
 0x34d   :  { %v1115_v44 = vpop.f32.mrf.mxu0 }
 0x34e   :  { %v1350_v45 = vpop.f32.mrf.mxu1  ;;  %v1116_v58 = vadd.f32 %v1115_v44, %v1036_v46 }
 0x34f   :  { %v10128_v47 = vpop.f32.mrf.mxu0 }
 0x350   :  { %v10161_v53 = vpop.f32.mrf.mxu1  ;;  %v1193_v60 = vadd.f32 %v1192_v26, %v1116_v58 }
 0x356   :  { %v1275_v61 = vpop.f32.mrf.mxu0 }
 0x357   :  { %v1276_v62 = vadd.f32 %v1275_v61, %v1193_v60 }
 0x358   :  { %v10150_v1 = vpop.f32.mrf.mxu0 }
 0x359   :  { %v1351_v6 = vadd.f32 %v1350_v45, %v1276_v62 }
 0x35b   :  { %v1362_v18 = vadd.f32 %v11704_v5, %v1351_v6  ;;  %v1354_v24 = vadd.f32 %v1351_v6, %v11513_v56 }
 0x35d   :  { %1364 = vrot.lane.b32.xlu0 %v1362_v18, %s11298_s18  ;;  %v1355_v28 = vmul.f32 0.5, %v1354_v24 }
 0x35f   :  { %11215 = vtanh.f32 %v1355_v28 }
 0x36c   :  { %v11216_v29 = vpop.eup %11215 }
 0x36d   :  { %v1357_v22 = vmul.f32 0.5, %v11216_v29 }
 0x36f   :  { %v1358_v27 = vadd.f32 0.5, %v1357_v22 }
 0x371   :  { %v1374_v53 = vsub.f32 1.0, %v1358_v27  ;;  %v1380_v60 = vmul.f32 %v1358_v27, %v11616_v4 }
 0x3cf   :  { %v1365_v47 = vpop.permute.xlu0 %1364 }
 0x3d0   :  { %v1367_v44 = vmul.f32 %v1365_v47, %v1358_v27 }
 0x3d2   :  { %1369 = vrot.lane.b32.xlu1 %v1367_v44, %s11298_s18 }
 0x444   :  { %v1370_v26 = vpop.permute.xlu1 %1369 }
 0x445   :  { %v1372_v46 = vadd.f32 %v1370_v26, %v11513_v56 }
 0x447   :  { %11217 = vtanh.f32 %v1372_v46 }
 0x454   :  { %v11218_v45 = vpop.eup %11217 }
 0x455   :  { %1376 = vrot.lane.b32.xlu0 %v11218_v45, %s11300_s4 }
 0x4c7   :  { %v1377_v58 = vpop.permute.xlu0 %1376 }
 0x4c8   :  { %v1379_v61 = vmul.f32 %v1377_v58, %v1374_v53 }
 0x4ca   :  { %v11713_v62 = vadd.f32 %v1380_v60, %v1379_v61 }
 0x4cc   :  { %1383 = vrot.lane.b32.xlu1 %v11713_v62, %s11300_s4 }
 0x53e   :  { %v1384_v1 = vpop.permute.xlu1 %1383 }
 0x53f   :  { %v1385_v6 = vsel %vm866_vm3, %v1384_v1, 0 }
 0x540   :  { %v11718_v18 = vand.u32 4294901760, %v1385_v6 }
 0x542   :  { %v11721_v56 = vsub.f32 %v1385_v6, %v11718_v18  ;;  %10182 = vmatmul.mubr.f32.vlgmr.msra.gmra.mxu1 %v11718_v18 }
 0x543   :  { %10196 = vmatpush3.msra.mxu1 %v11544_v31  ;;  %10203 = vmatprep.mubr.msk.f32.mxu1 %vm11301_vm2, %v13125_v30 }
 0x544   :  { %13128 = vst [vmem:[#allocation6_spill] sm:$0xff] %v11721_v56  ;;  %10197 = vmatprep.subr.mxu1 %v13125_v30  ;;  %v11729_v4 = vand.u32 4294901760, %v11721_v56 }
 0x545   :  { %10198 = vmatpush3.msra.mxu1 %v11546_v32 }
 0x546   :  { %13129 = vst [vmem:[#allocation7_spill] sm:$0xff] %v11729_v4  ;;  %10199 = vmatprep.subr.mxu1 %v13125_v30  ;;  %v1459_v24 = vsub.f32 %v11721_v56, %v11729_v4 }
 0x547   :  { %10200 = vmatpush3.msra.mxu1 %v11548_v34 }
 0x548   :  { %10201 = vmatprep.subr.mxu1 %v13125_v30  ;;  %v11737_v28 = vand.u32 4294901760, %v1459_v24 }
 0x549   :  { %10202 = vmatpush3.msra.mxu1 %v11596_v54 }
 0x54a   :  { %10204 = vmatmul.mubr.f32.vlgmr.msra.gmra.mxu1 %v11729_v4  ;;  %10217 = vmatprep.subr.mxu1 %v13125_v30 }
 0x54b   :  { %10171 = vmatmul.mubr.f32.vlgmr.msra.gmra.mxu0 %v11737_v28  ;;  %10218 = vmatpush3.msra.mxu1 %v11544_v31 }
 0x54c   :  { %10185 = vmatpush3.msra.mxu0 %v11552_v35  ;;  %10219 = vmatprep.subr.mxu1 %v13125_v30 }
 0x54d   :  { %10186 = vmatprep.subr.mxu0 %v13125_v30  ;;  %10220 = vmatpush3.msra.mxu1 %v11546_v32 }
 0x54e   :  { %10187 = vmatpush3.msra.mxu0 %v11555_v37  ;;  %10221 = vmatprep.subr.mxu1 %v13125_v30 }
 0x54f   :  { %10188 = vmatprep.subr.mxu0 %v13125_v30  ;;  %10222 = vmatpush3.msra.mxu1 %v11548_v34 }
 0x550   :  { %10189 = vmatpush3.msra.mxu0 %v11558_v38  ;;  %10223 = vmatprep.subr.mxu1 %v13125_v30 }
 0x551   :  { %10190 = vmatprep.subr.mxu0 %v13125_v30  ;;  %10192 = vmatprep.mubr.msk.f32.mxu0 %vm11301_vm2, %v13125_v30 }
 0x552   :  { %10191 = vmatpush3.msra.mxu0 %v11599_v55  ;;  %10224 = vmatpush3.msra.mxu1 %v11596_v54 }
 0x553   :  { %10225 = vmatprep.mubr.msk.f32.mxu1 %vm11301_vm2, %v13125_v30  ;;  %10193 = vmatmul.mubr.f32.vlgmr.msra.gmra.mxu0 %v11721_v56 }
 0x554   :  { %10206 = vmatprep.subr.mxu0 %v13125_v30  ;;  %10226 = vmatmul.mubr.f32.vlgmr.msra.gmra.mxu1 %v11718_v18 }
 0x555   :  { %10207 = vmatpush3.msra.mxu0 %v11562_v39  ;;  %10214 = vmatprep.mubr.msk.f32.mxu0 %vm11301_vm2, %v13125_v30 }
 0x556   :  { %10208 = vmatprep.subr.mxu0 %v13125_v30  ;;  %10239 = vmatprep.subr.mxu1 %v13125_v30 }
 0x557   :  { %10209 = vmatpush3.msra.mxu0 %v11565_v41  ;;  %10240 = vmatpush3.msra.mxu1 %v11581_v49 }
 0x558   :  { %10210 = vmatprep.subr.mxu0 %v13125_v30  ;;  %10241 = vmatprep.subr.mxu1 %v13125_v30 }
 0x559   :  { %10211 = vmatpush3.msra.mxu0 %v11569_v42  ;;  %10242 = vmatpush3.msra.mxu1 %v11583_v51 }
 0x55a   :  { %10212 = vmatprep.subr.mxu0 %v13125_v30  ;;  %10243 = vmatprep.subr.mxu1 %v13125_v30 }
 0x55b   :  { %10213 = vmatpush3.msra.mxu0 %v11604_v57  ;;  %10244 = vmatpush3.msra.mxu1 %v11586_v52 }
 0x55c   :  { %10215 = vmatmul.mubr.f32.vlgmr.msra.gmra.mxu0 %v11718_v18  ;;  %10245 = vmatprep.subr.mxu1 %v13125_v30 }
 0x55d   :  { %10246 = vmatpush3.msra.mxu1 %v11608_v59  ;;  %10228 = vmatprep.subr.mxu0 %v13125_v30 }
 0x55e   :  { %10247 = vmatprep.mubr.msk.f32.mxu1 %vm11301_vm2, %v13125_v30  ;;  %10261 = vmatprep.subr.mxu1 %v13125_v30 }
 0x55f   :  { %10229 = vmatpush3.msra.mxu0 %v11544_v31  ;;  %10236 = vmatprep.mubr.msk.f32.mxu0 %vm11301_vm2, %v13125_v30 }
 0x560   :  { %10230 = vmatprep.subr.mxu0 %v13125_v30 }
 0x561   :  { %10231 = vmatpush3.msra.mxu0 %v11546_v32 }
 0x562   :  { %10232 = vmatprep.subr.mxu0 %v13125_v30 }
 0x563   :  { %10233 = vmatpush3.msra.mxu0 %v11548_v34 }
 0x564   :  { %10234 = vmatprep.subr.mxu0 %v13125_v30 }
 0x565   :  { %10235 = vmatpush3.msra.mxu0 %v11596_v54 }
 0x566   :  { %10250 = vmatprep.subr.mxu0 %v13125_v30 }
 0x602   :  { %v1553_v29 = vpop.f32.mrf.mxu1 }
 0x604   :  { %v10183_v22 = vpop.f32.mrf.mxu1 }
 0x605   :  { %v177_v22 = vadd.f32 %v11482_v63, %v11486_v9 }
 0x60a   :  { %v1710_v27 = vpop.f32.mrf.mxu1 }
 0x60b   :  { %v1462_v47 = vpop.f32.mrf.mxu0 }
 0x60c   :  { %v10205_v44 = vpop.f32.mrf.mxu1  ;;  %v1554_v53 = vadd.f32 %v1553_v29, %v1462_v47 }
 0x60d   :  { %v10172_v26 = vpop.f32.mrf.mxu0  ;;  %v315_v44 = vadd.f32 %v11488_v11, %v177_v22 }
 0x60f   :  { %v433_v26 = vadd.f32 %v11500_v33, %v315_v44 }
 0x611   :  { %v558_v29 = vadd.f32 %v11503_v36, %v433_v26 }
 0x613   :  { %v1633_v46 = vpop.f32.mrf.mxu0  ;;  %v684_v47 = vadd.f32 %v11515_v0, %v558_v29 }
 0x614   :  { %v1868_v45 = vpop.f32.mrf.mxu1  ;;  %v1634_v61 = vadd.f32 %v1633_v46, %v1554_v53 }
 0x615   :  { %v10194_v58 = vpop.f32.mrf.mxu0 }
 0x616   :  { %v10227_v60 = vpop.f32.mrf.mxu1  ;;  %v1711_v1 = vadd.f32 %v1710_v27, %v1634_v61  ;;  %v798_v27 = vadd.f32 %v11519_v3, %v684_v47 }
 0x61c   :  { %v1793_v6 = vpop.f32.mrf.mxu0 }
 0x61d   :  { %v1794_v24 = vadd.f32 %v1793_v6, %v1711_v1 }
 0x61e   :  { %v10216_v56 = vpop.f32.mrf.mxu0 }
 0x61f   :  { %v1869_v13 = vadd.f32 %v1868_v45, %v1794_v24 }
 0x621   :  { %v1877_v4 = vadd.f32 %v1869_v13, %v11704_v5  ;;  %v1872_v46 = vadd.f32 %v1869_v13, %v798_v27 }
 0x623   :  { %1879 = vrot.lane.b32.xlu0 %v1877_v4, %s11298_s18  ;;  %v1873_v56 = vmul.f32 0.5, %v1872_v46 }
 0x625   :  { %11219 = vtanh.f32 %v1873_v56 }
 0x632   :  { %v11220_v45 = vpop.eup %11219 }
 0x633   :  { %v1875_v53 = vmul.f32 0.5, %v11220_v45 }
 0x635   :  { %v1876_v58 = vadd.f32 0.5, %v1875_v53 }
 0x637   :  { %v1889_v33 = vsub.f32 1.0, %v1876_v58  ;;  %v1895_v0 = vmul.f32 %v1876_v58, %v11713_v62 }
 0x695   :  { %v1880_v4 = vpop.permute.xlu0 %1879 }
 0x696   :  { %v1882_v60 = vmul.f32 %v1880_v4, %v1876_v58 }
 0x698   :  { %1884 = vrot.lane.b32.xlu1 %v1882_v60, %s11298_s18 }
 0x70a   :  { %v1885_v63 = vpop.permute.xlu1 %1884 }
 0x70b   :  { %v1887_v9 = vadd.f32 %v1885_v63, %v798_v27 }
 0x70d   :  { %11221 = vtanh.f32 %v1887_v9 }
 0x71a   :  { %v11222_v11 = vpop.eup %11221 }
 0x71b   :  { %1891 = vrot.lane.b32.xlu0 %v11222_v11, %s11300_s4 }
 0x78d   :  { %v1892_v36 = vpop.permute.xlu0 %1891 }
 0x78e   :  { %v1894_v3 = vmul.f32 %v1892_v36, %v1889_v33 }
 0x790   :  { %v11808_v13 = vadd.f32 %v1895_v0, %v1894_v3 }
 0x792   :  { %1898 = vrot.lane.b32.xlu1 %v11808_v13, %s11300_s4 }
 0x804   :  { %v1899_v61 = vpop.permute.xlu1 %1898 }
 0x805   :  { %v1900_v1 = vsel %vm866_vm3, %v1899_v61, 0 }
 0x806   :  { %v11813_v6 = vand.u32 4294901760, %v1900_v1 }
 0x808   :  { %v11816_v24 = vsub.f32 %v1900_v1, %v11813_v6  ;;  %10248 = vmatmul.mubr.f32.vlgmr.msra.gmra.mxu1 %v11813_v6 }
 0x809   :  { %10262 = vmatpush3.msra.mxu1 %v11544_v31  ;;  %10269 = vmatprep.mubr.msk.f32.mxu1 %vm11301_vm2, %v13125_v30 }
 0x80a   :  { %10263 = vmatprep.subr.mxu1 %v13125_v30  ;;  %v11824_v62 = vand.u32 4294901760, %v11816_v24 }
 0x80b   :  { %10264 = vmatpush3.msra.mxu1 %v11546_v32 }
 0x80c   :  { %10265 = vmatprep.subr.mxu1 %v13125_v30  ;;  %v1974_v22 = vsub.f32 %v11816_v24, %v11824_v62 }
 0x80d   :  { %10266 = vmatpush3.msra.mxu1 %v11548_v34 }
 0x80e   :  { %10267 = vmatprep.subr.mxu1 %v13125_v30  ;;  %v11832_v44 = vand.u32 4294901760, %v1974_v22 }
 0x80f   :  { %10268 = vmatpush3.msra.mxu1 %v11596_v54 }
 0x810   :  { %10270 = vmatmul.mubr.f32.vlgmr.msra.gmra.mxu1 %v11824_v62  ;;  %10283 = vmatprep.subr.mxu1 %v13125_v30 }
 0x811   :  { %10237 = vmatmul.mubr.f32.vlgmr.msra.gmra.mxu0 %v11832_v44  ;;  %10284 = vmatpush3.msra.mxu1 %v11544_v31 }
 0x812   :  { %10251 = vmatpush3.msra.mxu0 %v11552_v35  ;;  %10285 = vmatprep.subr.mxu1 %v13125_v30 }
 0x813   :  { %10252 = vmatprep.subr.mxu0 %v13125_v30  ;;  %10286 = vmatpush3.msra.mxu1 %v11546_v32 }
 0x814   :  { %10253 = vmatpush3.msra.mxu0 %v11555_v37  ;;  %10287 = vmatprep.subr.mxu1 %v13125_v30 }
 0x815   :  { %10254 = vmatprep.subr.mxu0 %v13125_v30  ;;  %10288 = vmatpush3.msra.mxu1 %v11548_v34 }
 0x816   :  { %10255 = vmatpush3.msra.mxu0 %v11558_v38  ;;  %10289 = vmatprep.subr.mxu1 %v13125_v30 }
 0x817   :  { %10256 = vmatprep.subr.mxu0 %v13125_v30  ;;  %10258 = vmatprep.mubr.msk.f32.mxu0 %vm11301_vm2, %v13125_v30 }
 0x818   :  { %10257 = vmatpush3.msra.mxu0 %v11599_v55  ;;  %10290 = vmatpush3.msra.mxu1 %v11596_v54 }
 0x819   :  { %10291 = vmatprep.mubr.msk.f32.mxu1 %vm11301_vm2, %v13125_v30  ;;  %10259 = vmatmul.mubr.f32.vlgmr.msra.gmra.mxu0 %v11816_v24 }
 0x81a   :  { %10272 = vmatprep.subr.mxu0 %v13125_v30  ;;  %10292 = vmatmul.mubr.f32.vlgmr.msra.gmra.mxu1 %v11813_v6 }
 0x81b   :  { %10273 = vmatpush3.msra.mxu0 %v11562_v39  ;;  %10280 = vmatprep.mubr.msk.f32.mxu0 %vm11301_vm2, %v13125_v30 }
 0x81c   :  { %10274 = vmatprep.subr.mxu0 %v13125_v30  ;;  %10305 = vmatprep.subr.mxu1 %v13125_v30 }
 0x81d   :  { %10275 = vmatpush3.msra.mxu0 %v11565_v41  ;;  %10306 = vmatpush3.msra.mxu1 %v11581_v49 }
 0x81e   :  { %10276 = vmatprep.subr.mxu0 %v13125_v30  ;;  %10307 = vmatprep.subr.mxu1 %v13125_v30 }
 0x81f   :  { %10277 = vmatpush3.msra.mxu0 %v11569_v42  ;;  %10308 = vmatpush3.msra.mxu1 %v11583_v51 }
 0x820   :  { %10278 = vmatprep.subr.mxu0 %v13125_v30  ;;  %10309 = vmatprep.subr.mxu1 %v13125_v30 }
 0x821   :  { %10279 = vmatpush3.msra.mxu0 %v11604_v57  ;;  %10310 = vmatpush3.msra.mxu1 %v11586_v52 }
 0x822   :  { %10281 = vmatmul.mubr.f32.vlgmr.msra.gmra.mxu0 %v11813_v6  ;;  %10311 = vmatprep.subr.mxu1 %v13125_v30 }
 0x823   :  { %10312 = vmatpush3.msra.mxu1 %v11608_v59  ;;  %10294 = vmatprep.subr.mxu0 %v13125_v30 }
 0x824   :  { %10313 = vmatprep.mubr.msk.f32.mxu1 %vm11301_vm2, %v13125_v30  ;;  %10327 = vmatprep.subr.mxu1 %v13125_v30 }
 0x825   :  { %10295 = vmatpush3.msra.mxu0 %v11544_v31  ;;  %10302 = vmatprep.mubr.msk.f32.mxu0 %vm11301_vm2, %v13125_v30 }
 0x826   :  { %10296 = vmatprep.subr.mxu0 %v13125_v30 }
 0x827   :  { %10297 = vmatpush3.msra.mxu0 %v11546_v32 }
 0x828   :  { %10298 = vmatprep.subr.mxu0 %v13125_v30 }
 0x829   :  { %10299 = vmatpush3.msra.mxu0 %v11548_v34 }
 0x82a   :  { %10300 = vmatprep.subr.mxu0 %v13125_v30 }
 0x82b   :  { %10301 = vmatpush3.msra.mxu0 %v11596_v54 }
 0x82c   :  { %10316 = vmatprep.subr.mxu0 %v13125_v30 }
 0x8c8   :  { %v2068_v26 = vpop.f32.mrf.mxu1 }
 0x8ca   :  { %v10249_v29 = vpop.f32.mrf.mxu1 }
 0x8d0   :  { %v2225_v47 = vpop.f32.mrf.mxu1 }
 0x8d1   :  { %v1977_v27 = vpop.f32.mrf.mxu0 }
 0x8d2   :  { %v10271_v46 = vpop.f32.mrf.mxu1  ;;  %v2069_v58 = vadd.f32 %v2068_v26, %v1977_v27 }
 0x8d3   :  { %v10238_v56 = vpop.f32.mrf.mxu0 }
 0x8d9   :  { %v2148_v45 = vpop.f32.mrf.mxu0 }
 0x8da   :  { %v2383_v53 = vpop.f32.mrf.mxu1  ;;  %v2149_v63 = vadd.f32 %v2148_v45, %v2069_v58 }
 0x8db   :  { %v10260_v4 = vpop.f32.mrf.mxu0 }
 0x8dc   :  { %v10293_v60 = vpop.f32.mrf.mxu1  ;;  %v2226_v9 = vadd.f32 %v2225_v47, %v2149_v63 }
 0x8e2   :  { %v2308_v11 = vpop.f32.mrf.mxu0 }
 0x8e3   :  { %v2309_v33 = vadd.f32 %v2308_v11, %v2226_v9 }
 0x8e4   :  { %v10282_v36 = vpop.f32.mrf.mxu0 }
 0x8e5   :  { %v2384_v0 = vadd.f32 %v2383_v53, %v2309_v33 }
 0x8e7   :  { %v2392_v3 = vadd.f32 %v2384_v0, %v11704_v5  ;;  %v2387_v61 = vadd.f32 %v2384_v0, %v11517_v2 }
 0x8e9   :  { %2394 = vrot.lane.b32.xlu0 %v2392_v3, %s11298_s18  ;;  %v2388_v1 = vmul.f32 0.5, %v2387_v61 }
 0x8eb   :  { %11223 = vtanh.f32 %v2388_v1 }
 0x8f8   :  { %v11224_v22 = vpop.eup %11223 }
 0x8f9   :  { %v2390_v29 = vmul.f32 0.5, %v11224_v22 }
 0x8fb   :  { %v2391_v46 = vadd.f32 0.5, %v2390_v29 }
 0x8fd   :  { %v2404_v53 = vsub.f32 1.0, %v2391_v46  ;;  %v2410_v4 = vmul.f32 %v2391_v46, %v11808_v13 }
 0x95b   :  { %v2395_v26 = vpop.permute.xlu0 %2394 }
 0x95c   :  { %v2397_v27 = vmul.f32 %v2395_v26, %v2391_v46 }
 0x95e   :  { %2399 = vrot.lane.b32.xlu1 %v2397_v27, %s11298_s18 }
 0x9d0   :  { %v2400_v47 = vpop.permute.xlu1 %2399 }
 0x9d1   :  { %v2402_v56 = vadd.f32 %v2400_v47, %v11517_v2 }
 0x9d3   :  { %11225 = vtanh.f32 %v2402_v56 }
 0x9e0   :  { %v11226_v45 = vpop.eup %11225 }
 0x9e1   :  { %2406 = vrot.lane.b32.xlu0 %v11226_v45, %s11300_s4 }
 0xa53   :  { %v2407_v58 = vpop.permute.xlu0 %2406 }
 0xa54   :  { %v2409_v60 = vmul.f32 %v2407_v58, %v2404_v53 }
 0xa56   :  { %v11898_v63 = vadd.f32 %v2410_v4, %v2409_v60 }
 0xa58   :  { %2413 = vrot.lane.b32.xlu1 %v11898_v63, %s11300_s4 }
 0xaca   :  { %v2414_v9 = vpop.permute.xlu1 %2413 }
 0xacb   :  { %v2415_v11 = vsel %vm866_vm3, %v2414_v9, 0 }
 0xacc   :  { %v11903_v33 = vand.u32 4294901760, %v2415_v11 }
 0xace   :  { %v11906_v2 = vsub.f32 %v2415_v11, %v11903_v33  ;;  %10314 = vmatmul.mubr.f32.vlgmr.msra.gmra.mxu1 %v11903_v33 }
 0xacf   :  { %10328 = vmatpush3.msra.mxu1 %v11544_v31  ;;  %10335 = vmatprep.mubr.msk.f32.mxu1 %vm11301_vm2, %v13125_v30 }
 0xad0   :  { %10329 = vmatprep.subr.mxu1 %v13125_v30  ;;  %v11914_v13 = vand.u32 4294901760, %v11906_v2 }
 0xad1   :  { %10330 = vmatpush3.msra.mxu1 %v11546_v32 }
 0xad2   :  { %10331 = vmatprep.subr.mxu1 %v13125_v30  ;;  %v2489_v36 = vsub.f32 %v11906_v2, %v11914_v13 }
 0xad3   :  { %10332 = vmatpush3.msra.mxu1 %v11548_v34 }
 0xad4   :  { %10333 = vmatprep.subr.mxu1 %v13125_v30  ;;  %v11922_v0 = vand.u32 4294901760, %v2489_v36 }
 0xad5   :  { %10334 = vmatpush3.msra.mxu1 %v11596_v54 }
 0xad6   :  { %10336 = vmatmul.mubr.f32.vlgmr.msra.gmra.mxu1 %v11914_v13  ;;  %10349 = vmatprep.subr.mxu1 %v13125_v30 }
 0xad7   :  { %10303 = vmatmul.mubr.f32.vlgmr.msra.gmra.mxu0 %v11922_v0  ;;  %10350 = vmatpush3.msra.mxu1 %v11544_v31 }
 0xad8   :  { %10317 = vmatpush3.msra.mxu0 %v11552_v35  ;;  %10351 = vmatprep.subr.mxu1 %v13125_v30 }
 0xad9   :  { %10318 = vmatprep.subr.mxu0 %v13125_v30  ;;  %10352 = vmatpush3.msra.mxu1 %v11546_v32 }
 0xada   :  { %10319 = vmatpush3.msra.mxu0 %v11555_v37  ;;  %10353 = vmatprep.subr.mxu1 %v13125_v30 }
 0xadb   :  { %10320 = vmatprep.subr.mxu0 %v13125_v30  ;;  %10354 = vmatpush3.msra.mxu1 %v11548_v34 }
 0xadc   :  { %10321 = vmatpush3.msra.mxu0 %v11558_v38  ;;  %10355 = vmatprep.subr.mxu1 %v13125_v30 }
 0xadd   :  { %10322 = vmatprep.subr.mxu0 %v13125_v30  ;;  %10324 = vmatprep.mubr.msk.f32.mxu0 %vm11301_vm2, %v13125_v30 }
 0xade   :  { %10323 = vmatpush3.msra.mxu0 %v11599_v55  ;;  %10356 = vmatpush3.msra.mxu1 %v11596_v54 }
 0xadf   :  { %10357 = vmatprep.mubr.msk.f32.mxu1 %vm11301_vm2, %v13125_v30  ;;  %10325 = vmatmul.mubr.f32.vlgmr.msra.gmra.mxu0 %v11906_v2 }
 0xae0   :  { %10338 = vmatprep.subr.mxu0 %v13125_v30  ;;  %10358 = vmatmul.mubr.f32.vlgmr.msra.gmra.mxu1 %v11903_v33 }
 0xae1   :  { %10339 = vmatpush3.msra.mxu0 %v11562_v39  ;;  %10346 = vmatprep.mubr.msk.f32.mxu0 %vm11301_vm2, %v13125_v30 }
 0xae2   :  { %10340 = vmatprep.subr.mxu0 %v13125_v30  ;;  %10371 = vmatprep.subr.mxu1 %v13125_v30 }
 0xae3   :  { %10341 = vmatpush3.msra.mxu0 %v11565_v41  ;;  %10372 = vmatpush3.msra.mxu1 %v11581_v49 }
 0xae4   :  { %10342 = vmatprep.subr.mxu0 %v13125_v30  ;;  %10373 = vmatprep.subr.mxu1 %v13125_v30 }
 0xae5   :  { %10343 = vmatpush3.msra.mxu0 %v11569_v42  ;;  %10374 = vmatpush3.msra.mxu1 %v11583_v51 }
 0xae6   :  { %10344 = vmatprep.subr.mxu0 %v13125_v30  ;;  %10375 = vmatprep.subr.mxu1 %v13125_v30 }
 0xae7   :  { %10345 = vmatpush3.msra.mxu0 %v11604_v57  ;;  %10376 = vmatpush3.msra.mxu1 %v11586_v52 }
 0xae8   :  { %10347 = vmatmul.mubr.f32.vlgmr.msra.gmra.mxu0 %v11903_v33  ;;  %10377 = vmatprep.subr.mxu1 %v13125_v30 }
 0xae9   :  { %10378 = vmatpush3.msra.mxu1 %v11608_v59  ;;  %10360 = vmatprep.subr.mxu0 %v13125_v30 }
 0xaea   :  { %10379 = vmatprep.mubr.msk.f32.mxu1 %vm11301_vm2, %v13125_v30  ;;  %10393 = vmatprep.subr.mxu1 %v13125_v30 }
 0xaeb   :  { %10361 = vmatpush3.msra.mxu0 %v11544_v31  ;;  %10368 = vmatprep.mubr.msk.f32.mxu0 %vm11301_vm2, %v13125_v30 }
 0xaec   :  { %10362 = vmatprep.subr.mxu0 %v13125_v30 }
 0xaed   :  { %10363 = vmatpush3.msra.mxu0 %v11546_v32 }
 0xaee   :  { %10364 = vmatprep.subr.mxu0 %v13125_v30 }
 0xaef   :  { %10365 = vmatpush3.msra.mxu0 %v11548_v34 }
 0xaf0   :  { %10366 = vmatprep.subr.mxu0 %v13125_v30 }
 0xaf1   :  { %10367 = vmatpush3.msra.mxu0 %v11596_v54 }
 0xaf2   :  { %10382 = vmatprep.subr.mxu0 %v13125_v30 }
 0xb8e   :  { %v2583_v3 = vpop.f32.mrf.mxu1 }
 0xb90   :  { %v10315_v61 = vpop.f32.mrf.mxu1 }
 0xb91   :  { %v11986_v61 = vld [vmem:[%s13113_s3] ss:$0 sm:$0xff] }
 0xb96   :  { %v2740_v1 = vpop.f32.mrf.mxu1 }
 0xb97   :  { %v2492_v22 = vpop.f32.mrf.mxu0 }
 0xb98   :  { %v10337_v29 = vpop.f32.mrf.mxu1  ;;  %v2584_v47 = vadd.f32 %v2583_v3, %v2492_v22  ;;  %v197_v3 = vadd.f32 %v11986_v61, %v11491_v15 }
 0xb99   :  { %v10304_v46 = vpop.f32.mrf.mxu0 }
 0xb9a   :  { %v327_v22 = vadd.f32 %v11493_v17, %v197_v3 }
 0xb9f   :  { %v2663_v26 = vpop.f32.mrf.mxu0 }
 0xba0   :  { %v2898_v27 = vpop.f32.mrf.mxu1  ;;  %v2664_v53 = vadd.f32 %v2663_v26, %v2584_v47 }
 0xba1   :  { %v10326_v56 = vpop.f32.mrf.mxu0 }
 0xba2   :  { %v10359_v45 = vpop.f32.mrf.mxu1  ;;  %v2741_v58 = vadd.f32 %v2740_v1, %v2664_v53  ;;  %v447_v1 = vadd.f32 %v11505_v40, %v327_v22 }
 0xba4   :  { %v574_v29 = vadd.f32 %v11507_v43, %v447_v1 }
 0xba6   :  { %v696_v46 = vadd.f32 %v11521_v7, %v574_v29 }
 0xba8   :  { %v2823_v4 = vpop.f32.mrf.mxu0  ;;  %v810_v26 = vadd.f32 %v11525_v10, %v696_v46 }
 0xba9   :  { %v2824_v60 = vadd.f32 %v2823_v4, %v2741_v58 }
 0xbaa   :  { %v10348_v9 = vpop.f32.mrf.mxu0 }
 0xbab   :  { %v2899_v11 = vadd.f32 %v2898_v27, %v2824_v60 }
 0xbad   :  { %v2907_v36 = vadd.f32 %v2899_v11, %v11704_v5  ;;  %v2902_v27 = vadd.f32 %v2899_v11, %v810_v26 }
 0xbaf   :  { %2909 = vrot.lane.b32.xlu0 %v2907_v36, %s11298_s18  ;;  %v2903_v47 = vmul.f32 0.5, %v2902_v27 }
 0xbb1   :  { %11227 = vtanh.f32 %v2903_v47 }
 0xbbe   :  { %v11228_v56 = vpop.eup %11227 }
 0xbbf   :  { %v2905_v45 = vmul.f32 0.5, %v11228_v56 }
 0xbc1   :  { %v2906_v53 = vadd.f32 0.5, %v2905_v45 }
 0xbc3   :  { %v2919_v43 = vsub.f32 1.0, %v2906_v53  ;;  %v2925_v10 = vmul.f32 %v2906_v53, %v11898_v63 }
 0xc21   :  { %v2910_v58 = vpop.permute.xlu0 %2909 }
 0xc22   :  { %v2912_v4 = vmul.f32 %v2910_v58, %v2906_v53 }
 0xc24   :  { %2914 = vrot.lane.b32.xlu1 %v2912_v4, %s11298_s18 }
 0xc96   :  { %v2915_v15 = vpop.permute.xlu1 %2914 }
 0xc97   :  { %v2917_v17 = vadd.f32 %v2915_v15, %v810_v26 }
 0xc99   :  { %11229 = vtanh.f32 %v2917_v17 }
 0xca6   :  { %v11230_v40 = vpop.eup %11229 }
 0xca7   :  { %2921 = vrot.lane.b32.xlu0 %v11230_v40, %s11300_s4 }
 0xd19   :  { %v2922_v7 = vpop.permute.xlu0 %2921 }
 0xd1a   :  { %v2924_v60 = vmul.f32 %v2922_v7, %v2919_v43 }
 0xd1c   :  { %v11998_v9 = vadd.f32 %v2925_v10, %v2924_v60 }
 0xd1e   :  { %2928 = vrot.lane.b32.xlu1 %v11998_v9, %s11300_s4 }
 0xd90   :  { %v2929_v11 = vpop.permute.xlu1 %2928 }
 0xd91   :  { %v2930_v36 = vsel %vm866_vm3, %v2929_v11, 0 }
 0xd92   :  { %v12003_v3 = vand.u32 4294901760, %v2930_v36 }
 0xd94   :  { %v12006_v22 = vsub.f32 %v2930_v36, %v12003_v3  ;;  %10380 = vmatmul.mubr.f32.vlgmr.msra.gmra.mxu1 %v12003_v3 }
 0xd95   :  { %10394 = vmatpush3.msra.mxu1 %v11544_v31  ;;  %10401 = vmatprep.mubr.msk.f32.mxu1 %vm11301_vm2, %v13125_v30 }
 0xd96   :  { %10395 = vmatprep.subr.mxu1 %v13125_v30  ;;  %v12014_v63 = vand.u32 4294901760, %v12006_v22 }
 0xd97   :  { %10396 = vmatpush3.msra.mxu1 %v11546_v32 }
 0xd98   :  { %10397 = vmatprep.subr.mxu1 %v13125_v30  ;;  %v3004_v1 = vsub.f32 %v12006_v22, %v12014_v63 }
 0xd99   :  { %10398 = vmatpush3.msra.mxu1 %v11548_v34 }
 0xd9a   :  { %10399 = vmatprep.subr.mxu1 %v13125_v30  ;;  %v12022_v29 = vand.u32 4294901760, %v3004_v1 }
 0xd9b   :  { %10400 = vmatpush3.msra.mxu1 %v11596_v54 }
 0xd9c   :  { %10402 = vmatmul.mubr.f32.vlgmr.msra.gmra.mxu1 %v12014_v63  ;;  %10415 = vmatprep.subr.mxu1 %v13125_v30 }
 0xd9d   :  { %10369 = vmatmul.mubr.f32.vlgmr.msra.gmra.mxu0 %v12022_v29  ;;  %10416 = vmatpush3.msra.mxu1 %v11544_v31 }
 0xd9e   :  { %10383 = vmatpush3.msra.mxu0 %v11552_v35  ;;  %10417 = vmatprep.subr.mxu1 %v13125_v30 }
 0xd9f   :  { %10384 = vmatprep.subr.mxu0 %v13125_v30  ;;  %10418 = vmatpush3.msra.mxu1 %v11546_v32 }
 0xda0   :  { %10385 = vmatpush3.msra.mxu0 %v11555_v37  ;;  %10419 = vmatprep.subr.mxu1 %v13125_v30 }
 0xda1   :  { %10386 = vmatprep.subr.mxu0 %v13125_v30  ;;  %10420 = vmatpush3.msra.mxu1 %v11548_v34 }
 0xda2   :  { %10387 = vmatpush3.msra.mxu0 %v11558_v38  ;;  %10421 = vmatprep.subr.mxu1 %v13125_v30 }
 0xda3   :  { %10388 = vmatprep.subr.mxu0 %v13125_v30  ;;  %10390 = vmatprep.mubr.msk.f32.mxu0 %vm11301_vm2, %v13125_v30 }
 0xda4   :  { %10389 = vmatpush3.msra.mxu0 %v11599_v55  ;;  %10422 = vmatpush3.msra.mxu1 %v11596_v54 }
 0xda5   :  { %10423 = vmatprep.mubr.msk.f32.mxu1 %vm11301_vm2, %v13125_v30  ;;  %10391 = vmatmul.mubr.f32.vlgmr.msra.gmra.mxu0 %v12006_v22 }
 0xda6   :  { %10404 = vmatprep.subr.mxu0 %v13125_v30  ;;  %10424 = vmatmul.mubr.f32.vlgmr.msra.gmra.mxu1 %v12003_v3 }
 0xda7   :  { %10405 = vmatpush3.msra.mxu0 %v11562_v39  ;;  %10412 = vmatprep.mubr.msk.f32.mxu0 %vm11301_vm2, %v13125_v30 }
 0xda8   :  { %10406 = vmatprep.subr.mxu0 %v13125_v30  ;;  %10437 = vmatprep.subr.mxu1 %v13125_v30 }
 0xda9   :  { %10407 = vmatpush3.msra.mxu0 %v11565_v41  ;;  %10438 = vmatpush3.msra.mxu1 %v11581_v49 }
 0xdaa   :  { %10408 = vmatprep.subr.mxu0 %v13125_v30  ;;  %10439 = vmatprep.subr.mxu1 %v13125_v30 }
 0xdab   :  { %10409 = vmatpush3.msra.mxu0 %v11569_v42  ;;  %10440 = vmatpush3.msra.mxu1 %v11583_v51 }
 0xdac   :  { %10410 = vmatprep.subr.mxu0 %v13125_v30  ;;  %10441 = vmatprep.subr.mxu1 %v13125_v30 }
 0xdad   :  { %10411 = vmatpush3.msra.mxu0 %v11604_v57  ;;  %10442 = vmatpush3.msra.mxu1 %v11586_v52 }
 0xdae   :  { %10413 = vmatmul.mubr.f32.vlgmr.msra.gmra.mxu0 %v12003_v3  ;;  %10443 = vmatprep.subr.mxu1 %v13125_v30 }
 0xdaf   :  { %10444 = vmatpush3.msra.mxu1 %v11608_v59  ;;  %10426 = vmatprep.subr.mxu0 %v13125_v30 }
 0xdb0   :  { %10445 = vmatprep.mubr.msk.f32.mxu1 %vm11301_vm2, %v13125_v30  ;;  %10459 = vmatprep.subr.mxu1 %v13125_v30 }
 0xdb1   :  { %10427 = vmatpush3.msra.mxu0 %v11544_v31  ;;  %10434 = vmatprep.mubr.msk.f32.mxu0 %vm11301_vm2, %v13125_v30 }
 0xdb2   :  { %10428 = vmatprep.subr.mxu0 %v13125_v30 }
 0xdb3   :  { %10429 = vmatpush3.msra.mxu0 %v11546_v32 }
 0xdb4   :  { %10430 = vmatprep.subr.mxu0 %v13125_v30 }
 0xdb5   :  { %10431 = vmatpush3.msra.mxu0 %v11548_v34 }
 0xdb6   :  { %10432 = vmatprep.subr.mxu0 %v13125_v30 }
 0xdb7   :  { %10433 = vmatpush3.msra.mxu0 %v11596_v54 }
 0xdb8   :  { %10448 = vmatprep.subr.mxu0 %v13125_v30 }
 0xe54   :  { %v3098_v46 = vpop.f32.mrf.mxu1 }
 0xe56   :  { %v10381_v26 = vpop.f32.mrf.mxu1 }
 0xe5c   :  { %v3255_v27 = vpop.f32.mrf.mxu1 }
 0xe5d   :  { %v3007_v47 = vpop.f32.mrf.mxu0 }
 0xe5e   :  { %v10403_v56 = vpop.f32.mrf.mxu1  ;;  %v3099_v4 = vadd.f32 %v3098_v46, %v3007_v47 }
 0xe5f   :  { %v10370_v45 = vpop.f32.mrf.mxu0 }
 0xe65   :  { %v3178_v53 = vpop.f32.mrf.mxu0 }
 0xe66   :  { %v3413_v58 = vpop.f32.mrf.mxu1  ;;  %v3179_v40 = vadd.f32 %v3178_v53, %v3099_v4 }
 0xe67   :  { %v10392_v15 = vpop.f32.mrf.mxu0 }
 0xe68   :  { %v10425_v17 = vpop.f32.mrf.mxu1  ;;  %v3256_v43 = vadd.f32 %v3255_v27, %v3179_v40 }
 0xe6e   :  { %v3338_v7 = vpop.f32.mrf.mxu0 }
 0xe6f   :  { %v3339_v10 = vadd.f32 %v3338_v7, %v3256_v43 }
 0xe70   :  { %v10414_v60 = vpop.f32.mrf.mxu0 }
 0xe71   :  { %v3414_v11 = vadd.f32 %v3413_v58, %v3339_v10 }
 0xe73   :  { %v3422_v36 = vadd.f32 %v3414_v11, %v11704_v5  ;;  %v3417_v1 = vadd.f32 %v3414_v11, %v11523_v8  ;;  %v13130_v11 = vmov 0.0  }
 0xe75   :  { %3424 = vrot.lane.b32.xlu0 %v3422_v36, %s11298_s18  ;;  %v3418_v26 = vmul.f32 0.5, %v3417_v1 }
 0xe77   :  { %11231 = vtanh.f32 %v3418_v26 }
 0xe84   :  { %v11232_v56 = vpop.eup %11231 }
 0xe85   :  { %v3420_v45 = vmul.f32 0.5, %v11232_v56 }
 0xe87   :  { %v3421_v30 = vadd.f32 0.5, %v3420_v45 }
 0xe89   :  { %v3434_v4 = vsub.f32 1.0, %v3421_v30  ;;  %v3440_v17 = vmul.f32 %v3421_v30, %v11998_v9 }
 0xee7   :  { %v3425_v46 = vpop.permute.xlu0 %3424 }
 0xee8   :  { %v3427_v47 = vmul.f32 %v3425_v46, %v3421_v30 }
 0xeea   :  { %3429 = vrot.lane.b32.xlu1 %v3427_v47, %s11298_s18 }
 0xf5c   :  { %v3430_v27 = vpop.permute.xlu1 %3429 }
 0xf5d   :  { %v3432_v53 = vadd.f32 %v3430_v27, %v11523_v8 }
 0xf5f   :  { %11233 = vtanh.f32 %v3432_v53 }
 0xf6c   :  { %v11234_v58 = vpop.eup %11233 }
 0xf6d   :  { %3436 = vrot.lane.b32.xlu0 %v11234_v58, %s11300_s4 }
 0xfdf   :  { %v3437_v15 = vpop.permute.xlu0 %3436 }
 0xfe0   :  { %v3439_v40 = vmul.f32 %v3437_v15, %v3434_v4 }
 0xfe2   :  { %v12088_v43 = vadd.f32 %v3440_v17, %v3439_v40 }
 0xfe4   :  { %3443 = vrot.lane.b32.xlu1 %v12088_v43, %s11300_s4 }
0x1056   :  { %v3444_v7 = vpop.permute.xlu1 %3443 }
0x1057   :  { %v3445_v10 = vsel %vm866_vm3, %v3444_v7, 0 }
0x1058   :  { %v12093_v60 = vand.u32 4294901760, %v3445_v10 }
0x105a   :  { %v12096_v8 = vsub.f32 %v3445_v10, %v12093_v60  ;;  %10446 = vmatmul.mubr.f32.vlgmr.msra.gmra.mxu1 %v12093_v60  ;;  %v217_v10 = vadd.f32 %v11986_v61, %v11496_v21 }
0x105b   :  { %10460 = vmatpush3.msra.mxu1 %v11544_v31  ;;  %10467 = vmatprep.mubr.msk.f32.mxu1 %vm11301_vm2, %v13130_v11 }
0x105c   :  { %10461 = vmatprep.subr.mxu1 %v13130_v11  ;;  %v12104_v30 = vand.u32 4294901760, %v12096_v8 }
0x105d   :  { %10462 = vmatpush3.msra.mxu1 %v11546_v32 }
0x105e   :  { %10463 = vmatprep.subr.mxu1 %v13130_v11  ;;  %v3519_v9 = vsub.f32 %v12096_v8, %v12104_v30 }
0x105f   :  { %10464 = vmatpush3.msra.mxu1 %v11548_v34 }
0x1060   :  { %10465 = vmatprep.subr.mxu1 %v13130_v11  ;;  %v12112_v36 = vand.u32 4294901760, %v3519_v9  ;;  %v339_v9 = vadd.f32 %v11498_v23, %v217_v10  ;;  %v4473_v10 = vld [vmem:[%s13115_s5 + $0x8] sm:$0xff] }
0x1061   :  { %10466 = vmatpush3.msra.mxu1 %v11596_v54 }
0x1062   :  { %10468 = vmatmul.mubr.f32.vlgmr.msra.gmra.mxu1 %v12104_v30  ;;  %10481 = vmatprep.subr.mxu1 %v13130_v11 }
0x1063   :  { %10435 = vmatmul.mubr.f32.vlgmr.msra.gmra.mxu0 %v12112_v36  ;;  %10482 = vmatpush3.msra.mxu1 %v11544_v31 }
0x1064   :  { %10449 = vmatpush3.msra.mxu0 %v11552_v35  ;;  %10483 = vmatprep.subr.mxu1 %v13130_v11 }
0x1065   :  { %10450 = vmatprep.subr.mxu0 %v13130_v11  ;;  %10484 = vmatpush3.msra.mxu1 %v11546_v32 }
0x1066   :  { %10451 = vmatpush3.msra.mxu0 %v11555_v37  ;;  %10485 = vmatprep.subr.mxu1 %v13130_v11 }
0x1067   :  { %10452 = vmatprep.subr.mxu0 %v13130_v11  ;;  %10486 = vmatpush3.msra.mxu1 %v11548_v34 }
0x1068   :  { %10453 = vmatpush3.msra.mxu0 %v11558_v38  ;;  %10487 = vmatprep.subr.mxu1 %v13130_v11 }
0x1069   :  { %10454 = vmatprep.subr.mxu0 %v13130_v11  ;;  %10456 = vmatprep.mubr.msk.f32.mxu0 %vm11301_vm2, %v13130_v11 }
0x106a   :  { %10455 = vmatpush3.msra.mxu0 %v11599_v55  ;;  %10488 = vmatpush3.msra.mxu1 %v11596_v54 }
0x106b   :  { %10489 = vmatprep.mubr.msk.f32.mxu1 %vm11301_vm2, %v13130_v11  ;;  %10457 = vmatmul.mubr.f32.vlgmr.msra.gmra.mxu0 %v12096_v8 }
0x106c   :  { %10470 = vmatprep.subr.mxu0 %v13130_v11  ;;  %10490 = vmatmul.mubr.f32.vlgmr.msra.gmra.mxu1 %v12093_v60 }
0x106d   :  { %10471 = vmatpush3.msra.mxu0 %v11562_v39  ;;  %10478 = vmatprep.mubr.msk.f32.mxu0 %vm11301_vm2, %v13130_v11 }
0x106e   :  { %10472 = vmatprep.subr.mxu0 %v13130_v11  ;;  %10503 = vmatprep.subr.mxu1 %v13130_v11 }
0x106f   :  { %10473 = vmatpush3.msra.mxu0 %v11565_v41  ;;  %10504 = vmatpush3.msra.mxu1 %v11581_v49 }
0x1070   :  { %10474 = vmatprep.subr.mxu0 %v13130_v11  ;;  %10505 = vmatprep.subr.mxu1 %v13130_v11 }
0x1071   :  { %10475 = vmatpush3.msra.mxu0 %v11569_v42  ;;  %10506 = vmatpush3.msra.mxu1 %v11583_v51 }
0x1072   :  { %10476 = vmatprep.subr.mxu0 %v13130_v11  ;;  %10507 = vmatprep.subr.mxu1 %v13130_v11 }
0x1073   :  { %10477 = vmatpush3.msra.mxu0 %v11604_v57  ;;  %10508 = vmatpush3.msra.mxu1 %v11586_v52 }
0x1074   :  { %10479 = vmatmul.mubr.f32.vlgmr.msra.gmra.mxu0 %v12093_v60  ;;  %10509 = vmatprep.subr.mxu1 %v13130_v11 }
0x1075   :  { %10510 = vmatpush3.msra.mxu1 %v11608_v59  ;;  %10492 = vmatprep.subr.mxu0 %v13130_v11 }
0x1076   :  { %10511 = vmatprep.mubr.msk.f32.mxu1 %vm11301_vm2, %v13130_v11  ;;  %10525 = vmatprep.subr.mxu1 %v13130_v11 }
0x1077   :  { %10493 = vmatpush3.msra.mxu0 %v11544_v31  ;;  %10500 = vmatprep.mubr.msk.f32.mxu0 %vm11301_vm2, %v13130_v11 }
0x1078   :  { %10494 = vmatprep.subr.mxu0 %v13130_v11 }
0x1079   :  { %10495 = vmatpush3.msra.mxu0 %v11546_v32 }
0x107a   :  { %10496 = vmatprep.subr.mxu0 %v13130_v11 }
0x107b   :  { %10497 = vmatpush3.msra.mxu0 %v11548_v34 }
0x107c   :  { %10498 = vmatprep.subr.mxu0 %v13130_v11 }
0x107d   :  { %10499 = vmatpush3.msra.mxu0 %v11596_v54 }
0x107e   :  { %10514 = vmatprep.subr.mxu0 %v13130_v11 }
0x111a   :  { %v3613_v49 = vpop.f32.mrf.mxu1 }
0x111c   :  { %v10447_v51 = vpop.f32.mrf.mxu1 }
0x111d   :  { %v461_v51 = vadd.f32 %v11509_v48, %v339_v9 }
0x1122   :  { %v3770_v52 = vpop.f32.mrf.mxu1 }
0x1123   :  { %v3522_v59 = vpop.f32.mrf.mxu0 }
0x1124   :  { %v10469_v1 = vpop.f32.mrf.mxu1  ;;  %v3614_v46 = vadd.f32 %v3613_v49, %v3522_v59  ;;  %v590_v49 = vadd.f32 %v11511_v50, %v461_v51 }
0x1125   :  { %v10436_v26 = vpop.f32.mrf.mxu0 }
0x1126   :  { %v708_v59 = vadd.f32 %v11702_v25, %v590_v49  ;;  %v4472_v49 = vld [vmem:[%s13115_s5] sm:$0xff] }
0x112b   :  { %v3693_v56 = vpop.f32.mrf.mxu0 }
0x112c   :  { %v3928_v45 = vpop.f32.mrf.mxu1  ;;  %v3694_v53 = vadd.f32 %v3693_v56, %v3614_v46 }
0x112d   :  { %v10458_v47 = vpop.f32.mrf.mxu0 }
0x112e   :  { %v10491_v27 = vpop.f32.mrf.mxu1  ;;  %v3771_v58 = vadd.f32 %v3770_v52, %v3694_v53  ;;  %v822_v52 = vadd.f32 %v11700_v20, %v708_v59 }
0x1134   :  { %v3853_v4 = vpop.f32.mrf.mxu0 }
0x1135   :  { %v3854_v15 = vadd.f32 %v3853_v4, %v3771_v58  ;;  %v4475_v4 = vld [vmem:[%s13115_s5 + $0x18] sm:$0xff] }
0x1136   :  { %v10480_v17 = vpop.f32.mrf.mxu0 }
0x1137   :  { %v3929_v40 = vadd.f32 %v3928_v45, %v3854_v15 }
0x1139   :  { %v3937_v7 = vadd.f32 %v3929_v40, %v11704_v5  ;;  %v3932_v1 = vadd.f32 %v3929_v40, %v822_v52  ;;  %v4474_v40 = vld [vmem:[%s13115_s5 + $0x10] sm:$0xff] }
0x113a   :  { %v12208_v9 = vand.u32 4294901760, %v4474_v40 }
0x113b   :  { %3939 = vrot.lane.b32.xlu0 %v3937_v7, %s11298_s18  ;;  %v3933_v26 = vmul.f32 0.5, %v3932_v1 }
0x113d   :  { %11235 = vtanh.f32 %v3933_v26  ;;  %v12228_v26 = vsub.f32 %v4474_v40, %v12208_v9 }
0x114a   :  { %v11236_v56 = vpop.eup %11235 }
0x114b   :  { %v3935_v45 = vmul.f32 0.5, %v11236_v56  ;;  %v12230_v56 = vand.u32 4294901760, %v4472_v49 }
0x114d   :  { %v3936_v46 = vadd.f32 0.5, %v3935_v45 }
0x114f   :  { %v3949_v50 = vsub.f32 1.0, %v3936_v46  ;;  %v3955_v20 = vmul.f32 %v3936_v46, %v12088_v43  ;;  %v12196_v43 = vand.u32 4294901760, %v4475_v4 }
0x1151   :  { %v12219_v59 = vsub.f32 %v4475_v4, %v12196_v43 }
0x11ad   :  { %v3940_v47 = vpop.permute.xlu0 %3939 }
0x11ae   :  { %v3942_v27 = vmul.f32 %v3940_v47, %v3936_v46  ;;  %v12237_v46 = vand.u32 4294901760, %v12219_v59 }
0x11b0   :  { %3944 = vrot.lane.b32.xlu1 %v3942_v27, %s11298_s18  ;;  %v12247_v27 = vand.u32 4294901760, %v12228_v26 }
0x1222   :  { %v3945_v21 = vpop.permute.xlu1 %3944 }
0x1223   :  { %v3947_v23 = vadd.f32 %v3945_v21, %v822_v52  ;;  %v12221_v52 = vand.u32 4294901760, %v4473_v10  ;;  %v12250_v21 = vsub.f32 %v4472_v49, %v12230_v56 }
0x1225   :  { %11237 = vtanh.f32 %v3947_v23  ;;  %v12240_v47 = vsub.f32 %v4473_v10, %v12221_v52  ;;  %v4665_v23 = vsub.f32 %v12219_v59, %v12237_v46 }
0x1232   :  { %v11238_v48 = vpop.eup %11237 }
0x1233   :  { %3951 = vrot.lane.b32.xlu0 %v11238_v48, %s11300_s4  ;;  %v12259_v48 = vand.u32 4294901760, %v12240_v47 }
0x12a5   :  { %v3952_v25 = vpop.permute.xlu0 %3951 }
0x12a6   :  { %v3954_v61 = vmul.f32 %v3952_v25, %v3949_v50 }
0x12a8   :  { %v12183_v53 = vadd.f32 %v3955_v20, %v3954_v61 }
0x12aa   :  { %3958 = vrot.lane.b32.xlu1 %v12183_v53, %s11300_s4 }
0x131c   :  { %v3959_v58 = vpop.permute.xlu1 %3958 }
0x131d   :  { %v3960_v15 = vsel %vm866_vm3, %v3959_v58, 0 }
0x131e   :  { %v12191_v17 = vand.u32 4294901760, %v3960_v15 }
0x1320   :  { %v12199_v7 = vsub.f32 %v3960_v15, %v12191_v17  ;;  %10512 = vmatmul.mubr.f32.vlgmr.msra.gmra.mxu1 %v12191_v17 }
0x1321   :  { %10526 = vmatpush3.msra.mxu1 %v11544_v31  ;;  %10533 = vmatprep.mubr.msk.f32.mxu1 %vm11301_vm2, %v13130_v11 }
0x1322   :  { %10527 = vmatprep.subr.mxu1 %v13130_v11  ;;  %v12212_v51 = vand.u32 4294901760, %v12199_v7 }
0x1323   :  { %10528 = vmatpush3.msra.mxu1 %v11546_v32 }
0x1324   :  { %10529 = vmatprep.subr.mxu1 %v13130_v11  ;;  %v4034_v1 = vsub.f32 %v12199_v7, %v12212_v51 }
0x1325   :  { %10530 = vmatpush3.msra.mxu1 %v11548_v34 }
0x1326   :  { %10531 = vmatprep.subr.mxu1 %v13130_v11  ;;  %v12233_v45 = vand.u32 4294901760, %v4034_v1 }
0x1327   :  { %10532 = vmatpush3.msra.mxu1 %v11596_v54 }
0x1328   :  { %10534 = vmatmul.mubr.f32.vlgmr.msra.gmra.mxu1 %v12212_v51  ;;  %10547 = vmatprep.subr.mxu1 %v13130_v11 }
0x1329   :  { %10501 = vmatmul.mubr.f32.vlgmr.msra.gmra.mxu0 %v12233_v45  ;;  %10548 = vmatpush3.msra.mxu1 %v11544_v31  ;;  %v4672_v31 = vsub.f32 %v12228_v26, %v12247_v27 }
0x132a   :  { %10515 = vmatpush3.msra.mxu0 %v11552_v35  ;;  %10549 = vmatprep.subr.mxu1 %v13130_v11  ;;  %v12268_v35 = vand.u32 4294901760, %v12250_v21 }
0x132b   :  { %10516 = vmatprep.subr.mxu0 %v13130_v11  ;;  %10550 = vmatpush3.msra.mxu1 %v11546_v32  ;;  %v4666_v32 = vand.u32 4294901760, %v4665_v23 }
0x132c   :  { %10517 = vmatpush3.msra.mxu0 %v11555_v37  ;;  %10551 = vmatprep.subr.mxu1 %v13130_v11  ;;  %v4679_v37 = vsub.f32 %v12240_v47, %v12259_v48 }
0x132d   :  { %10518 = vmatprep.subr.mxu0 %v13130_v11  ;;  %10552 = vmatpush3.msra.mxu1 %v11548_v34  ;;  %v4673_v34 = vand.u32 4294901760, %v4672_v31 }
0x132e   :  { %10519 = vmatpush3.msra.mxu0 %v11558_v38  ;;  %10553 = vmatprep.subr.mxu1 %v13130_v11  ;;  %v4686_v38 = vsub.f32 %v12250_v21, %v12268_v35  ;;  %v4680_v50 = vand.u32 4294901760, %v4679_v37 }
0x132f   :  { %10520 = vmatprep.subr.mxu0 %v13130_v11  ;;  %10522 = vmatprep.mubr.msk.f32.mxu0 %vm11301_vm2, %v13130_v11 }
0x1330   :  { %10521 = vmatpush3.msra.mxu0 %v11599_v55  ;;  %10554 = vmatpush3.msra.mxu1 %v11596_v54  ;;  %v4687_v54 = vand.u32 4294901760, %v4686_v38 }
0x1331   :  { %10555 = vmatprep.mubr.msk.f32.mxu1 %vm11301_vm2, %v13130_v11  ;;  %10523 = vmatmul.mubr.f32.vlgmr.msra.gmra.mxu0 %v12199_v7 }
0x1332   :  { %10536 = vmatprep.subr.mxu0 %v13130_v11  ;;  %10556 = vmatmul.mubr.f32.vlgmr.msra.gmra.mxu1 %v12191_v17 }
0x1333   :  { %10578 = vmatprep.subr.mxu1 %v4666_v32  ;;  %10537 = vmatpush3.msra.mxu0 %v11562_v39 }
0x1334   :  { %10579 = vmatpush3.msra.mxu1 %v4666_v32  ;;  %10586 = vmatprep.mubr.f32.mxu1 %v11622_v12 }
0x1335   :  { %10538 = vmatprep.subr.mxu0 %v13130_v11  ;;  %10580 = vmatprep.subr.mxu1 %v4673_v34 }
0x1336   :  { %10539 = vmatpush3.msra.mxu0 %v11565_v41  ;;  %10581 = vmatpush3.msra.mxu1 %v4673_v34 }
0x1337   :  { %10540 = vmatprep.subr.mxu0 %v13130_v11  ;;  %10582 = vmatprep.subr.mxu1 %v4680_v50 }
0x1338   :  { %10541 = vmatpush3.msra.mxu0 %v11569_v42  ;;  %10583 = vmatpush3.msra.mxu1 %v4680_v50 }
0x1339   :  { %10542 = vmatprep.subr.mxu0 %v13130_v11  ;;  %10584 = vmatprep.subr.mxu1 %v4687_v54 }
0x133a   :  { %10543 = vmatpush3.msra.mxu0 %v11604_v57  ;;  %10544 = vmatprep.mubr.msk.f32.mxu0 %vm11301_vm2, %v13130_v11 }
0x133b   :  { %10585 = vmatpush3.msra.mxu1 %v4687_v54  ;;  %10545 = vmatmul.mubr.f32.vlgmr.msra.gmra.mxu0 %v12191_v17 }
0x133c   :  { %10558 = vmatprep.subr.mxu0 %v12196_v43  ;;  %10587 = vmatmul.mubr.f32.vlgmr.msra.gmra.mxu1 %v11718_v18 }
0x133d   :  { %10559 = vmatpush3.msra.mxu0 %v12196_v43  ;;  %10566 = vmatprep.mubr.f32.mxu0 %v11641_v19 }
0x133e   :  { %10589 = vmatprep.mubr.f32.mxu1 %v11813_v6  ;;  %10560 = vmatprep.subr.mxu0 %v12208_v9 }
0x133f   :  { %10561 = vmatpush3.msra.mxu0 %v12208_v9  ;;  %10618 = vmatprep.subr.mxu1 %v12196_v43 }
0x1340   :  { %10562 = vmatprep.subr.mxu0 %v12221_v52  ;;  %10590 = vmatmul.mubr.f32.gmra.mxu1 %v11903_v33 }
0x1341   :  { %10563 = vmatpush3.msra.mxu0 %v12221_v52  ;;  %10592 = vmatprep.mubr.f32.mxu1 %v12003_v3 }
0x1342   :  { %10564 = vmatprep.subr.mxu0 %v12230_v56  ;;  %10619 = vmatpush3.msra.mxu1 %v12196_v43 }
0x1343   :  { %10565 = vmatpush3.msra.mxu0 %v12230_v56  ;;  %10620 = vmatprep.subr.mxu1 %v12208_v9 }
0x1344   :  { %10567 = vmatmul.mubr.f32.vlgmr.msra.gmra.mxu0 %v11737_v28  ;;  %10593 = vmatmul.mubr.f32.gmra.mxu1 %v12093_v60 }
0x1345   :  { %10569 = vmatprep.mubr.f32.mxu0 %v11832_v44  ;;  %10595 = vmatprep.mubr.f32.mxu1 %v12191_v17 }
0x1346   :  { %10598 = vmatprep.subr.mxu0 %v12219_v59  ;;  %10621 = vmatpush3.msra.mxu1 %v12208_v9 }
0x1347   :  { %10599 = vmatpush3.msra.mxu0 %v12219_v59  ;;  %10622 = vmatprep.subr.mxu1 %v12221_v52  ;;  %v12343_v59 = vld [vmem:[%s13117_s7] ss:$0 sm:$0xff] }
0x1348   :  { %10570 = vmatmul.mubr.f32.gmra.mxu0 %v11922_v0  ;;  %10600 = vmatprep.subr.mxu0 %v12228_v26 }
0x1349   :  { %10572 = vmatprep.mubr.f32.mxu0 %v12022_v29  ;;  %10601 = vmatpush3.msra.mxu0 %v12228_v26 }
0x134a   :  { %10623 = vmatpush3.msra.mxu1 %v12221_v52  ;;  %10602 = vmatprep.subr.mxu0 %v12240_v47 }
0x134b   :  { %10624 = vmatprep.subr.mxu1 %v12230_v56  ;;  %10603 = vmatpush3.msra.mxu0 %v12240_v47 }
0x134c   :  { %10573 = vmatmul.mubr.f32.gmra.mxu0 %v12112_v36  ;;  %10625 = vmatpush3.msra.mxu1 %v12230_v56 }
0x134d   :  { %10575 = vmatprep.mubr.f32.mxu0 %v12233_v45  ;;  %10604 = vmatprep.subr.mxu0 %v12250_v21 }
0x134e   :  { %10605 = vmatpush3.msra.mxu0 %v12250_v21  ;;  %10658 = vmatprep.subr.mxu1 %v12196_v43 }
0x134f   :  { %10638 = vmatprep.subr.mxu0 %v12237_v46 }
0x13e0   :  { %v4128_v39 = vpop.f32.mrf.mxu1 }
0x13e2   :  { %v10513_v41 = vpop.f32.mrf.mxu1 }
0x13e8   :  { %v4285_v42 = vpop.f32.mrf.mxu1 }
0x13e9   :  { %v4037_v55 = vpop.f32.mrf.mxu0 }
0x13ea   :  { %v10535_v57 = vpop.f32.mrf.mxu1  ;;  %v4129_v29 = vadd.f32 %v4128_v39, %v4037_v55 }
0x13eb   :  { %v10502_v19 = vpop.f32.mrf.mxu0 }
0x13f1   :  { %v4208_v28 = vpop.f32.mrf.mxu0 }
0x13f2   :  { %v4443_v44 = vpop.f32.mrf.mxu1  ;;  %v4209_v25 = vadd.f32 %v4208_v28, %v4129_v29 }
0x13f3   :  { %v10524_v0 = vpop.f32.mrf.mxu0 }
0x13f4   :  { %v10557_v36 = vpop.f32.mrf.mxu1  ;;  %v4286_v20 = vadd.f32 %v4285_v42, %v4209_v25 }
0x13fb   :  { %v4368_v61 = vpop.f32.mrf.mxu0 }
0x13fc   :  { %v4369_v58 = vadd.f32 %v4368_v61, %v4286_v20  ;;  %v10588_v40 = vpop.f32.mrf.mxu1 }
0x13fd   :  { %v10546_v4 = vpop.f32.mrf.mxu0 }
0x13fe   :  { %v4444_v15 = vadd.f32 %v4443_v44, %v4369_v58  ;;  %v12337_v49 = vpop.f32.mrf.mxu1 }
0x1400   :  { %v4452_v10 = vadd.f32 %v4444_v15, %v11704_v5  ;;  %v10591_v45 = vpop.f32.mrf.mxu1  ;;  %v4447_v42 = vadd.f32 %v4444_v15, %v11527_v16 }
0x1402   :  { %4454 = vrot.lane.b32.xlu0 %v4452_v10, %s11298_s18  ;;  %v4736_v31 = vpop.f32.mrf.mxu1  ;;  %v4448_v55 = vmul.f32 0.5, %v4447_v42 }
0x1404   :  { %v10568_v1 = vpop.f32.mrf.mxu0  ;;  %v10594_v39 = vpop.f32.mrf.mxu1  ;;  %11239 = vtanh.f32 %v4448_v55 }
0x1405   :  { %v4574_v26 = vadd.f32 %v10568_v1, %v12343_v59 }
0x1406   :  { %v12346_v47 = vpop.f32.mrf.mxu0 }
0x1407   :  { %v12348_v21 = vadd.f32 %v10588_v40, %v4574_v26 }
0x1408   :  { %v10571_v23 = vpop.f32.mrf.mxu0 }
0x1409   :  { %v4594_v5 = vadd.f32 %v10571_v23, %v12343_v59 }
0x140a   :  { %v4583_v32 = vpop.f32.mrf.mxu0 }
0x140b   :  { %v4584_v37 = vadd.f32 %v12343_v59, %v4583_v32  ;;  %v12352_v34 = vadd.f32 %v10591_v45, %v4594_v5  ;;  %v13131_v45 = vld [vmem:[#allocation7_spill] sm:$0xff]  ;;  %v13132_v5 = vld [vmem:[#allocation5_spill] sm:$0xff]  ;;  %v4564_v32 = vadd.f32 %v12343_v59, %v12346_v47 }
0x140c   :  { %v10574_v38 = vpop.f32.mrf.mxu0 }
0x140d   :  { %v4614_v50 = vadd.f32 %v10574_v38, %v12343_v59  ;;  %v12355_v54 = vadd.f32 %v4736_v31, %v4584_v37 }
0x140f   :  { %v12357_v41 = vadd.f32 %v10594_v39, %v4614_v50 }
0x1411   :  { %v11240_v57 = vpop.eup %11239 }
0x1412   :  { %v4450_v19 = vmul.f32 0.5, %v11240_v57 }
0x1414   :  { %v4451_v28 = vadd.f32 0.5, %v4450_v19 }
0x1416   :  { %v4464_v20 = vsub.f32 1.0, %v4451_v28  ;;  %v4470_v58 = vmul.f32 %v4451_v28, %v12183_v53 }
0x1474   :  { %v4455_v44 = vpop.permute.xlu0 %4454 }
0x1475   :  { %v4457_v0 = vmul.f32 %v4455_v44, %v4451_v28  ;;  %v4725_v28 = vadd.f32 %v12337_v49, %v4564_v32 }
0x1477   :  { %4459 = vrot.lane.b32.xlu1 %v4457_v0, %s11298_s18 }
0x14e9   :  { %v4460_v29 = vpop.permute.xlu1 %4459 }
0x14ea   :  { %v4462_v36 = vadd.f32 %v4460_v29, %v11527_v16 }
0x14ec   :  { %11241 = vtanh.f32 %v4462_v36 }
0x14f9   :  { %v11242_v25 = vpop.eup %11241 }
0x14fa   :  { %4466 = vrot.lane.b32.xlu0 %v11242_v25, %s11300_s4 }
0x156c   :  { %v4467_v61 = vpop.permute.xlu0 %4466 }
0x156d   :  { %v4469_v4 = vmul.f32 %v4467_v61, %v4464_v20 }
0x156f   :  { %v4471_v15 = vadd.f32 %v4470_v58, %v4469_v4 }
0x1571   :  { %4484 = vrot.lane.b32.xlu1 %v4471_v15, %s11300_s4 }
0x15e3   :  { %v4485_v40 = vpop.permute.xlu1 %4484 }
0x15e4   :  { %v4486_v10 = vsel %vm866_vm3, %v4485_v40, 0 }
0x15e5   :  { %v4627_v1 = vand.u32 4294901760, %v4486_v10 }
0x15e7   :  { %v4628_v26 = vsub.f32 %v4486_v10, %v4627_v1  ;;  %10596 = vmatmul.mubr.f32.gmra.mxu1 %v4627_v1 }
0x15e8   :  { %10626 = vmatprep.mubr.f32.mxu1 %v11633_v14  ;;  %v13133_v14 = vld [vmem:[#allocation6_spill] sm:$0xff] }
0x15e9   :  { %v4629_v16 = vand.u32 4294901760, %v4628_v26 }
0x15eb   :  { %10627 = vmatmul.mubr.f32.vlgmr.msra.gmra.mxu1 %v13131_v45  ;;  %v4630_v23 = vsub.f32 %v4628_v26, %v4629_v16 }
0x15ec   :  { %10629 = vmatprep.mubr.f32.mxu1 %v11824_v62  ;;  %10659 = vmatpush3.msra.mxu1 %v12196_v43  ;;  %v4603_v62 = vpop.f32.mrf.mxu0 }
0x15ed   :  { %v4631_v53 = vand.u32 4294901760, %v4630_v23  ;;  %10660 = vmatprep.subr.mxu1 %v12208_v9 }
0x15ee   :  { %10661 = vmatpush3.msra.mxu1 %v12208_v9 }
0x15ef   :  { %10576 = vmatmul.mubr.f32.gmra.mxu0 %v4631_v53  ;;  %10630 = vmatmul.mubr.f32.gmra.mxu1 %v11914_v13 }
0x15f0   :  { %10606 = vmatprep.mubr.f32.mxu0 %v13132_v5  ;;  %10632 = vmatprep.mubr.f32.mxu1 %v12014_v63 }
0x15f1   :  { %10662 = vmatprep.subr.mxu1 %v12221_v52 }
0x15f2   :  { %10663 = vmatpush3.msra.mxu1 %v12221_v52 }
0x15f3   :  { %10607 = vmatmul.mubr.f32.vlgmr.msra.gmra.mxu0 %v13133_v14  ;;  %10633 = vmatmul.mubr.f32.gmra.mxu1 %v12104_v30 }
0x15f4   :  { %10639 = vmatpush3.msra.mxu0 %v12237_v46  ;;  %10609 = vmatprep.mubr.f32.mxu0 %v11816_v24 }
0x15f5   :  { %10635 = vmatprep.mubr.f32.mxu1 %v12212_v51  ;;  %10640 = vmatprep.subr.mxu0 %v12247_v27 }
0x15f6   :  { %10641 = vmatpush3.msra.mxu0 %v12247_v27  ;;  %10664 = vmatprep.subr.mxu1 %v12230_v56  ;;  %v4604_v27 = vadd.f32 %v12343_v59, %v4603_v62 }
0x15f7   :  { %10610 = vmatmul.mubr.f32.gmra.mxu0 %v11906_v2  ;;  %10636 = vmatmul.mubr.f32.gmra.mxu1 %v4629_v16 }
0x15f8   :  { %10612 = vmatprep.mubr.f32.mxu0 %v12006_v22  ;;  %10666 = vmatprep.mubr.f32.mxu1 %v11622_v12 }
0x15f9   :  { %10642 = vmatprep.subr.mxu0 %v12259_v48  ;;  %10665 = vmatpush3.msra.mxu1 %v12230_v56 }
0x15fa   :  { %10643 = vmatpush3.msra.mxu0 %v12259_v48  ;;  %10689 = vmatprep.subr.mxu1 %v13130_v11 }
0x15fb   :  { %10613 = vmatmul.mubr.f32.gmra.mxu0 %v12096_v8  ;;  %10667 = vmatmul.mubr.f32.vlgmr.msra.gmra.mxu1 %v11718_v18 }
0x15fc   :  { %10615 = vmatprep.mubr.f32.mxu0 %v12199_v7  ;;  %10669 = vmatprep.mubr.f32.mxu1 %v11813_v6 }
0x15fd   :  { %10644 = vmatprep.subr.mxu0 %v12268_v35 }
0x15fe   :  { %10645 = vmatpush3.msra.mxu0 %v12268_v35 }
0x15ff   :  { %10616 = vmatmul.mubr.f32.gmra.mxu0 %v4628_v26  ;;  %10670 = vmatmul.mubr.f32.gmra.mxu1 %v11903_v33 }
0x1600   :  { %10646 = vmatprep.mubr.f32.mxu0 %v11622_v12  ;;  %10672 = vmatprep.mubr.f32.mxu1 %v12003_v3  ;;  %v4748_v12 = vpop.f32.mrf.mxu1 }
0x1601   :  { %10678 = vmatprep.subr.mxu0 %v13130_v11  ;;  %v4749_v42 = vadd.f32 %v4748_v12, %v4604_v27 }
0x1603   :  { %10647 = vmatmul.mubr.f32.vlgmr.msra.gmra.mxu0 %v11718_v18  ;;  %10673 = vmatmul.mubr.f32.gmra.mxu1 %v12093_v60 }
0x1604   :  { %10649 = vmatprep.mubr.f32.mxu0 %v11813_v6  ;;  %10675 = vmatprep.mubr.f32.mxu1 %v12191_v17 }
0x1607   :  { %10650 = vmatmul.mubr.f32.gmra.mxu0 %v11903_v33  ;;  %10676 = vmatmul.mubr.f32.gmra.mxu1 %v4627_v1 }
0x1608   :  { %10652 = vmatprep.mubr.f32.mxu0 %v12003_v3  ;;  %10697 = vmatprep.mubr.msk.f32.mxu1 %vm11301_vm2, %v13130_v11 }
0x160b   :  { %10653 = vmatmul.mubr.f32.gmra.mxu0 %v12093_v60 }
0x160c   :  { %10655 = vmatprep.mubr.f32.mxu0 %v12191_v17 }
0x160f   :  { %10656 = vmatmul.mubr.f32.gmra.mxu0 %v4627_v1 }
0x1610   :  { %10686 = vmatprep.mubr.msk.f32.mxu0 %vm11301_vm2, %v13130_v11 }
0x16a7   :  { %v10597_v18 = vpop.f32.mrf.mxu1 }
0x16a9   :  { %v4760_v6 = vpop.f32.mrf.mxu1 }
0x16ab   :  { %v10628_v24 = vpop.f32.mrf.mxu1 }
0x16ad   :  { %v4972_v33 = vpop.f32.mrf.mxu1 }
0x16af   :  { %v10577_v2 = vpop.f32.mrf.mxu0  ;;  %v10631_v13 = vpop.f32.mrf.mxu1 }
0x16b0   :  { %v4634_v3 = vadd.f32 %v10577_v2, %v12343_v59 }
0x16b1   :  { %v4623_v22 = vpop.f32.mrf.mxu0  ;;  %v4988_v63 = vpop.f32.mrf.mxu1 }
0x16b2   :  { %v4624_v60 = vadd.f32 %v12343_v59, %v4623_v22  ;;  %v4767_v8 = vadd.f32 %v10597_v18, %v4634_v3 }
0x16b3   :  { %v10608_v30 = vpop.f32.mrf.mxu0  ;;  %v10634_v17 = vpop.f32.mrf.mxu1 }
0x16b4   :  { %v4854_v43 = vadd.f32 %v10608_v30, %v12348_v21  ;;  %v4761_v7 = vadd.f32 %v4760_v6, %v4624_v60 }
0x16b5   :  { %v4846_v9 = vpop.f32.mrf.mxu0  ;;  %v5004_v51 = vpop.f32.mrf.mxu1 }
0x16b6   :  { %v4981_v52 = vadd.f32 %v10628_v24, %v4854_v43  ;;  %v4847_v29 = vadd.f32 %v4846_v9, %v4725_v28 }
0x16b7   :  { %v10611_v56 = vpop.f32.mrf.mxu0  ;;  %v10637_v46 = vpop.f32.mrf.mxu1 }
0x16b8   :  { %v4868_v48 = vadd.f32 %v10611_v56, %v12352_v34  ;;  %v4973_v4 = vadd.f32 %v4972_v33, %v4847_v29  ;;  %v5276_v56 = vld [vmem:[%s13116_s6 + $0x10] sm:$0xff] }
0x16b9   :  { %v4860_v35 = vpop.f32.mrf.mxu0  ;;  %v5020_v31 = vpop.f32.mrf.mxu1 }
0x16ba   :  { %v4861_v37 = vadd.f32 %v4860_v35, %v12355_v54  ;;  %v4997_v38 = vadd.f32 %v10631_v13, %v4868_v48  ;;  %v12453_v48 = vand.u32 4294901760, %v5276_v56 }
0x16bb   :  { %v10614_v50 = vpop.f32.mrf.mxu0  ;;  %v10668_v21 = vpop.f32.mrf.mxu1 }
0x16bc   :  { %v4882_v39 = vadd.f32 %v10614_v50, %v12357_v41  ;;  %v4989_v55 = vadd.f32 %v4988_v63, %v4861_v37  ;;  %v12462_v32 = vsub.f32 %v5276_v56, %v12453_v48 }
0x16bd   :  { %v4874_v57 = vpop.f32.mrf.mxu0  ;;  %v5228_v19 = vpop.f32.mrf.mxu1 }
0x16be   :  { %v4875_v44 = vadd.f32 %v4874_v57, %v4749_v42  ;;  %v5013_v34 = vadd.f32 %v10634_v17, %v4882_v39  ;;  %v9434_v17 = vld [vmem:[%s13118_s8] ss:$0 sm:$0xff]  ;;  %v12472_v50 = vand.u32 4294901760, %v12462_v32 }
0x16bf   :  { %v10617_v0 = vpop.f32.mrf.mxu0  ;;  %v10671_v59 = vpop.f32.mrf.mxu1 }
0x16c0   :  { %v4896_v36 = vadd.f32 %v10617_v0, %v4767_v8  ;;  %v5005_v25 = vadd.f32 %v5004_v51, %v4875_v44  ;;  %v5425_v42 = vsub.f32 %v12462_v32, %v12472_v50 }
0x16c1   :  { %v4888_v47 = vpop.f32.mrf.mxu0  ;;  %v5240_v15 = vpop.f32.mrf.mxu1 }
0x16c2   :  { %v4889_v54 = vadd.f32 %v4888_v47, %v4761_v7  ;;  %v5029_v20 = vadd.f32 %v10637_v46, %v4896_v36  ;;  %v5275_v46 = vld [vmem:[%s13116_s6 + $0x8] sm:$0xff]  ;;  %v12490_v28 = vand.u32 4294901760, %v5425_v42 }
0x16c3   :  { %v10648_v61 = vpop.f32.mrf.mxu0  ;;  %v10674_v45 = vpop.f32.mrf.mxu1  ;;  %v12455_v35 = vand.u32 4294901760, %v5275_v46 }
0x16c4   :  { %v5118_v58 = vadd.f32 %v10648_v61, %v4981_v52  ;;  %v12424_v41 = vadd.f32 %v5020_v31, %v4889_v54  ;;  %v5277_v52 = vld [vmem:[%s13116_s6 + $0x18] sm:$0xff] }
0x16c5   :  { %v5111_v40 = vpop.f32.mrf.mxu0  ;;  %v5252_v24 = vpop.f32.mrf.mxu1  ;;  %v12451_v27 = vand.u32 4294901760, %v5277_v52  ;;  %v12465_v37 = vsub.f32 %v5275_v46, %v12455_v35 }
0x16c6   :  { %v12426_v10 = vadd.f32 %v10668_v21, %v5118_v58  ;;  %v5112_v49 = vadd.f32 %v5111_v40, %v4973_v4 }
0x16c7   :  { %v10651_v1 = vpop.f32.mrf.mxu0  ;;  %v10677_v63 = vpop.f32.mrf.mxu1  ;;  %10679 = vmatpush3.msra.mxu0 %v12451_v27  ;;  %v12459_v31 = vsub.f32 %v5277_v52, %v12451_v27  ;;  %v12476_v21 = vand.u32 4294901760, %v12465_v37 }
0x16c8   :  { %v5229_v26 = vadd.f32 %v5228_v19, %v5112_v49  ;;  %v5130_v16 = vadd.f32 %v10651_v1, %v4997_v38  ;;  %10680 = vmatprep.subr.mxu0 %v13130_v11 }
0x16c9   :  { %v5123_v23 = vpop.f32.mrf.mxu0  ;;  %v12469_v38 = vand.u32 4294901760, %v12459_v31  ;;  %10681 = vmatpush3.msra.mxu0 %v12453_v48 }
0x16ca   :  { %v5280_v53 = vmul.f32 0.5, %v5229_v26  ;;  %v12428_v5 = vadd.f32 %v10671_v59, %v5130_v16  ;;  %v5124_v14 = vadd.f32 %v5123_v23, %v4989_v55  ;;  %10682 = vmatprep.subr.mxu0 %v13130_v11  ;;  %v5432_v55 = vsub.f32 %v12465_v37, %v12476_v21 }
0x16cb   :  { %v10654_v12 = vpop.f32.mrf.mxu0  ;;  %v5418_v39 = vsub.f32 %v12459_v31, %v12469_v38  ;;  %10683 = vmatpush3.msra.mxu0 %v12455_v35 }
0x16cc   :  { %11243 = vtanh.f32 %v5280_v53  ;;  %v12430_v18 = vadd.f32 %v5240_v15, %v5124_v14  ;;  %v5142_v6 = vadd.f32 %v10654_v12, %v5013_v34  ;;  %10684 = vmatprep.subr.mxu0 %v13130_v11  ;;  %v12493_v44 = vand.u32 4294901760, %v5432_v55  ;;  %v5274_v34 = vld [vmem:[%s13116_s6] sm:$0xff] }
0x16cd   :  { %v5135_v62 = vpop.f32.mrf.mxu0  ;;  %v12488_v19 = vand.u32 4294901760, %v5418_v39  ;;  %v12504_v0 = vand.u32 4294901760, %v5274_v34 }
0x16ce   :  { %v12432_v33 = vadd.f32 %v10674_v45, %v5142_v6  ;;  %v5136_v2 = vadd.f32 %v5135_v62, %v5005_v25  ;;  %v12585_v45 = vpop.f32.mrf.mxu1 }
0x16cf   :  { %v10657_v13 = vpop.f32.mrf.mxu0  ;;  %10690 = vmatpush3.msra.mxu1 %v12488_v19  ;;  %v12507_v29 = vsub.f32 %v5274_v34, %v12504_v0  ;;  %10685 = vmatpush3.msra.mxu0 %v12504_v0 }
0x16d0   :  { %v12434_v3 = vadd.f32 %v5252_v24, %v5136_v2  ;;  %v5154_v22 = vadd.f32 %v10657_v13, %v5029_v20  ;;  %10691 = vmatprep.subr.mxu1 %v13130_v11  ;;  %10700 = vmatprep.subr.mxu0 %v13130_v11 }
0x16d1   :  { %10692 = vmatpush3.msra.mxu1 %v12490_v28  ;;  %v12512_v36 = vand.u32 4294901760, %v12507_v29  ;;  %v12587_v14 = vpop.f32.mrf.mxu0 }
0x16d2   :  { %v12436_v60 = vadd.f32 %v10677_v63, %v5154_v22  ;;  %10693 = vmatprep.subr.mxu1 %v13130_v11 }
0x16d3   :  { %10694 = vmatpush3.msra.mxu1 %v12493_v44  ;;  %v5439_v25 = vsub.f32 %v12507_v29, %v12512_v36 }
0x16d4   :  { %10695 = vmatprep.subr.mxu1 %v13130_v11 }
0x16d5   :  { %v12516_v59 = vand.u32 4294901760, %v5439_v25 }
0x16d7   :  { %10696 = vmatpush3.msra.mxu1 %v12516_v59 }
0x16d8   :  { %10711 = vmatprep.subr.mxu1 %v13130_v11 }
0x16d9   :  { %v11244_v8 = vpop.eup %11243 }
0x16da   :  { %v5282_v30 = vmul.f32 0.5, %v11244_v8 }
0x16dc   :  { %v5283_v43 = vadd.f32 0.5, %v5282_v30 }
0x16de   :  { %v5291_v7 = vmul.f32 %v9434_v17, %v5283_v43  ;;  %v5298_v47 = vsub.f32 1.0, %v5283_v43  ;;  %v5304_v20 = vmul.f32 0.0, %v5283_v43 }
0x16e0   :  { %5293 = vrot.lane.b32.xlu0 %v5291_v7, %s11298_s18 }
0x1752   :  { %v5294_v9 = vpop.permute.xlu0 %5293 }
0x1753   :  { %v5296_v51 = vadd.f32 %v5294_v9, %v5229_v26 }
0x1755   :  { %11245 = vtanh.f32 %v5296_v51 }
0x1762   :  { %v11246_v57 = vpop.eup %11245 }
0x1763   :  { %5300 = vrot.lane.b32.xlu1 %v11246_v57, %s11300_s4 }
0x1767   :  { %5801 = vrot.lane.b32.xlu1 %v9434_v17, %s11298_s18 }
0x17d5   :  { %v5301_v54 = vpop.permute.xlu1 %5300 }
0x17d6   :  { %v5303_v61 = vmul.f32 %v5301_v54, %v5298_v47 }
0x17d8   :  { %v12520_v58 = vadd.f32 %v5304_v20, %v5303_v61 }
0x17d9   :  { %v12589_v51 = vpop.permute.xlu1 %5801 }
0x17da   :  { %5307 = vrot.lane.b32.xlu0 %v12520_v58, %s11300_s4 }
0x184c   :  { %v5308_v4 = vpop.permute.xlu0 %5307 }
0x184d   :  { %v5309_v15 = vsel %vm866_vm3, %v5308_v4, 0 }
0x184e   :  { %v5380_v40 = vand.u32 4294901760, %v5309_v15 }
0x1850   :  { %v5381_v49 = vsub.f32 %v5309_v15, %v5380_v40  ;;  %10698 = vmatmul.mubr.f32.vlgmr.msra.gmra.mxu1 %v5380_v40 }
0x1851   :  { %10712 = vmatpush3.msra.mxu1 %v12451_v27  ;;  %10719 = vmatprep.mubr.msk.f32.mxu1 %vm11301_vm2, %v13130_v11 }
0x1852   :  { %v5382_v1 = vand.u32 4294901760, %v5381_v49  ;;  %10713 = vmatprep.subr.mxu1 %v13130_v11 }
0x1853   :  { %10714 = vmatpush3.msra.mxu1 %v12453_v48 }
0x1854   :  { %v5383_v26 = vsub.f32 %v5381_v49, %v5382_v1  ;;  %10715 = vmatprep.subr.mxu1 %v13130_v11 }
0x1855   :  { %10716 = vmatpush3.msra.mxu1 %v12455_v35 }
0x1856   :  { %v5384_v16 = vand.u32 4294901760, %v5383_v26  ;;  %10717 = vmatprep.subr.mxu1 %v13130_v11 }
0x1857   :  { %10718 = vmatpush3.msra.mxu1 %v12504_v0 }
0x1858   :  { %10720 = vmatmul.mubr.f32.vlgmr.msra.gmra.mxu1 %v5382_v1  ;;  %10733 = vmatprep.subr.mxu1 %v13130_v11 }
0x1859   :  { %10687 = vmatmul.mubr.f32.vlgmr.msra.gmra.mxu0 %v5384_v16  ;;  %10734 = vmatpush3.msra.mxu1 %v12451_v27 }
0x185a   :  { %10701 = vmatpush3.msra.mxu0 %v12459_v31  ;;  %10735 = vmatprep.subr.mxu1 %v13130_v11 }
0x185b   :  { %10702 = vmatprep.subr.mxu0 %v13130_v11  ;;  %10736 = vmatpush3.msra.mxu1 %v12453_v48 }
0x185c   :  { %10703 = vmatpush3.msra.mxu0 %v12462_v32  ;;  %10737 = vmatprep.subr.mxu1 %v13130_v11 }
0x185d   :  { %10704 = vmatprep.subr.mxu0 %v13130_v11  ;;  %10738 = vmatpush3.msra.mxu1 %v12455_v35 }
0x185e   :  { %10705 = vmatpush3.msra.mxu0 %v12465_v37  ;;  %10739 = vmatprep.subr.mxu1 %v13130_v11 }
0x185f   :  { %10706 = vmatprep.subr.mxu0 %v13130_v11  ;;  %10708 = vmatprep.mubr.msk.f32.mxu0 %vm11301_vm2, %v13130_v11 }
0x1860   :  { %10707 = vmatpush3.msra.mxu0 %v12507_v29  ;;  %10740 = vmatpush3.msra.mxu1 %v12504_v0 }
0x1861   :  { %10741 = vmatprep.mubr.msk.f32.mxu1 %vm11301_vm2, %v13130_v11  ;;  %10709 = vmatmul.mubr.f32.vlgmr.msra.gmra.mxu0 %v5381_v49 }
0x1862   :  { %10722 = vmatprep.subr.mxu0 %v13130_v11  ;;  %10742 = vmatmul.mubr.f32.vlgmr.msra.gmra.mxu1 %v5380_v40 }
0x1863   :  { %10723 = vmatpush3.msra.mxu0 %v12469_v38  ;;  %10730 = vmatprep.mubr.msk.f32.mxu0 %vm11301_vm2, %v13130_v11 }
0x1864   :  { %10724 = vmatprep.subr.mxu0 %v13130_v11  ;;  %10755 = vmatprep.subr.mxu1 %v13130_v11 }
0x1865   :  { %10725 = vmatpush3.msra.mxu0 %v12472_v50  ;;  %10756 = vmatpush3.msra.mxu1 %v12488_v19 }
0x1866   :  { %10726 = vmatprep.subr.mxu0 %v13130_v11  ;;  %10757 = vmatprep.subr.mxu1 %v13130_v11 }
0x1867   :  { %10727 = vmatpush3.msra.mxu0 %v12476_v21  ;;  %10758 = vmatpush3.msra.mxu1 %v12490_v28 }
0x1868   :  { %10728 = vmatprep.subr.mxu0 %v13130_v11  ;;  %10759 = vmatprep.subr.mxu1 %v13130_v11 }
0x1869   :  { %10729 = vmatpush3.msra.mxu0 %v12512_v36  ;;  %10760 = vmatpush3.msra.mxu1 %v12493_v44 }
0x186a   :  { %10731 = vmatmul.mubr.f32.vlgmr.msra.gmra.mxu0 %v5380_v40  ;;  %10761 = vmatprep.subr.mxu1 %v13130_v11 }
0x186b   :  { %10762 = vmatpush3.msra.mxu1 %v12516_v59  ;;  %10744 = vmatprep.subr.mxu0 %v13130_v11 }
0x186c   :  { %10763 = vmatprep.mubr.msk.f32.mxu1 %vm11301_vm2, %v13130_v11  ;;  %10777 = vmatprep.subr.mxu1 %v13130_v11 }
0x186d   :  { %10745 = vmatpush3.msra.mxu0 %v12451_v27  ;;  %10752 = vmatprep.mubr.msk.f32.mxu0 %vm11301_vm2, %v13130_v11 }
0x186e   :  { %10746 = vmatprep.subr.mxu0 %v13130_v11 }
0x186f   :  { %10747 = vmatpush3.msra.mxu0 %v12453_v48 }
0x1870   :  { %10748 = vmatprep.subr.mxu0 %v13130_v11 }
0x1871   :  { %10749 = vmatpush3.msra.mxu0 %v12455_v35 }
0x1872   :  { %10750 = vmatprep.subr.mxu0 %v13130_v11 }
0x1873   :  { %10751 = vmatpush3.msra.mxu0 %v12504_v0 }
0x1874   :  { %10766 = vmatprep.subr.mxu0 %v13130_v11 }
0x1910   :  { %v5477_v23 = vpop.f32.mrf.mxu1 }
0x1912   :  { %v10699_v53 = vpop.f32.mrf.mxu1 }
0x1918   :  { %v5634_v12 = vpop.f32.mrf.mxu1 }
0x1919   :  { %v5386_v6 = vpop.f32.mrf.mxu0 }
0x191a   :  { %v10721_v24 = vpop.f32.mrf.mxu1  ;;  %v5478_v22 = vadd.f32 %v5477_v23, %v5386_v6 }
0x191b   :  { %v10688_v62 = vpop.f32.mrf.mxu0 }
0x1921   :  { %v5557_v2 = vpop.f32.mrf.mxu0 }
0x1922   :  { %v5792_v13 = vpop.f32.mrf.mxu1  ;;  %v5558_v30 = vadd.f32 %v5557_v2, %v5478_v22 }
0x1923   :  { %v10710_v63 = vpop.f32.mrf.mxu0 }
0x1924   :  { %v10743_v8 = vpop.f32.mrf.mxu1  ;;  %v5635_v17 = vadd.f32 %v5634_v12, %v5558_v30 }
0x192a   :  { %v5717_v43 = vpop.f32.mrf.mxu0 }
0x192b   :  { %v5718_v7 = vadd.f32 %v5717_v43, %v5635_v17 }
0x192c   :  { %v10732_v9 = vpop.f32.mrf.mxu0 }
0x192d   :  { %v5793_v52 = vadd.f32 %v5792_v13, %v5718_v7 }
0x192f   :  { %v5804_v56 = vadd.f32 %v12589_v51, %v5793_v52  ;;  %v5796_v46 = vadd.f32 %v5793_v52, %v12426_v10 }
0x1931   :  { %5806 = vrot.lane.b32.xlu0 %v5804_v56, %s11298_s18  ;;  %v5797_v39 = vmul.f32 0.5, %v5796_v46 }
0x1933   :  { %11247 = vtanh.f32 %v5797_v39 }
0x1940   :  { %v11248_v42 = vpop.eup %11247 }
0x1941   :  { %v5799_v55 = vmul.f32 0.5, %v11248_v42 }
0x1943   :  { %v5800_v57 = vadd.f32 0.5, %v5799_v55 }
0x1945   :  { %v5816_v61 = vsub.f32 1.0, %v5800_v57  ;;  %v5822_v15 = vmul.f32 %v5800_v57, %v12520_v58 }
0x19a3   :  { %v5807_v34 = vpop.permute.xlu0 %5806 }
0x19a4   :  { %v5809_v25 = vmul.f32 %v5807_v34, %v5800_v57 }
0x19a6   :  { %5811 = vrot.lane.b32.xlu1 %v5809_v25, %s11298_s18 }
0x1a18   :  { %v5812_v47 = vpop.permute.xlu1 %5811 }
0x1a19   :  { %v5814_v54 = vadd.f32 %v5812_v47, %v12426_v10 }
0x1a1b   :  { %11249 = vtanh.f32 %v5814_v54 }
0x1a28   :  { %v11250_v20 = vpop.eup %11249 }
0x1a29   :  { %5818 = vrot.lane.b32.xlu0 %v11250_v20, %s11300_s4 }
0x1a9b   :  { %v5819_v4 = vpop.permute.xlu0 %5818 }
0x1a9c   :  { %v5821_v40 = vmul.f32 %v5819_v4, %v5816_v61 }
0x1a9e   :  { %v12598_v49 = vadd.f32 %v5822_v15, %v5821_v40 }
0x1aa0   :  { %5825 = vrot.lane.b32.xlu1 %v12598_v49, %s11300_s4 }
0x1b12   :  { %v5826_v1 = vpop.permute.xlu1 %5825 }
0x1b13   :  { %v5827_v26 = vsel %vm866_vm3, %v5826_v1, 0 }
0x1b14   :  { %v5898_v16 = vand.u32 4294901760, %v5827_v26 }
0x1b16   :  { %v5899_v23 = vsub.f32 %v5827_v26, %v5898_v16  ;;  %10764 = vmatmul.mubr.f32.vlgmr.msra.gmra.mxu1 %v5898_v16 }
0x1b17   :  { %10778 = vmatpush3.msra.mxu1 %v12451_v27  ;;  %10785 = vmatprep.mubr.msk.f32.mxu1 %vm11301_vm2, %v13130_v11 }
0x1b18   :  { %v5900_v10 = vand.u32 4294901760, %v5899_v23  ;;  %10779 = vmatprep.subr.mxu1 %v13130_v11 }
0x1b19   :  { %10780 = vmatpush3.msra.mxu1 %v12453_v48 }
0x1b1a   :  { %v5901_v58 = vsub.f32 %v5899_v23, %v5900_v10  ;;  %10781 = vmatprep.subr.mxu1 %v13130_v11 }
0x1b1b   :  { %10782 = vmatpush3.msra.mxu1 %v12455_v35 }
0x1b1c   :  { %v5902_v53 = vand.u32 4294901760, %v5901_v58  ;;  %10783 = vmatprep.subr.mxu1 %v13130_v11 }
0x1b1d   :  { %10784 = vmatpush3.msra.mxu1 %v12504_v0 }
0x1b1e   :  { %10786 = vmatmul.mubr.f32.vlgmr.msra.gmra.mxu1 %v5900_v10  ;;  %10799 = vmatprep.subr.mxu1 %v13130_v11 }
0x1b1f   :  { %10753 = vmatmul.mubr.f32.vlgmr.msra.gmra.mxu0 %v5902_v53  ;;  %10800 = vmatpush3.msra.mxu1 %v12451_v27 }
0x1b20   :  { %10767 = vmatpush3.msra.mxu0 %v12459_v31  ;;  %10801 = vmatprep.subr.mxu1 %v13130_v11 }
0x1b21   :  { %10768 = vmatprep.subr.mxu0 %v13130_v11  ;;  %10802 = vmatpush3.msra.mxu1 %v12453_v48 }
0x1b22   :  { %10769 = vmatpush3.msra.mxu0 %v12462_v32  ;;  %10803 = vmatprep.subr.mxu1 %v13130_v11 }
0x1b23   :  { %10770 = vmatprep.subr.mxu0 %v13130_v11  ;;  %10804 = vmatpush3.msra.mxu1 %v12455_v35 }
0x1b24   :  { %10771 = vmatpush3.msra.mxu0 %v12465_v37  ;;  %10805 = vmatprep.subr.mxu1 %v13130_v11 }
0x1b25   :  { %10772 = vmatprep.subr.mxu0 %v13130_v11  ;;  %10774 = vmatprep.mubr.msk.f32.mxu0 %vm11301_vm2, %v13130_v11 }
0x1b26   :  { %10773 = vmatpush3.msra.mxu0 %v12507_v29  ;;  %10806 = vmatpush3.msra.mxu1 %v12504_v0 }
0x1b27   :  { %10807 = vmatprep.mubr.msk.f32.mxu1 %vm11301_vm2, %v13130_v11  ;;  %10775 = vmatmul.mubr.f32.vlgmr.msra.gmra.mxu0 %v5899_v23 }
0x1b28   :  { %10788 = vmatprep.subr.mxu0 %v13130_v11  ;;  %10808 = vmatmul.mubr.f32.vlgmr.msra.gmra.mxu1 %v5898_v16 }
0x1b29   :  { %10789 = vmatpush3.msra.mxu0 %v12469_v38  ;;  %10796 = vmatprep.mubr.msk.f32.mxu0 %vm11301_vm2, %v13130_v11 }
0x1b2a   :  { %10790 = vmatprep.subr.mxu0 %v13130_v11  ;;  %10821 = vmatprep.subr.mxu1 %v13130_v11 }
0x1b2b   :  { %10791 = vmatpush3.msra.mxu0 %v12472_v50  ;;  %10822 = vmatpush3.msra.mxu1 %v12488_v19 }
0x1b2c   :  { %10792 = vmatprep.subr.mxu0 %v13130_v11  ;;  %10823 = vmatprep.subr.mxu1 %v13130_v11 }
0x1b2d   :  { %10793 = vmatpush3.msra.mxu0 %v12476_v21  ;;  %10824 = vmatpush3.msra.mxu1 %v12490_v28 }
0x1b2e   :  { %10794 = vmatprep.subr.mxu0 %v13130_v11  ;;  %10825 = vmatprep.subr.mxu1 %v13130_v11 }
0x1b2f   :  { %10795 = vmatpush3.msra.mxu0 %v12512_v36  ;;  %10826 = vmatpush3.msra.mxu1 %v12493_v44 }
0x1b30   :  { %10797 = vmatmul.mubr.f32.vlgmr.msra.gmra.mxu0 %v5898_v16  ;;  %10827 = vmatprep.subr.mxu1 %v13130_v11 }
0x1b31   :  { %10828 = vmatpush3.msra.mxu1 %v12516_v59  ;;  %10810 = vmatprep.subr.mxu0 %v13130_v11 }
0x1b32   :  { %10829 = vmatprep.mubr.msk.f32.mxu1 %vm11301_vm2, %v13130_v11  ;;  %10843 = vmatprep.subr.mxu1 %v13130_v11 }
0x1b33   :  { %10811 = vmatpush3.msra.mxu0 %v12451_v27  ;;  %10818 = vmatprep.mubr.msk.f32.mxu0 %vm11301_vm2, %v13130_v11 }
0x1b34   :  { %10812 = vmatprep.subr.mxu0 %v13130_v11 }
0x1b35   :  { %10813 = vmatpush3.msra.mxu0 %v12453_v48 }
0x1b36   :  { %10814 = vmatprep.subr.mxu0 %v13130_v11 }
0x1b37   :  { %10815 = vmatpush3.msra.mxu0 %v12455_v35 }
0x1b38   :  { %10816 = vmatprep.subr.mxu0 %v13130_v11 }
0x1b39   :  { %10817 = vmatpush3.msra.mxu0 %v12504_v0 }
0x1b3a   :  { %10832 = vmatprep.subr.mxu0 %v13130_v11 }
0x1bd6   :  { %v5995_v12 = vpop.f32.mrf.mxu1 }
0x1bd8   :  { %v10765_v6 = vpop.f32.mrf.mxu1 }
0x1bde   :  { %v6152_v24 = vpop.f32.mrf.mxu1 }
0x1bdf   :  { %v5904_v62 = vpop.f32.mrf.mxu0 }
0x1be0   :  { %v10787_v2 = vpop.f32.mrf.mxu1  ;;  %v5996_v8 = vadd.f32 %v5995_v12, %v5904_v62 }
0x1be1   :  { %v10754_v13 = vpop.f32.mrf.mxu0 }
0x1be7   :  { %v6075_v22 = vpop.f32.mrf.mxu0 }
0x1be8   :  { %v6310_v63 = vpop.f32.mrf.mxu1  ;;  %v6076_v43 = vadd.f32 %v6075_v22, %v5996_v8 }
0x1be9   :  { %v10776_v30 = vpop.f32.mrf.mxu0 }
0x1bea   :  { %v10809_v17 = vpop.f32.mrf.mxu1  ;;  %v6153_v7 = vadd.f32 %v6152_v24, %v6076_v43 }
0x1bf0   :  { %v6235_v9 = vpop.f32.mrf.mxu0 }
0x1bf1   :  { %v6236_v52 = vadd.f32 %v6235_v9, %v6153_v7 }
0x1bf2   :  { %v10798_v56 = vpop.f32.mrf.mxu0 }
0x1bf3   :  { %v6311_v46 = vadd.f32 %v6310_v63, %v6236_v52 }
0x1bf5   :  { %v6319_v39 = vadd.f32 %v6311_v46, %v12589_v51  ;;  %v6314_v42 = vadd.f32 %v6311_v46, %v12430_v18 }
0x1bf7   :  { %6321 = vrot.lane.b32.xlu0 %v6319_v39, %s11298_s18  ;;  %v6315_v55 = vmul.f32 0.5, %v6314_v42 }
0x1bf9   :  { %11251 = vtanh.f32 %v6315_v55 }
0x1c06   :  { %v11252_v57 = vpop.eup %11251 }
0x1c07   :  { %v6317_v34 = vmul.f32 0.5, %v11252_v57 }
0x1c09   :  { %v6318_v25 = vadd.f32 0.5, %v6317_v34 }
0x1c0b   :  { %v6331_v15 = vsub.f32 1.0, %v6318_v25  ;;  %v6337_v1 = vmul.f32 %v6318_v25, %v12598_v49 }
0x1c69   :  { %v6322_v47 = vpop.permute.xlu0 %6321 }
0x1c6a   :  { %v6324_v54 = vmul.f32 %v6322_v47, %v6318_v25 }
0x1c6c   :  { %6326 = vrot.lane.b32.xlu1 %v6324_v54, %s11298_s18 }
0x1cde   :  { %v6327_v20 = vpop.permute.xlu1 %6326 }
0x1cdf   :  { %v6329_v61 = vadd.f32 %v6327_v20, %v12430_v18 }
0x1ce1   :  { %11253 = vtanh.f32 %v6329_v61 }
0x1cee   :  { %v11254_v4 = vpop.eup %11253 }
0x1cef   :  { %6333 = vrot.lane.b32.xlu0 %v11254_v4, %s11300_s4 }
0x1d61   :  { %v6334_v40 = vpop.permute.xlu0 %6333 }
0x1d62   :  { %v6336_v26 = vmul.f32 %v6334_v40, %v6331_v15 }
0x1d64   :  { %v12670_v16 = vadd.f32 %v6337_v1, %v6336_v26 }
0x1d66   :  { %6340 = vrot.lane.b32.xlu1 %v12670_v16, %s11300_s4 }
0x1dd8   :  { %v6341_v23 = vpop.permute.xlu1 %6340 }
0x1dd9   :  { %v6342_v10 = vsel %vm866_vm3, %v6341_v23, 0 }
0x1dda   :  { %v6413_v58 = vand.u32 4294901760, %v6342_v10 }
0x1ddc   :  { %v6414_v53 = vsub.f32 %v6342_v10, %v6413_v58  ;;  %10830 = vmatmul.mubr.f32.vlgmr.msra.gmra.mxu1 %v6413_v58 }
0x1ddd   :  { %10844 = vmatpush3.msra.mxu1 %v12451_v27  ;;  %10851 = vmatprep.mubr.msk.f32.mxu1 %vm11301_vm2, %v13130_v11 }
0x1dde   :  { %v6415_v18 = vand.u32 4294901760, %v6414_v53  ;;  %10845 = vmatprep.subr.mxu1 %v13130_v11 }
0x1ddf   :  { %10846 = vmatpush3.msra.mxu1 %v12453_v48 }
0x1de0   :  { %v6416_v49 = vsub.f32 %v6414_v53, %v6415_v18  ;;  %10847 = vmatprep.subr.mxu1 %v13130_v11 }
0x1de1   :  { %10848 = vmatpush3.msra.mxu1 %v12455_v35 }
0x1de2   :  { %v6417_v12 = vand.u32 4294901760, %v6416_v49  ;;  %10849 = vmatprep.subr.mxu1 %v13130_v11 }
0x1de3   :  { %10850 = vmatpush3.msra.mxu1 %v12504_v0 }
0x1de4   :  { %10852 = vmatmul.mubr.f32.vlgmr.msra.gmra.mxu1 %v6415_v18  ;;  %10865 = vmatprep.subr.mxu1 %v13130_v11 }
0x1de5   :  { %10819 = vmatmul.mubr.f32.vlgmr.msra.gmra.mxu0 %v6417_v12  ;;  %10866 = vmatpush3.msra.mxu1 %v12451_v27 }
0x1de6   :  { %10833 = vmatpush3.msra.mxu0 %v12459_v31  ;;  %10867 = vmatprep.subr.mxu1 %v13130_v11 }
0x1de7   :  { %10834 = vmatprep.subr.mxu0 %v13130_v11  ;;  %10868 = vmatpush3.msra.mxu1 %v12453_v48 }
0x1de8   :  { %10835 = vmatpush3.msra.mxu0 %v12462_v32  ;;  %10869 = vmatprep.subr.mxu1 %v13130_v11 }
0x1de9   :  { %10836 = vmatprep.subr.mxu0 %v13130_v11  ;;  %10870 = vmatpush3.msra.mxu1 %v12455_v35 }
0x1dea   :  { %10837 = vmatpush3.msra.mxu0 %v12465_v37  ;;  %10871 = vmatprep.subr.mxu1 %v13130_v11 }
0x1deb   :  { %10838 = vmatprep.subr.mxu0 %v13130_v11  ;;  %10840 = vmatprep.mubr.msk.f32.mxu0 %vm11301_vm2, %v13130_v11 }
0x1dec   :  { %10839 = vmatpush3.msra.mxu0 %v12507_v29  ;;  %10872 = vmatpush3.msra.mxu1 %v12504_v0 }
0x1ded   :  { %10873 = vmatprep.mubr.msk.f32.mxu1 %vm11301_vm2, %v13130_v11  ;;  %10841 = vmatmul.mubr.f32.vlgmr.msra.gmra.mxu0 %v6414_v53 }
0x1dee   :  { %10854 = vmatprep.subr.mxu0 %v13130_v11  ;;  %10874 = vmatmul.mubr.f32.vlgmr.msra.gmra.mxu1 %v6413_v58 }
0x1def   :  { %10855 = vmatpush3.msra.mxu0 %v12469_v38  ;;  %10862 = vmatprep.mubr.msk.f32.mxu0 %vm11301_vm2, %v13130_v11 }
0x1df0   :  { %10856 = vmatprep.subr.mxu0 %v13130_v11  ;;  %10887 = vmatprep.subr.mxu1 %v13130_v11 }
0x1df1   :  { %10857 = vmatpush3.msra.mxu0 %v12472_v50  ;;  %10888 = vmatpush3.msra.mxu1 %v12488_v19 }
0x1df2   :  { %10858 = vmatprep.subr.mxu0 %v13130_v11  ;;  %10889 = vmatprep.subr.mxu1 %v13130_v11 }
0x1df3   :  { %10859 = vmatpush3.msra.mxu0 %v12476_v21  ;;  %10890 = vmatpush3.msra.mxu1 %v12490_v28 }
0x1df4   :  { %10860 = vmatprep.subr.mxu0 %v13130_v11  ;;  %10891 = vmatprep.subr.mxu1 %v13130_v11 }
0x1df5   :  { %10861 = vmatpush3.msra.mxu0 %v12512_v36  ;;  %10892 = vmatpush3.msra.mxu1 %v12493_v44 }
0x1df6   :  { %10863 = vmatmul.mubr.f32.vlgmr.msra.gmra.mxu0 %v6413_v58  ;;  %10893 = vmatprep.subr.mxu1 %v13130_v11 }
0x1df7   :  { %10894 = vmatpush3.msra.mxu1 %v12516_v59  ;;  %10876 = vmatprep.subr.mxu0 %v13130_v11 }
0x1df8   :  { %10895 = vmatprep.mubr.msk.f32.mxu1 %vm11301_vm2, %v13130_v11  ;;  %10909 = vmatprep.subr.mxu1 %v13130_v11 }
0x1df9   :  { %10877 = vmatpush3.msra.mxu0 %v12451_v27  ;;  %10884 = vmatprep.mubr.msk.f32.mxu0 %vm11301_vm2, %v13130_v11 }
0x1dfa   :  { %10878 = vmatprep.subr.mxu0 %v13130_v11 }
0x1dfb   :  { %10879 = vmatpush3.msra.mxu0 %v12453_v48 }
0x1dfc   :  { %10880 = vmatprep.subr.mxu0 %v13130_v11 }
0x1dfd   :  { %10881 = vmatpush3.msra.mxu0 %v12455_v35 }
0x1dfe   :  { %10882 = vmatprep.subr.mxu0 %v13130_v11 }
0x1dff   :  { %10883 = vmatpush3.msra.mxu0 %v12504_v0 }
0x1e00   :  { %10898 = vmatprep.subr.mxu0 %v13130_v11 }
0x1e9c   :  { %v6510_v6 = vpop.f32.mrf.mxu1 }
0x1e9e   :  { %v10831_v24 = vpop.f32.mrf.mxu1 }
0x1ea4   :  { %v6667_v62 = vpop.f32.mrf.mxu1 }
0x1ea5   :  { %v6419_v2 = vpop.f32.mrf.mxu0 }
0x1ea6   :  { %v10853_v13 = vpop.f32.mrf.mxu1  ;;  %v6511_v30 = vadd.f32 %v6510_v6, %v6419_v2 }
0x1ea7   :  { %v10820_v22 = vpop.f32.mrf.mxu0 }
0x1ead   :  { %v6590_v63 = vpop.f32.mrf.mxu0 }
0x1eae   :  { %v6825_v8 = vpop.f32.mrf.mxu1  ;;  %v6591_v7 = vadd.f32 %v6590_v63, %v6511_v30 }
0x1eaf   :  { %v10842_v17 = vpop.f32.mrf.mxu0 }
0x1eb0   :  { %v10875_v43 = vpop.f32.mrf.mxu1  ;;  %v6668_v9 = vadd.f32 %v6667_v62, %v6591_v7 }
0x1eb6   :  { %v6750_v52 = vpop.f32.mrf.mxu0 }
0x1eb7   :  { %v6751_v56 = vadd.f32 %v6750_v52, %v6668_v9 }
0x1eb8   :  { %v10864_v46 = vpop.f32.mrf.mxu0 }
0x1eb9   :  { %v6826_v39 = vadd.f32 %v6825_v8, %v6751_v56 }
0x1ebb   :  { %v6834_v42 = vadd.f32 %v6826_v39, %v12589_v51  ;;  %v6829_v55 = vadd.f32 %v6826_v39, %v12428_v5 }
0x1ebd   :  { %6836 = vrot.lane.b32.xlu0 %v6834_v42, %s11298_s18  ;;  %v6830_v57 = vmul.f32 0.5, %v6829_v55 }
0x1ebf   :  { %11255 = vtanh.f32 %v6830_v57 }
0x1ecc   :  { %v11256_v34 = vpop.eup %11255 }
0x1ecd   :  { %v6832_v25 = vmul.f32 0.5, %v11256_v34 }
0x1ecf   :  { %v6833_v47 = vadd.f32 0.5, %v6832_v25 }
0x1ed1   :  { %v6846_v40 = vsub.f32 1.0, %v6833_v47  ;;  %v6852_v26 = vmul.f32 %v6833_v47, %v12670_v16 }
0x1f2f   :  { %v6837_v54 = vpop.permute.xlu0 %6836 }
0x1f30   :  { %v6839_v20 = vmul.f32 %v6837_v54, %v6833_v47 }
0x1f32   :  { %6841 = vrot.lane.b32.xlu1 %v6839_v20, %s11298_s18 }
0x1fa4   :  { %v6842_v61 = vpop.permute.xlu1 %6841 }
0x1fa5   :  { %v6844_v4 = vadd.f32 %v6842_v61, %v12428_v5 }
0x1fa7   :  { %11257 = vtanh.f32 %v6844_v4 }
0x1fb4   :  { %v11258_v15 = vpop.eup %11257 }
0x1fb5   :  { %6848 = vrot.lane.b32.xlu0 %v11258_v15, %s11300_s4 }
0x2027   :  { %v6849_v1 = vpop.permute.xlu0 %6848 }
0x2028   :  { %v6851_v23 = vmul.f32 %v6849_v1, %v6846_v40 }
0x202a   :  { %v12742_v10 = vadd.f32 %v6852_v26, %v6851_v23 }
0x202c   :  { %6855 = vrot.lane.b32.xlu1 %v12742_v10, %s11300_s4 }
0x209e   :  { %v6856_v58 = vpop.permute.xlu1 %6855 }
0x209f   :  { %v6857_v53 = vsel %vm866_vm3, %v6856_v58, 0 }
0x20a0   :  { %v6928_v18 = vand.u32 4294901760, %v6857_v53 }
0x20a2   :  { %v6929_v49 = vsub.f32 %v6857_v53, %v6928_v18  ;;  %10896 = vmatmul.mubr.f32.vlgmr.msra.gmra.mxu1 %v6928_v18 }
0x20a3   :  { %10910 = vmatpush3.msra.mxu1 %v12451_v27  ;;  %10917 = vmatprep.mubr.msk.f32.mxu1 %vm11301_vm2, %v13130_v11 }
0x20a4   :  { %v6930_v5 = vand.u32 4294901760, %v6929_v49  ;;  %10911 = vmatprep.subr.mxu1 %v13130_v11 }
0x20a5   :  { %10912 = vmatpush3.msra.mxu1 %v12453_v48 }
0x20a6   :  { %v6931_v16 = vsub.f32 %v6929_v49, %v6930_v5  ;;  %10913 = vmatprep.subr.mxu1 %v13130_v11 }
0x20a7   :  { %10914 = vmatpush3.msra.mxu1 %v12455_v35 }
0x20a8   :  { %v6932_v12 = vand.u32 4294901760, %v6931_v16  ;;  %10915 = vmatprep.subr.mxu1 %v13130_v11 }
0x20a9   :  { %10916 = vmatpush3.msra.mxu1 %v12504_v0 }
0x20aa   :  { %10918 = vmatmul.mubr.f32.vlgmr.msra.gmra.mxu1 %v6930_v5  ;;  %10931 = vmatprep.subr.mxu1 %v13130_v11 }
0x20ab   :  { %10885 = vmatmul.mubr.f32.vlgmr.msra.gmra.mxu0 %v6932_v12  ;;  %10932 = vmatpush3.msra.mxu1 %v12451_v27 }
0x20ac   :  { %10899 = vmatpush3.msra.mxu0 %v12459_v31  ;;  %10933 = vmatprep.subr.mxu1 %v13130_v11 }
0x20ad   :  { %10900 = vmatprep.subr.mxu0 %v13130_v11  ;;  %10934 = vmatpush3.msra.mxu1 %v12453_v48 }
0x20ae   :  { %10901 = vmatpush3.msra.mxu0 %v12462_v32  ;;  %10935 = vmatprep.subr.mxu1 %v13130_v11 }
0x20af   :  { %10902 = vmatprep.subr.mxu0 %v13130_v11  ;;  %10936 = vmatpush3.msra.mxu1 %v12455_v35 }
0x20b0   :  { %10903 = vmatpush3.msra.mxu0 %v12465_v37  ;;  %10937 = vmatprep.subr.mxu1 %v13130_v11 }
0x20b1   :  { %10904 = vmatprep.subr.mxu0 %v13130_v11  ;;  %10906 = vmatprep.mubr.msk.f32.mxu0 %vm11301_vm2, %v13130_v11 }
0x20b2   :  { %10905 = vmatpush3.msra.mxu0 %v12507_v29  ;;  %10938 = vmatpush3.msra.mxu1 %v12504_v0 }
0x20b3   :  { %10939 = vmatprep.mubr.msk.f32.mxu1 %vm11301_vm2, %v13130_v11  ;;  %10907 = vmatmul.mubr.f32.vlgmr.msra.gmra.mxu0 %v6929_v49 }
0x20b4   :  { %10920 = vmatprep.subr.mxu0 %v13130_v11  ;;  %10940 = vmatmul.mubr.f32.vlgmr.msra.gmra.mxu1 %v6928_v18 }
0x20b5   :  { %10921 = vmatpush3.msra.mxu0 %v12469_v38  ;;  %10928 = vmatprep.mubr.msk.f32.mxu0 %vm11301_vm2, %v13130_v11 }
0x20b6   :  { %10922 = vmatprep.subr.mxu0 %v13130_v11  ;;  %10953 = vmatprep.subr.mxu1 %v13130_v11 }
0x20b7   :  { %10923 = vmatpush3.msra.mxu0 %v12472_v50  ;;  %10954 = vmatpush3.msra.mxu1 %v12488_v19 }
0x20b8   :  { %10924 = vmatprep.subr.mxu0 %v13130_v11  ;;  %10955 = vmatprep.subr.mxu1 %v13130_v11 }
0x20b9   :  { %10925 = vmatpush3.msra.mxu0 %v12476_v21  ;;  %10956 = vmatpush3.msra.mxu1 %v12490_v28 }
0x20ba   :  { %10926 = vmatprep.subr.mxu0 %v13130_v11  ;;  %10957 = vmatprep.subr.mxu1 %v13130_v11 }
0x20bb   :  { %10927 = vmatpush3.msra.mxu0 %v12512_v36  ;;  %10958 = vmatpush3.msra.mxu1 %v12493_v44 }
0x20bc   :  { %10929 = vmatmul.mubr.f32.vlgmr.msra.gmra.mxu0 %v6928_v18  ;;  %10959 = vmatprep.subr.mxu1 %v13130_v11 }
0x20bd   :  { %10960 = vmatpush3.msra.mxu1 %v12516_v59  ;;  %10942 = vmatprep.subr.mxu0 %v13130_v11 }
0x20be   :  { %10961 = vmatprep.mubr.msk.f32.mxu1 %vm11301_vm2, %v13130_v11  ;;  %10975 = vmatprep.subr.mxu1 %v13130_v11 }
0x20bf   :  { %10943 = vmatpush3.msra.mxu0 %v12451_v27  ;;  %10950 = vmatprep.mubr.msk.f32.mxu0 %vm11301_vm2, %v13130_v11 }
0x20c0   :  { %10944 = vmatprep.subr.mxu0 %v13130_v11 }
0x20c1   :  { %10945 = vmatpush3.msra.mxu0 %v12453_v48 }
0x20c2   :  { %10946 = vmatprep.subr.mxu0 %v13130_v11 }
0x20c3   :  { %10947 = vmatpush3.msra.mxu0 %v12455_v35 }
0x20c4   :  { %10948 = vmatprep.subr.mxu0 %v13130_v11 }
0x20c5   :  { %10949 = vmatpush3.msra.mxu0 %v12504_v0 }
0x20c6   :  { %10964 = vmatprep.subr.mxu0 %v13130_v11 }
0x2162   :  { %v7025_v6 = vpop.f32.mrf.mxu1 }
0x2164   :  { %v10897_v24 = vpop.f32.mrf.mxu1 }
0x216a   :  { %v7182_v62 = vpop.f32.mrf.mxu1 }
0x216b   :  { %v6934_v2 = vpop.f32.mrf.mxu0 }
0x216c   :  { %v10919_v13 = vpop.f32.mrf.mxu1  ;;  %v7026_v30 = vadd.f32 %v7025_v6, %v6934_v2 }
0x216d   :  { %v10886_v22 = vpop.f32.mrf.mxu0 }
0x2173   :  { %v7105_v63 = vpop.f32.mrf.mxu0 }
0x2174   :  { %v7340_v8 = vpop.f32.mrf.mxu1  ;;  %v7106_v7 = vadd.f32 %v7105_v63, %v7026_v30 }
0x2175   :  { %v10908_v17 = vpop.f32.mrf.mxu0 }
0x2176   :  { %v10941_v43 = vpop.f32.mrf.mxu1  ;;  %v7183_v9 = vadd.f32 %v7182_v62, %v7106_v7 }
0x217c   :  { %v7265_v52 = vpop.f32.mrf.mxu0 }
0x217d   :  { %v7266_v56 = vadd.f32 %v7265_v52, %v7183_v9 }
0x217e   :  { %v10930_v46 = vpop.f32.mrf.mxu0 }
0x217f   :  { %v7341_v39 = vadd.f32 %v7340_v8, %v7266_v56 }
0x2181   :  { %v7349_v42 = vadd.f32 %v7341_v39, %v12589_v51  ;;  %v7344_v55 = vadd.f32 %v7341_v39, %v12434_v3 }
0x2183   :  { %7351 = vrot.lane.b32.xlu0 %v7349_v42, %s11298_s18  ;;  %v7345_v57 = vmul.f32 0.5, %v7344_v55 }
0x2185   :  { %11259 = vtanh.f32 %v7345_v57 }
0x2192   :  { %v11260_v34 = vpop.eup %11259 }
0x2193   :  { %v7347_v25 = vmul.f32 0.5, %v11260_v34 }
0x2195   :  { %v7348_v47 = vadd.f32 0.5, %v7347_v25 }
0x2197   :  { %v7361_v40 = vsub.f32 1.0, %v7348_v47  ;;  %v7367_v26 = vmul.f32 %v7348_v47, %v12742_v10 }
0x21f5   :  { %v7352_v54 = vpop.permute.xlu0 %7351 }
0x21f6   :  { %v7354_v20 = vmul.f32 %v7352_v54, %v7348_v47 }
0x21f8   :  { %7356 = vrot.lane.b32.xlu1 %v7354_v20, %s11298_s18 }
0x226a   :  { %v7357_v61 = vpop.permute.xlu1 %7356 }
0x226b   :  { %v7359_v4 = vadd.f32 %v7357_v61, %v12434_v3 }
0x226d   :  { %11261 = vtanh.f32 %v7359_v4 }
0x227a   :  { %v11262_v15 = vpop.eup %11261 }
0x227b   :  { %7363 = vrot.lane.b32.xlu0 %v11262_v15, %s11300_s4 }
0x22ed   :  { %v7364_v1 = vpop.permute.xlu0 %7363 }
0x22ee   :  { %v7366_v23 = vmul.f32 %v7364_v1, %v7361_v40 }
0x22f0   :  { %v12814_v58 = vadd.f32 %v7367_v26, %v7366_v23 }
0x22f2   :  { %7370 = vrot.lane.b32.xlu1 %v12814_v58, %s11300_s4 }
0x2364   :  { %v7371_v53 = vpop.permute.xlu1 %7370 }
0x2365   :  { %v7372_v18 = vsel %vm866_vm3, %v7371_v53, 0 }
0x2366   :  { %v7443_v49 = vand.u32 4294901760, %v7372_v18 }
0x2368   :  { %v7444_v5 = vsub.f32 %v7372_v18, %v7443_v49  ;;  %10962 = vmatmul.mubr.f32.vlgmr.msra.gmra.mxu1 %v7443_v49 }
0x2369   :  { %10976 = vmatpush3.msra.mxu1 %v12451_v27  ;;  %10983 = vmatprep.mubr.msk.f32.mxu1 %vm11301_vm2, %v13130_v11 }
0x236a   :  { %v7445_v3 = vand.u32 4294901760, %v7444_v5  ;;  %10977 = vmatprep.subr.mxu1 %v13130_v11 }
0x236b   :  { %10978 = vmatpush3.msra.mxu1 %v12453_v48 }
0x236c   :  { %v7446_v10 = vsub.f32 %v7444_v5, %v7445_v3  ;;  %10979 = vmatprep.subr.mxu1 %v13130_v11 }
0x236d   :  { %10980 = vmatpush3.msra.mxu1 %v12455_v35 }
0x236e   :  { %v7447_v16 = vand.u32 4294901760, %v7446_v10  ;;  %10981 = vmatprep.subr.mxu1 %v13130_v11 }
0x236f   :  { %10982 = vmatpush3.msra.mxu1 %v12504_v0 }
0x2370   :  { %10984 = vmatmul.mubr.f32.vlgmr.msra.gmra.mxu1 %v7445_v3  ;;  %10997 = vmatprep.subr.mxu1 %v13130_v11 }
0x2371   :  { %10951 = vmatmul.mubr.f32.vlgmr.msra.gmra.mxu0 %v7447_v16  ;;  %10998 = vmatpush3.msra.mxu1 %v12451_v27 }
0x2372   :  { %10965 = vmatpush3.msra.mxu0 %v12459_v31  ;;  %10999 = vmatprep.subr.mxu1 %v13130_v11 }
0x2373   :  { %10966 = vmatprep.subr.mxu0 %v13130_v11  ;;  %11000 = vmatpush3.msra.mxu1 %v12453_v48 }
0x2374   :  { %10967 = vmatpush3.msra.mxu0 %v12462_v32  ;;  %11001 = vmatprep.subr.mxu1 %v13130_v11 }
0x2375   :  { %10968 = vmatprep.subr.mxu0 %v13130_v11  ;;  %11002 = vmatpush3.msra.mxu1 %v12455_v35 }
0x2376   :  { %10969 = vmatpush3.msra.mxu0 %v12465_v37  ;;  %11003 = vmatprep.subr.mxu1 %v13130_v11 }
0x2377   :  { %10970 = vmatprep.subr.mxu0 %v13130_v11  ;;  %10972 = vmatprep.mubr.msk.f32.mxu0 %vm11301_vm2, %v13130_v11 }
0x2378   :  { %10971 = vmatpush3.msra.mxu0 %v12507_v29  ;;  %11004 = vmatpush3.msra.mxu1 %v12504_v0 }
0x2379   :  { %11005 = vmatprep.mubr.msk.f32.mxu1 %vm11301_vm2, %v13130_v11  ;;  %10973 = vmatmul.mubr.f32.vlgmr.msra.gmra.mxu0 %v7444_v5 }
0x237a   :  { %10986 = vmatprep.subr.mxu0 %v13130_v11  ;;  %11006 = vmatmul.mubr.f32.vlgmr.msra.gmra.mxu1 %v7443_v49 }
0x237b   :  { %10987 = vmatpush3.msra.mxu0 %v12469_v38  ;;  %10994 = vmatprep.mubr.msk.f32.mxu0 %vm11301_vm2, %v13130_v11 }
0x237c   :  { %10988 = vmatprep.subr.mxu0 %v13130_v11  ;;  %11019 = vmatprep.subr.mxu1 %v13130_v11 }
0x237d   :  { %10989 = vmatpush3.msra.mxu0 %v12472_v50  ;;  %11020 = vmatpush3.msra.mxu1 %v12488_v19 }
0x237e   :  { %10990 = vmatprep.subr.mxu0 %v13130_v11  ;;  %11021 = vmatprep.subr.mxu1 %v13130_v11 }
0x237f   :  { %10991 = vmatpush3.msra.mxu0 %v12476_v21  ;;  %11022 = vmatpush3.msra.mxu1 %v12490_v28 }
0x2380   :  { %10992 = vmatprep.subr.mxu0 %v13130_v11  ;;  %11023 = vmatprep.subr.mxu1 %v13130_v11 }
0x2381   :  { %10993 = vmatpush3.msra.mxu0 %v12512_v36  ;;  %11024 = vmatpush3.msra.mxu1 %v12493_v44 }
0x2382   :  { %10995 = vmatmul.mubr.f32.vlgmr.msra.gmra.mxu0 %v7443_v49  ;;  %11025 = vmatprep.subr.mxu1 %v13130_v11 }
0x2383   :  { %11026 = vmatpush3.msra.mxu1 %v12516_v59  ;;  %11008 = vmatprep.subr.mxu0 %v13130_v11 }
0x2384   :  { %11027 = vmatprep.mubr.msk.f32.mxu1 %vm11301_vm2, %v13130_v11  ;;  %11041 = vmatprep.subr.mxu1 %v13130_v11 }
0x2385   :  { %11009 = vmatpush3.msra.mxu0 %v12451_v27  ;;  %11016 = vmatprep.mubr.msk.f32.mxu0 %vm11301_vm2, %v13130_v11 }
0x2386   :  { %11010 = vmatprep.subr.mxu0 %v13130_v11 }
0x2387   :  { %11011 = vmatpush3.msra.mxu0 %v12453_v48 }
0x2388   :  { %11012 = vmatprep.subr.mxu0 %v13130_v11 }
0x2389   :  { %11013 = vmatpush3.msra.mxu0 %v12455_v35 }
0x238a   :  { %11014 = vmatprep.subr.mxu0 %v13130_v11 }
0x238b   :  { %11015 = vmatpush3.msra.mxu0 %v12504_v0 }
0x238c   :  { %11030 = vmatprep.subr.mxu0 %v13130_v11 }
0x2428   :  { %v7540_v12 = vpop.f32.mrf.mxu1 }
0x242a   :  { %v10963_v6 = vpop.f32.mrf.mxu1 }
0x2430   :  { %v7697_v24 = vpop.f32.mrf.mxu1 }
0x2431   :  { %v7449_v62 = vpop.f32.mrf.mxu0 }
0x2432   :  { %v10985_v2 = vpop.f32.mrf.mxu1  ;;  %v7541_v8 = vadd.f32 %v7540_v12, %v7449_v62 }
0x2433   :  { %v10952_v13 = vpop.f32.mrf.mxu0 }
0x2439   :  { %v7620_v22 = vpop.f32.mrf.mxu0 }
0x243a   :  { %v7855_v63 = vpop.f32.mrf.mxu1  ;;  %v7621_v43 = vadd.f32 %v7620_v22, %v7541_v8 }
0x243b   :  { %v10974_v30 = vpop.f32.mrf.mxu0 }
0x243c   :  { %v11007_v17 = vpop.f32.mrf.mxu1  ;;  %v7698_v7 = vadd.f32 %v7697_v24, %v7621_v43 }
0x2442   :  { %v7780_v9 = vpop.f32.mrf.mxu0 }
0x2443   :  { %v7781_v52 = vadd.f32 %v7780_v9, %v7698_v7  ;;  %v5148_v7 = vadd.f32 %v12587_v14, %v12424_v41 }
0x2444   :  { %v10996_v56 = vpop.f32.mrf.mxu0 }
0x2445   :  { %v7856_v46 = vadd.f32 %v7855_v63, %v7781_v52  ;;  %v5265_v9 = vadd.f32 %v12585_v45, %v5148_v7 }
0x2447   :  { %v7864_v39 = vadd.f32 %v7856_v46, %v12589_v51  ;;  %v7859_v42 = vadd.f32 %v7856_v46, %v12432_v33 }
0x2449   :  { %7866 = vrot.lane.b32.xlu0 %v7864_v39, %s11298_s18  ;;  %v7860_v55 = vmul.f32 0.5, %v7859_v42 }
0x244b   :  { %11263 = vtanh.f32 %v7860_v55 }
0x2458   :  { %v11264_v57 = vpop.eup %11263 }
0x2459   :  { %v7862_v34 = vmul.f32 0.5, %v11264_v57 }
0x245b   :  { %v7863_v25 = vadd.f32 0.5, %v7862_v34 }
0x245d   :  { %v7876_v15 = vsub.f32 1.0, %v7863_v25  ;;  %v7882_v1 = vmul.f32 %v7863_v25, %v12814_v58 }
0x24bb   :  { %v7867_v47 = vpop.permute.xlu0 %7866 }
0x24bc   :  { %v7869_v54 = vmul.f32 %v7867_v47, %v7863_v25 }
0x24be   :  { %7871 = vrot.lane.b32.xlu1 %v7869_v54, %s11298_s18 }
0x2530   :  { %v7872_v20 = vpop.permute.xlu1 %7871 }
0x2531   :  { %v7874_v61 = vadd.f32 %v7872_v20, %v12432_v33 }
0x2533   :  { %11265 = vtanh.f32 %v7874_v61 }
0x2540   :  { %v11266_v4 = vpop.eup %11265 }
0x2541   :  { %7878 = vrot.lane.b32.xlu0 %v11266_v4, %s11300_s4 }
0x25b3   :  { %v7879_v40 = vpop.permute.xlu0 %7878 }
0x25b4   :  { %v7881_v26 = vmul.f32 %v7879_v40, %v7876_v15 }
0x25b6   :  { %v12886_v23 = vadd.f32 %v7882_v1, %v7881_v26 }
0x25b8   :  { %7885 = vrot.lane.b32.xlu1 %v12886_v23, %s11300_s4 }
0x262a   :  { %v7886_v53 = vpop.permute.xlu1 %7885 }
0x262b   :  { %v7887_v18 = vsel %vm866_vm3, %v7886_v53, 0 }
0x262c   :  { %v7958_v49 = vand.u32 4294901760, %v7887_v18 }
0x262e   :  { %v7959_v5 = vsub.f32 %v7887_v18, %v7958_v49  ;;  %11028 = vmatmul.mubr.f32.vlgmr.msra.gmra.mxu1 %v7958_v49 }
0x262f   :  { %11042 = vmatpush3.msra.mxu1 %v12451_v27  ;;  %11049 = vmatprep.mubr.msk.f32.mxu1 %vm11301_vm2, %v13130_v11 }
0x2630   :  { %v7960_v33 = vand.u32 4294901760, %v7959_v5  ;;  %11043 = vmatprep.subr.mxu1 %v13130_v11 }
0x2631   :  { %11044 = vmatpush3.msra.mxu1 %v12453_v48 }
0x2632   :  { %v7961_v58 = vsub.f32 %v7959_v5, %v7960_v33  ;;  %11045 = vmatprep.subr.mxu1 %v13130_v11 }
0x2633   :  { %11046 = vmatpush3.msra.mxu1 %v12455_v35 }
0x2634   :  { %v7962_v3 = vand.u32 4294901760, %v7961_v58  ;;  %11047 = vmatprep.subr.mxu1 %v13130_v11 }
0x2635   :  { %11048 = vmatpush3.msra.mxu1 %v12504_v0 }
0x2636   :  { %11050 = vmatmul.mubr.f32.vlgmr.msra.gmra.mxu1 %v7960_v33  ;;  %11063 = vmatprep.subr.mxu1 %v13130_v11 }
0x2637   :  { %11017 = vmatmul.mubr.f32.vlgmr.msra.gmra.mxu0 %v7962_v3  ;;  %11064 = vmatpush3.msra.mxu1 %v12451_v27 }
0x2638   :  { %11031 = vmatpush3.msra.mxu0 %v12459_v31  ;;  %11065 = vmatprep.subr.mxu1 %v13130_v11 }
0x2639   :  { %11032 = vmatprep.subr.mxu0 %v13130_v11  ;;  %11066 = vmatpush3.msra.mxu1 %v12453_v48 }
0x263a   :  { %11033 = vmatpush3.msra.mxu0 %v12462_v32  ;;  %11067 = vmatprep.subr.mxu1 %v13130_v11 }
0x263b   :  { %11034 = vmatprep.subr.mxu0 %v13130_v11  ;;  %11068 = vmatpush3.msra.mxu1 %v12455_v35 }
0x263c   :  { %11035 = vmatpush3.msra.mxu0 %v12465_v37  ;;  %11069 = vmatprep.subr.mxu1 %v13130_v11 }
0x263d   :  { %11036 = vmatprep.subr.mxu0 %v13130_v11  ;;  %11038 = vmatprep.mubr.msk.f32.mxu0 %vm11301_vm2, %v13130_v11 }
0x263e   :  { %11037 = vmatpush3.msra.mxu0 %v12507_v29  ;;  %11070 = vmatpush3.msra.mxu1 %v12504_v0 }
0x263f   :  { %11071 = vmatprep.mubr.msk.f32.mxu1 %vm11301_vm2, %v13130_v11  ;;  %11039 = vmatmul.mubr.f32.vlgmr.msra.gmra.mxu0 %v7959_v5 }
0x2640   :  { %11052 = vmatprep.subr.mxu0 %v13130_v11  ;;  %11072 = vmatmul.mubr.f32.vlgmr.msra.gmra.mxu1 %v7958_v49 }
0x2641   :  { %11053 = vmatpush3.msra.mxu0 %v12469_v38  ;;  %11060 = vmatprep.mubr.msk.f32.mxu0 %vm11301_vm2, %v13130_v11 }
0x2642   :  { %11054 = vmatprep.subr.mxu0 %v13130_v11  ;;  %11085 = vmatprep.subr.mxu1 %v13130_v11 }
0x2643   :  { %11055 = vmatpush3.msra.mxu0 %v12472_v50  ;;  %11086 = vmatpush3.msra.mxu1 %v12488_v19 }
0x2644   :  { %11056 = vmatprep.subr.mxu0 %v13130_v11  ;;  %11087 = vmatprep.subr.mxu1 %v13130_v11 }
0x2645   :  { %11057 = vmatpush3.msra.mxu0 %v12476_v21  ;;  %11088 = vmatpush3.msra.mxu1 %v12490_v28 }
0x2646   :  { %11058 = vmatprep.subr.mxu0 %v13130_v11  ;;  %11089 = vmatprep.subr.mxu1 %v13130_v11 }
0x2647   :  { %11059 = vmatpush3.msra.mxu0 %v12512_v36  ;;  %11090 = vmatpush3.msra.mxu1 %v12493_v44 }
0x2648   :  { %11061 = vmatmul.mubr.f32.vlgmr.msra.gmra.mxu0 %v7958_v49  ;;  %11091 = vmatprep.subr.mxu1 %v13130_v11 }
0x2649   :  { %11092 = vmatpush3.msra.mxu1 %v12516_v59  ;;  %11074 = vmatprep.subr.mxu0 %v13130_v11 }
0x264a   :  { %11093 = vmatprep.mubr.msk.f32.mxu1 %vm11301_vm2, %v13130_v11  ;;  %11107 = vmatprep.subr.mxu1 %v13130_v11 }
0x264b   :  { %11075 = vmatpush3.msra.mxu0 %v12451_v27  ;;  %11082 = vmatprep.mubr.msk.f32.mxu0 %vm11301_vm2, %v13130_v11 }
0x264c   :  { %11076 = vmatprep.subr.mxu0 %v13130_v11 }
0x264d   :  { %11077 = vmatpush3.msra.mxu0 %v12453_v48 }
0x264e   :  { %11078 = vmatprep.subr.mxu0 %v13130_v11 }
0x264f   :  { %11079 = vmatpush3.msra.mxu0 %v12455_v35 }
0x2650   :  { %11080 = vmatprep.subr.mxu0 %v13130_v11 }
0x2651   :  { %11081 = vmatpush3.msra.mxu0 %v12504_v0 }
0x2652   :  { %11096 = vmatprep.subr.mxu0 %v13130_v11 }
0x26ee   :  { %v8055_v19 = vpop.f32.mrf.mxu1 }
0x26f0   :  { %v11029_v28 = vpop.f32.mrf.mxu1 }
0x26f6   :  { %v8212_v44 = vpop.f32.mrf.mxu1 }
0x26f7   :  { %v7964_v59 = vpop.f32.mrf.mxu0 }
0x26f8   :  { %v11051_v10 = vpop.f32.mrf.mxu1  ;;  %v8056_v24 = vadd.f32 %v8055_v19, %v7964_v59 }
0x26f9   :  { %v11018_v16 = vpop.f32.mrf.mxu0 }
0x26ff   :  { %v8135_v12 = vpop.f32.mrf.mxu0 }
0x2700   :  { %v8370_v6 = vpop.f32.mrf.mxu1  ;;  %v8136_v13 = vadd.f32 %v8135_v12, %v8056_v24  ;;  %v8916_v24 = vld [vmem:[%s13119_s9 + $0x10] sm:$0xff] }
0x2701   :  { %v11040_v62 = vpop.f32.mrf.mxu0 }
0x2702   :  { %v11073_v2 = vpop.f32.mrf.mxu1  ;;  %v8213_v22 = vadd.f32 %v8212_v44, %v8136_v13  ;;  %v8915_v62 = vld [vmem:[%s13119_s9 + $0x8] sm:$0xff]  ;;  %v13024_v13 = vand.u32 4294901760, %v8916_v24 }
0x2708   :  { %v8295_v63 = vpop.f32.mrf.mxu0 }
0x2709   :  { %v8296_v8 = vadd.f32 %v8295_v63, %v8213_v22  ;;  %v13026_v22 = vand.u32 4294901760, %v8915_v62  ;;  %v13032_v63 = vsub.f32 %v8916_v24, %v13024_v13 }
0x270a   :  { %v11062_v30 = vpop.f32.mrf.mxu0 }
0x270b   :  { %v8371_v17 = vadd.f32 %v8370_v6, %v8296_v8  ;;  %v13035_v8 = vsub.f32 %v8915_v62, %v13026_v22 }
0x270d   :  { %v8379_v43 = vadd.f32 %v8371_v17, %v12589_v51  ;;  %v8374_v52 = vadd.f32 %v8371_v17, %v5265_v9  ;;  %v9043_v17 = vand.u32 4294901760, %v13032_v63 }
0x270f   :  { %8381 = vrot.lane.b32.xlu0 %v8379_v43, %s11298_s18  ;;  %v8375_v56 = vmul.f32 0.5, %v8374_v52  ;;  %v9050_v43 = vand.u32 4294901760, %v13035_v8 }
0x2711   :  { %11267 = vtanh.f32 %v8375_v56  ;;  %v9051_v52 = vsub.f32 %v13035_v8, %v9050_v43 }
0x271e   :  { %v11268_v46 = vpop.eup %11267 }
0x271f   :  { %v8377_v39 = vmul.f32 0.5, %v11268_v46 }
0x2721   :  { %v8378_v42 = vadd.f32 0.5, %v8377_v39 }
0x2723   :  { %v8391_v54 = vsub.f32 1.0, %v8378_v42  ;;  %v8397_v45 = vmul.f32 %v8378_v42, %v12886_v23 }
0x2781   :  { %v8382_v55 = vpop.permute.xlu0 %8381 }
0x2782   :  { %v8384_v57 = vmul.f32 %v8382_v55, %v8378_v42  ;;  %v9052_v42 = vand.u32 4294901760, %v9051_v52  ;;  %v8914_v55 = vld [vmem:[%s13119_s9] sm:$0xff] }
0x2784   :  { %8386 = vrot.lane.b32.xlu1 %v8384_v57, %s11298_s18  ;;  %v8964_v57 = vand.u32 4294901760, %v8914_v55 }
0x27f6   :  { %v8387_v34 = vpop.permute.xlu1 %8386 }
0x27f7   :  { %v8389_v25 = vadd.f32 %v8387_v34, %v5265_v9  ;;  %v9044_v9 = vsub.f32 %v13032_v63, %v9043_v17  ;;  %v9056_v34 = vsub.f32 %v8914_v55, %v8964_v57 }
0x27f9   :  { %11269 = vtanh.f32 %v8389_v25  ;;  %v9045_v39 = vand.u32 4294901760, %v9044_v9  ;;  %v9057_v25 = vand.u32 4294901760, %v9056_v34 }
0x2806   :  { %v11270_v47 = vpop.eup %11269 }
0x2807   :  { %8393 = vrot.lane.b32.xlu0 %v11270_v47, %s11300_s4  ;;  %v9058_v47 = vsub.f32 %v9056_v34, %v9057_v25 }
0x2879   :  { %v8394_v41 = vpop.permute.xlu0 %8393 }
0x287a   :  { %v8396_v14 = vmul.f32 %v8394_v41, %v8391_v54  ;;  %v9059_v54 = vand.u32 4294901760, %v9058_v47 }
0x287c   :  { %v12959_v20 = vadd.f32 %v8397_v45, %v8396_v14 }
0x287e   :  { %8400 = vrot.lane.b32.xlu1 %v12959_v20, %s11300_s4 }
0x28f0   :  { %v8401_v61 = vpop.permute.xlu1 %8400 }
0x28f1   :  { %v8402_v4 = vsel %vm866_vm3, %v8401_v61, 0 }
0x28f2   :  { %v8473_v15 = vand.u32 4294901760, %v8402_v4 }
0x28f4   :  { %v8474_v40 = vsub.f32 %v8402_v4, %v8473_v15  ;;  %11094 = vmatmul.mubr.f32.vlgmr.msra.gmra.mxu1 %v8473_v15 }
0x28f5   :  { %11108 = vmatpush3.msra.mxu1 %v12451_v27  ;;  %11115 = vmatprep.mubr.msk.f32.mxu1 %vm11301_vm2, %v13130_v11 }
0x28f6   :  { %v8475_v1 = vand.u32 4294901760, %v8474_v40  ;;  %11109 = vmatprep.subr.mxu1 %v13130_v11 }
0x28f7   :  { %11110 = vmatpush3.msra.mxu1 %v12453_v48 }
0x28f8   :  { %v8476_v26 = vsub.f32 %v8474_v40, %v8475_v1  ;;  %11111 = vmatprep.subr.mxu1 %v13130_v11 }
0x28f9   :  { %11112 = vmatpush3.msra.mxu1 %v12455_v35 }
0x28fa   :  { %v8477_v23 = vand.u32 4294901760, %v8476_v26  ;;  %11113 = vmatprep.subr.mxu1 %v13130_v11 }
0x28fb   :  { %11114 = vmatpush3.msra.mxu1 %v12504_v0 }
0x28fc   :  { %11116 = vmatmul.mubr.f32.vlgmr.msra.gmra.mxu1 %v8475_v1  ;;  %11129 = vmatprep.subr.mxu1 %v13130_v11 }
0x28fd   :  { %11083 = vmatmul.mubr.f32.vlgmr.msra.gmra.mxu0 %v8477_v23  ;;  %11130 = vmatpush3.msra.mxu1 %v12451_v27 }
0x28fe   :  { %11097 = vmatpush3.msra.mxu0 %v12459_v31  ;;  %11131 = vmatprep.subr.mxu1 %v13130_v11 }
0x28ff   :  { %11098 = vmatprep.subr.mxu0 %v13130_v11  ;;  %11132 = vmatpush3.msra.mxu1 %v12453_v48 }
0x2900   :  { %11099 = vmatpush3.msra.mxu0 %v12462_v32  ;;  %11133 = vmatprep.subr.mxu1 %v13130_v11 }
0x2901   :  { %11100 = vmatprep.subr.mxu0 %v13130_v11  ;;  %11134 = vmatpush3.msra.mxu1 %v12455_v35 }
0x2902   :  { %11101 = vmatpush3.msra.mxu0 %v12465_v37  ;;  %11135 = vmatprep.subr.mxu1 %v13130_v11 }
0x2903   :  { %11102 = vmatprep.subr.mxu0 %v13130_v11  ;;  %11104 = vmatprep.mubr.msk.f32.mxu0 %vm11301_vm2, %v13130_v11 }
0x2904   :  { %11103 = vmatpush3.msra.mxu0 %v12507_v29  ;;  %11136 = vmatpush3.msra.mxu1 %v12504_v0 }
0x2905   :  { %11137 = vmatprep.mubr.msk.f32.mxu1 %vm11301_vm2, %v13130_v11  ;;  %11105 = vmatmul.mubr.f32.vlgmr.msra.gmra.mxu0 %v8474_v40 }
0x2906   :  { %11118 = vmatprep.subr.mxu0 %v13130_v11  ;;  %11138 = vmatmul.mubr.f32.vlgmr.msra.gmra.mxu1 %v8473_v15 }
0x2907   :  { %11119 = vmatpush3.msra.mxu0 %v12469_v38  ;;  %11126 = vmatprep.mubr.msk.f32.mxu0 %vm11301_vm2, %v13130_v11 }
0x2908   :  { %11120 = vmatprep.subr.mxu0 %v13130_v11  ;;  %11151 = vmatprep.subr.mxu1 %v13130_v11 }
0x2909   :  { %11121 = vmatpush3.msra.mxu0 %v12472_v50  ;;  %11159 = vmatprep.mubr.msk.f32.mxu1 %vm11301_vm2, %v13130_v11 }
0x290a   :  { %11122 = vmatprep.subr.mxu0 %v13130_v11 }
0x290b   :  { %11123 = vmatpush3.msra.mxu0 %v12476_v21 }
0x290c   :  { %11124 = vmatprep.subr.mxu0 %v13130_v11 }
0x290d   :  { %11125 = vmatpush3.msra.mxu0 %v12512_v36 }
0x290e   :  { %11127 = vmatmul.mubr.f32.vlgmr.msra.gmra.mxu0 %v8473_v15  ;;  %11140 = vmatprep.subr.mxu0 %v13130_v11 }
0x290f   :  { %11148 = vmatprep.mubr.msk.f32.mxu0 %vm11301_vm2, %v13130_v11 }
0x29b4   :  { %v8570_v27 = vpop.f32.mrf.mxu1 }
0x29b6   :  { %v11095_v48 = vpop.f32.mrf.mxu1 }
0x29bc   :  { %v8727_v35 = vpop.f32.mrf.mxu1 }
0x29bd   :  { %v8479_v31 = vpop.f32.mrf.mxu0 }
0x29be   :  { %v11117_v32 = vpop.f32.mrf.mxu1  ;;  %v8571_v0 = vadd.f32 %v8570_v27, %v8479_v31 }
0x29bf   :  { %v11084_v37 = vpop.f32.mrf.mxu0 }
0x29c5   :  { %v8650_v38 = vpop.f32.mrf.mxu0 }
0x29c6   :  { %v8885_v50 = vpop.f32.mrf.mxu1  ;;  %v8651_v53 = vadd.f32 %v8650_v38, %v8571_v0 }
0x29c7   :  { %v11106_v21 = vpop.f32.mrf.mxu0 }
0x29c8   :  { %v11139_v29 = vpop.f32.mrf.mxu1  ;;  %v8728_v18 = vadd.f32 %v8727_v35, %v8651_v53 }
0x29ce   :  { %v8810_v36 = vpop.f32.mrf.mxu0 }
0x29cf   :  { %v8811_v49 = vadd.f32 %v8810_v36, %v8728_v18 }
0x29d0   :  { %v11128_v5 = vpop.f32.mrf.mxu0 }
0x29d1   :  { %v8886_v33 = vadd.f32 %v8885_v50, %v8811_v49  ;;  %v9435_v50 = vld [vmem:[%s13120_s10] ss:$0 sm:$0xff] }
0x29d3   :  { %v8894_v58 = vadd.f32 %v8886_v33, %v12589_v51  ;;  %v8889_v3 = vadd.f32 %v8886_v33, %v12436_v60  ;;  %v8917_v51 = vld [vmem:[%s13119_s9 + $0x18] sm:$0xff] }
0x29d4   :  { %v13022_v2 = vand.u32 4294901760, %v8917_v51 }
0x29d5   :  { %8896 = vrot.lane.b32.xlu0 %v8894_v58, %s11298_s18  ;;  %v8890_v19 = vmul.f32 0.5, %v8889_v3 }
0x29d6   :  { %11141 = vmatpush3.msra.mxu0 %v13022_v2 }
0x29d7   :  { %11271 = vtanh.f32 %v8890_v19  ;;  %11142 = vmatprep.subr.mxu0 %v13130_v11 }
0x29d8   :  { %11143 = vmatpush3.msra.mxu0 %v13024_v13 }
0x29d9   :  { %11144 = vmatprep.subr.mxu0 %v13130_v11 }
0x29da   :  { %11145 = vmatpush3.msra.mxu0 %v13026_v22 }
0x29db   :  { %11146 = vmatprep.subr.mxu0 %v13130_v11 }
0x29dc   :  { %11147 = vmatpush3.msra.mxu0 %v8964_v57 }
0x29dd   :  { %11162 = vmatprep.subr.mxu0 %v13130_v11 }
0x29e4   :  { %v11272_v28 = vpop.eup %11271 }
0x29e5   :  { %v8892_v44 = vmul.f32 0.5, %v11272_v28 }
0x29e7   :  { %v8893_v59 = vadd.f32 0.5, %v8892_v44 }
0x29e9   :  { %v8906_v41 = vsub.f32 1.0, %v8893_v59  ;;  %v8912_v14 = vmul.f32 %v8893_v59, %v12959_v20 }
0x2a47   :  { %v8897_v10 = vpop.permute.xlu0 %8896 }
0x2a48   :  { %v8899_v16 = vmul.f32 %v8897_v10, %v8893_v59 }
0x2a4a   :  { %8901 = vrot.lane.b32.xlu1 %v8899_v16, %s11298_s18 }
0x2abc   :  { %v8902_v12 = vpop.permute.xlu1 %8901 }
0x2abd   :  { %v8904_v6 = vadd.f32 %v8902_v12, %v12436_v60  ;;  %v13029_v60 = vsub.f32 %v8917_v51, %v13022_v2 }
0x2abf   :  { %11273 = vtanh.f32 %v8904_v6  ;;  %v9036_v30 = vand.u32 4294901760, %v13029_v60 }
0x2ac1   :  { %v9037_v7 = vsub.f32 %v13029_v60, %v9036_v30 }
0x2ac3   :  { %v9038_v46 = vand.u32 4294901760, %v9037_v7 }
0x2ac5   :  { %11152 = vmatpush3.msra.mxu1 %v9038_v46 }
0x2ac6   :  { %11153 = vmatprep.subr.mxu1 %v13130_v11 }
0x2ac7   :  { %11154 = vmatpush3.msra.mxu1 %v9045_v39 }
0x2ac8   :  { %11155 = vmatprep.subr.mxu1 %v13130_v11 }
0x2ac9   :  { %11156 = vmatpush3.msra.mxu1 %v9052_v42 }
0x2aca   :  { %11157 = vmatprep.subr.mxu1 %v13130_v11 }
0x2acb   :  { %11158 = vmatpush3.msra.mxu1 %v9059_v54 }
0x2acc   :  { %v11274_v56 = vpop.eup %11273  ;;  %11173 = vmatprep.subr.mxu1 %v13130_v11 }
0x2acd   :  { %8908 = vrot.lane.b32.xlu0 %v11274_v56, %s11300_s4 }
0x2b3f   :  { %v8909_v45 = vpop.permute.xlu0 %8908 }
0x2b40   :  { %v8911_v61 = vmul.f32 %v8909_v45, %v8906_v41 }
0x2b42   :  { %v8913_v4 = vadd.f32 %v8912_v14, %v8911_v61 }
0x2b44   :  { %8926 = vrot.lane.b32.xlu1 %v8913_v4, %s11300_s4 }
0x2bb6   :  { %v8927_v15 = vpop.permute.xlu1 %8926 }
0x2bb7   :  { %v8928_v40 = vsel %vm866_vm3, %v8927_v15, 0 }
0x2bb8   :  { %v8999_v1 = vand.u32 4294901760, %v8928_v40 }
0x2bba   :  { %v9000_v26 = vsub.f32 %v8928_v40, %v8999_v1  ;;  %11160 = vmatmul.mubr.f32.vlgmr.msra.gmra.mxu1 %v8999_v1 }
0x2bbb   :  { %11174 = vmatpush3.msra.mxu1 %v13022_v2  ;;  %11181 = vmatprep.mubr.msk.f32.mxu1 %vm11301_vm2, %v13130_v11 }
0x2bbc   :  { %v9001_v23 = vand.u32 4294901760, %v9000_v26  ;;  %11175 = vmatprep.subr.mxu1 %v13130_v11 }
0x2bbd   :  { %11176 = vmatpush3.msra.mxu1 %v13024_v13 }
0x2bbe   :  { %v9002_v20 = vsub.f32 %v9000_v26, %v9001_v23  ;;  %11177 = vmatprep.subr.mxu1 %v13130_v11 }
0x2bbf   :  { %11178 = vmatpush3.msra.mxu1 %v13026_v22 }
0x2bc0   :  { %v9003_v27 = vand.u32 4294901760, %v9002_v20  ;;  %11179 = vmatprep.subr.mxu1 %v13130_v11 }
0x2bc1   :  { %11180 = vmatpush3.msra.mxu1 %v8964_v57 }
0x2bc2   :  { %11182 = vmatmul.mubr.f32.vlgmr.msra.gmra.mxu1 %v9001_v23  ;;  %11195 = vmatprep.subr.mxu1 %v13130_v11 }
0x2bc3   :  { %11149 = vmatmul.mubr.f32.vlgmr.msra.gmra.mxu0 %v9003_v27  ;;  %11196 = vmatpush3.msra.mxu1 %v13022_v2 }
0x2bc4   :  { %11163 = vmatpush3.msra.mxu0 %v13029_v60  ;;  %11197 = vmatprep.subr.mxu1 %v13130_v11 }
0x2bc5   :  { %11164 = vmatprep.subr.mxu0 %v13130_v11  ;;  %11198 = vmatpush3.msra.mxu1 %v13024_v13 }
0x2bc6   :  { %11165 = vmatpush3.msra.mxu0 %v13032_v63  ;;  %11199 = vmatprep.subr.mxu1 %v13130_v11 }
0x2bc7   :  { %11166 = vmatprep.subr.mxu0 %v13130_v11  ;;  %11200 = vmatpush3.msra.mxu1 %v13026_v22 }
0x2bc8   :  { %11167 = vmatpush3.msra.mxu0 %v13035_v8  ;;  %11201 = vmatprep.subr.mxu1 %v13130_v11 }
0x2bc9   :  { %11168 = vmatprep.subr.mxu0 %v13130_v11  ;;  %11170 = vmatprep.mubr.msk.f32.mxu0 %vm11301_vm2, %v13130_v11 }
0x2bca   :  { %11169 = vmatpush3.msra.mxu0 %v9056_v34  ;;  %11202 = vmatpush3.msra.mxu1 %v8964_v57 }
0x2bcb   :  { %11203 = vmatprep.mubr.msk.f32.mxu1 %vm11301_vm2, %v13130_v11  ;;  %11171 = vmatmul.mubr.f32.vlgmr.msra.gmra.mxu0 %v9000_v26 }
0x2bcc   :  { %11184 = vmatprep.subr.mxu0 %v13130_v11  ;;  %11204 = vmatmul.mubr.f32.vlgmr.msra.gmra.mxu1 %v8999_v1 }
0x2bcd   :  { %11185 = vmatpush3.msra.mxu0 %v9036_v30  ;;  %11192 = vmatprep.mubr.msk.f32.mxu0 %vm11301_vm2, %v13130_v11 }
0x2bce   :  { %11186 = vmatprep.subr.mxu0 %v13130_v11 }
0x2bcf   :  { %11187 = vmatpush3.msra.mxu0 %v9043_v17 }
0x2bd0   :  { %11188 = vmatprep.subr.mxu0 %v13130_v11 }
0x2bd1   :  { %11189 = vmatpush3.msra.mxu0 %v9050_v43 }
0x2bd2   :  { %11190 = vmatprep.subr.mxu0 %v13130_v11 }
0x2bd3   :  { %11191 = vmatpush3.msra.mxu0 %v9057_v25 }
0x2bd4   :  { %11193 = vmatmul.mubr.f32.vlgmr.msra.gmra.mxu0 %v8999_v1 }
0x2c7a   :  { %v9096_v48 = vpop.f32.mrf.mxu1 }
0x2c7c   :  { %v11161_v35 = vpop.f32.mrf.mxu1 }
0x2c82   :  { %v9253_v31 = vpop.f32.mrf.mxu1 }
0x2c83   :  { %v9005_v32 = vpop.f32.mrf.mxu0 }
0x2c84   :  { %v11183_v37 = vpop.f32.mrf.mxu1  ;;  %v9006_v0 = vadd.f32 %v9435_v50, %v9005_v32 }
0x2c85   :  { %v11150_v38 = vpop.f32.mrf.mxu0 }
0x2c86   :  { %v9097_v53 = vadd.f32 %v9096_v48, %v9006_v0 }
0x2c8b   :  { %v9176_v21 = vpop.f32.mrf.mxu0 }
0x2c8c   :  { %v9411_v29 = vpop.f32.mrf.mxu1  ;;  %v9177_v49 = vadd.f32 %v9176_v21, %v9097_v53 }
0x2c8d   :  { %v11172_v18 = vpop.f32.mrf.mxu0 }
0x2c8e   :  { %v11205_v36 = vpop.f32.mrf.mxu1  ;;  %v9254_v11 = vadd.f32 %v9253_v31, %v9177_v49 }
0x2c94   :  { %v9336_v5 = vpop.f32.mrf.mxu0 }
0x2c95   :  { %v9337_v33 = vadd.f32 %v9336_v5, %v9254_v11 }
0x2c96   :  { %v11194_v58 = vpop.f32.mrf.mxu0 }
0x2c97   :  { %v9412_v3 = vadd.f32 %v9411_v29, %v9337_v33 }
0x2c99   :  { %9416 = vst.msk [vmem:[#allocation2] sm:$0x3] %vm9415_vm4, %v9412_v3 }
0x2c9a   :  { %11287 = shalt.err (!%p11284_p4)
}
0x2c9b   :  { %9426 = dma.vmem_to_hbm [thread:$0]  %s9424_s28, 32, %s13121_s11, [#allocation3]  }
0x2c9c   :  { %11296 = dma.done.wait [#allocation3], 32  }
0x2c9d   :  { %11297 = vsyncadd [#allocation3], 4294967264 }
0x2c9e   :  { %9430 = vsyncpa [#allocation3], 1 }

</bundles_post_ra>
